<compile_context>
chip_gen: v7x
topology: tpu7x:2x2x1
jax: 0.10.0
libtpu: 0.0.40
codegen_flags: <defaults>
</compile_context>

<pallas_src>
import functools

import numpy as np
import jax
import jax.numpy as jnp
from jax.experimental import pallas as pl
from jax.experimental.pallas import tpu as pltpu

EPS = 1e-5  # PyTorch BatchNorm2d default eps


def _full_spec(shape):
    # grid-less call: one block == whole array, resident in VMEM
    return pl.BlockSpec(shape, lambda: (0,) * len(shape))


def _rescnn2d_kernel(N, H, W, depth, n_taps, steps, ksz,
                     xf_ref, s_ref, wpre_ref, bpre_ref, wblk_ref, vecs_ref,
                     wfin_ref, finb_ref, o_ref, pad_ref):
    L = xf_ref.shape[-1]              # W * Fch (W folded onto the lane axis)
    Rb = N * H                        # rows of the main image path
    Rp = 2 * N * H                    # rows incl. the x_avg path samples
    off = 8                           # interior row offset in pad_ref (sublane aligned)
    kpad = (n_taps - 1) // 2          # pre_cnn max half-kernel (4)
    cpad = ksz // 2                   # 3x3 conv half-kernel (1)
    inv_w = 1.0 / W
    inv_cnt = 1.0 / (N * H * W)
    bf16 = jnp.bfloat16

    # Zero the padded scratch once; only interiors are rewritten below, so the
    # zero borders implement 'same' padding for every conv in the network.
    pad_ref[...] = jnp.zeros(pad_ref.shape, pad_ref.dtype)

    # ---- x and its W-mean (computed on the idle MXU via S), both W-folded ----
    xf = xf_ref[...]                                              # (N, H, L)
    xavg0 = jnp.dot(xf.reshape(Rb, L), s_ref[...],
                    preferred_element_type=jnp.float32) * inv_w   # W-replicated mean
    pad_ref[0:N, off:off + H, :] = xf
    pad_ref[N:2 * N, off:off + H, :] = xavg0.reshape(N, H, L)

    # ---- pre_cnn: depth fused layers x n_taps H-taps, block-diag (L,L) weights ----
    def pre_body(l, _):
        acc = None
        for t in range(n_taps):
            r0 = off - kpad + t
            patch = pad_ref[:, r0:r0 + H, :].reshape(Rp, L).astype(bf16)
            d = jnp.dot(patch, wpre_ref[l * n_taps + t],
                        preferred_element_type=jnp.float32)
            acc = d if acc is None else acc + d
        act = jnp.maximum(acc + bpre_ref[l], 0.0)                 # bias + ReLU
        pad_ref[:, off:off + H, :] = act.reshape(2 * N, H, L)
        return 0

    jax.lax.fori_loop(0, depth, pre_body, 0)

    xb0 = pad_ref[0:N, off:off + H, :].reshape(Rb, L)             # pre_cnn(x)
    xavg_b0 = pad_ref[N:2 * N, off:off + H, :].reshape(Rb, L)     # pre_cnn(x_avg), W-replicated

    # ---- helpers -----------------------------------------------------------
    def bn_tanh(v, g, b):
        # training-mode (batch-stat) BatchNorm2d + tanh; per-channel stats are
        # folded across the W lane blocks with one small matmul against S.
        cs = jnp.concatenate([jnp.sum(v, axis=0, keepdims=True),
                              jnp.sum(v * v, axis=0, keepdims=True)], axis=0)
        mom = jnp.dot(cs, s_ref[...], preferred_element_type=jnp.float32) * inv_cnt
        mean = mom[0:1]
        var = mom[1:2] - mean * mean                              # one-pass biased stats
        return jnp.tanh((v - mean) * jax.lax.rsqrt(var + EPS) * g + b)

    def conv3x3(v, widx0):
        # 3x3 'same' conv as `ksz` block-banded (L,L) bf16 matmuls (one per dh tap).
        pad_ref[0:N, off:off + H, :] = v.reshape(N, H, L)
        acc = None
        for dh in range(ksz):
            r0 = off - cpad + dh
            patch = pad_ref[0:N, r0:r0 + H, :].reshape(Rb, L).astype(bf16)
            d = jnp.dot(patch, wblk_ref[widx0 + dh],
                        preferred_element_type=jnp.float32)
            acc = d if acc is None else acc + d
        return acc

    # ---- residual blocks ----------------------------------------------------
    def step_body(i, carry):
        xb, xavg = carry
        vp = vecs_ref[i]                                          # (16, L) packed per-step vectors
        xd = xb - xavg
        t1 = bn_tanh(xd, vp[0:1], vp[1:2])
        c1 = conv3x3(t1, i * 2 * ksz)                             # conv_1 (bias cancels in BN2)
        t2 = bn_tanh(c1, vp[2:3], vp[3:4])
        yb = conv3x3(t2, i * 2 * ksz + ksz) + vp[4:5]             # conv_2 + bias
        # conv_3 (Fch -> 1, centre depth slice) fused with the mean over W:
        # per-dh VPU multiply by a packed tap vector, then ONE lane reduce.
        pad_ref[0:N, off:off + H, :] = yb.reshape(N, H, L)
        acc3 = None
        for dh in range(ksz):
            r0 = off - cpad + dh
            patch = pad_ref[0:N, r0:r0 + H, :].reshape(Rb, L)
            pr = patch * vp[5 + dh:6 + dh]
            acc3 = pr if acc3 is None else acc3 + pr
        zmean = jnp.sum(acc3, axis=-1, keepdims=True)             # (Rb,1) = mean_W(conv_3(y)) - b3
        xavg_new = xavg + zmean + vp[8:9]                         # + b3, broadcast over lanes
        return (yb, xavg_new)

    xb, _ = jax.lax.fori_loop(0, steps, step_body, (xb0, xavg_b0))

    # ---- final 1x1 conv (Fch -> 1) as a lane-dense (L,128) matmul -----------
    out = jnp.dot(xb.astype(bf16), wfin_ref[...],
                  preferred_element_type=jnp.float32) + finb_ref[...]
    o_ref[...] = out


def init_params(key, *, steps=4, filters=4, input_channels=2, kernel_size=3,
                depth_1d=3, kernel_sizes_1d=(3, 5, 7, 9)):
    """Random parameters mirroring ResCNN2D's module tree.

    Weight layouts are the kernel-friendly transposes of the PyTorch ones:
      1-D conv:  (k, c_in, filters)       <-> torch (filters, c_in, k, 1)
      2-D conv:  (kh, kw, c_in, c_out)    <-> torch (c_out, c_in, kh, kw)
      3-D conv:  (kd, kh, kw, c_in)       <-> torch (1, c_in, kd, kh, kw)
    conv_1 biases are omitted: they cancel exactly under batch-stat BatchNorm.
    """
    Fch = filters * len(kernel_sizes_1d)
    keys = iter(jax.random.split(key, 200))

    def nrm(shape, scale=0.1):
        return scale * jax.random.normal(next(keys), shape, jnp.float32)

    pre = []
    for kc in kernel_sizes_1d:
        cins = [input_channels] + [filters] * (depth_1d - 1)
        pre.append([(nrm((kc, cins[l], filters)), nrm((filters,)))
                    for l in range(depth_1d)])

    blocks = []
    for _ in range(steps):
        blocks.append(dict(
            bn1_g=1.0 + nrm((Fch,)), bn1_b=nrm((Fch,)),
            w1=nrm((kernel_size, kernel_size, Fch, Fch)),
            bn2_g=1.0 + nrm((Fch,)), bn2_b=nrm((Fch,)),
            w2=nrm((kernel_size, kernel_size, Fch, Fch)),
            b2=nrm((Fch,)),
            w3=nrm((kernel_size, kernel_size, kernel_size, Fch)),
            b3=nrm((1,)),
        ))
    return dict(pre=pre, blocks=blocks, wf=nrm((Fch,)), bf=nrm((1,)),
                meta=dict(filters=filters, kernel_sizes_1d=tuple(kernel_sizes_1d),
                          depth_1d=depth_1d, steps=steps, Fch=Fch,
                          kernel_size=kernel_size))


def pack_params(p, width):
    """Pack module parameters into the fused, W-lane-folded kernel layout.

    The packing is specialized to the spatial width `width` (W is folded onto
    the lane axis, so the block-banded conv weights depend on it).  Host-side,
    numpy, done once.
    """
    m = p['meta']
    Fch, filt, ks = m['Fch'], m['filters'], m['kernel_sizes_1d']
    depth, steps, ksz = m['depth_1d'], m['steps'], m['kernel_size']
    W = int(width)
    L = W * Fch
    n_taps = max(ks)
    pad = n_taps // 2
    assert W <= 128, "final-conv packing assumes W <= 128"

    # --- pre_cnn: block-diag (over chains) per-layer/per-tap Fch x Fch weights,
    #     then block-diag over W -> (L, L)
    wsmall = np.zeros((depth, n_taps, Fch, Fch), np.float32)
    bsmall = np.zeros((depth, Fch), np.float32)
    for c, kc in enumerate(ks):
        o0 = c * filt
        for l in range(depth):
            w, b = p['pre'][c][l]
            w, b = np.asarray(w), np.asarray(b)          # w: (kc, c_in, filt)
            i0 = 0 if l == 0 else o0                     # layer 0 reads the shared input channels
            ci = w.shape[1]
            for j in range(kc):
                wsmall[l, j + pad - kc // 2, i0:i0 + ci, o0:o0 + filt] = w[j]
            bsmall[l, o0:o0 + filt] = b
    eyeW = np.eye(W, dtype=np.float32)
    wpre = np.stack([np.kron(eyeW, wsmall[l, t])
                     for l in range(depth) for t in range(n_taps)])  # (depth*n_taps, L, L)
    bpre = np.tile(bsmall, (1, W)).reshape(depth, 1, L)

    # --- S folds per-channel sums across the W lane blocks (and broadcasts back)
    S = np.kron(np.ones((W, W), np.float32), np.eye(Fch, dtype=np.float32))

    def band(w4):                    # (ksz, ksz, Fch, Fch) -> ksz block-banded (L, L), one per dh
        out = []
        for dh in range(ksz):
            B = np.zeros((L, L), np.float32)
            for wo in range(W):
                for dw in range(ksz):
                    ws = wo + dw - ksz // 2
                    if 0 <= ws < W:
                        B[ws * Fch:(ws + 1) * Fch, wo * Fch:(wo + 1) * Fch] = w4[dh, dw]
            out.append(B)
        return out

    wblk = np.zeros((steps * 2 * ksz, L, L), np.float32)
    vecs = np.zeros((steps, 16, L), np.float32)
    for i, blk in enumerate(p['blocks']):
        for dh, B in enumerate(band(np.asarray(blk['w1']))):
            wblk[i * 2 * ksz + dh] = B
        for dh, B in enumerate(band(np.asarray(blk['w2']))):
            wblk[i * 2 * ksz + ksz + dh] = B
        vecs[i, 0] = np.tile(np.asarray(blk['bn1_g']), W)
        vecs[i, 1] = np.tile(np.asarray(blk['bn1_b']), W)
        vecs[i, 2] = np.tile(np.asarray(blk['bn2_g']), W)
        vecs[i, 3] = np.tile(np.asarray(blk['bn2_b']), W)
        vecs[i, 4] = np.tile(np.asarray(blk['b2']), W)
        # conv_3 (Conv3d 'same' on a depth-1 volume -> centre depth slice) fused with
        # the mean over W: per-dh tap vectors with the dw multiplicity and 1/W baked in.
        w3c = np.asarray(blk['w3'])[ksz // 2]            # (kh, kw, Fch)
        for dh in range(ksz):
            Mv = np.zeros(L, np.float32)
            for ws in range(W):
                for dw in range(ksz):
                    wo = ws - dw + ksz // 2
                    if 0 <= wo < W:
                        Mv[ws * Fch:(ws + 1) * Fch] += w3c[dh, dw]
            vecs[i, 5 + dh] = Mv / W
        vecs[i, 8] = float(np.asarray(blk['b3'])[0])

    # --- final 1x1 conv (Fch -> 1) as a lane-dense (L, 128) matmul
    wfin = np.zeros((L, 128), np.float32)
    wf = np.asarray(p['wf'])
    for wo in range(W):
        wfin[wo * Fch:(wo + 1) * Fch, wo] = wf
    finb = np.full((1, 128), float(np.asarray(p['bf'])[0]), np.float32)

    bf16 = jnp.bfloat16
    return dict(
        S=jnp.asarray(S),
        wpre=jnp.asarray(wpre, dtype=bf16),
        bpre=jnp.asarray(bpre),
        wblk=jnp.asarray(wblk, dtype=bf16),
        vecs=jnp.asarray(vecs),
        wfin=jnp.asarray(wfin, dtype=bf16),
        finb=jnp.asarray(finb),
    )


def rescnn2d_forward(x_nchw, ppm, packed):
    """ResCNN2D.forward.  `ppm` is accepted but unused, exactly as in the module.
    Input is NCHW (PyTorch convention); output matches y.squeeze(1).squeeze(-1)."""
    del ppm
    N, C, H, W = x_nchw.shape
    L = packed['wfin'].shape[0]
    assert L % W == 0 and W <= 128, "packed params were built for a different width"
    Fch = L // W
    depth = packed['bpre'].shape[0]
    n_taps = packed['wpre'].shape[0] // depth
    steps = packed['vecs'].shape[0]
    ksz = packed['wblk'].shape[0] // (2 * steps)
    assert (n_taps - 1) // 2 <= 8 and ksz // 2 <= 8

    # Layout plumbing only: NCHW -> NHWC, pad channels to Fch, fold (W,Fch) -> lanes.
    x = jnp.transpose(x_nchw, (0, 2, 3, 1)).astype(jnp.float32)
    if Fch > C:
        x = jnp.pad(x, ((0, 0), (0, 0), (0, 0), (0, Fch - C)))
    xf = x.reshape(N, H, L)

    order = ('S', 'wpre', 'bpre', 'wblk', 'vecs', 'wfin', 'finb')
    args = (xf,) + tuple(packed[k] for k in order)

    kernel = functools.partial(_rescnn2d_kernel, N, H, W, depth, n_taps, steps, ksz)
    out = pl.pallas_call(
        kernel,
        out_shape=jax.ShapeDtypeStruct((N * H, 128), jnp.float32),
        in_specs=[_full_spec(a.shape) for a in args],
        out_specs=_full_spec((N * H, 128)),
        scratch_shapes=[
            # one shared zero-bordered pad buffer: pre_cnn (incl. x_avg samples)
            # and every 3x3 conv reuse it; interior rows [8, 8+H).
            pltpu.VMEM((2 * N, H + 16, L), jnp.float32),
        ],
        compiler_params=pltpu.CompilerParams(vmem_limit_bytes=32 * 1024 * 1024),
    )(*args)

    y = out[:, :W].reshape(N, H, W)        # squeeze(1) (channel dim) in NCHW terms
    if y.shape[-1] == 1:                   # .squeeze(-1) only bites when W == 1
        y = y[..., 0]
    return y


if __name__ == "__main__":
    key = jax.random.PRNGKey(0)
    kx, kppm, kp = jax.random.split(key, 3)

    N, C, H, W = 2, 2, 16, 16                              # module default input_channels=2
    x = jax.random.normal(kx, (N, C, H, W), jnp.float32)   # NCHW, like PyTorch
    ppm = jax.random.normal(kppm, (N, W), jnp.float32)     # unused by the forward pass

    params = init_params(kp)
    packed = pack_params(params, width=W)

    fwd = jax.jit(rescnn2d_forward)
    y = jax.block_until_ready(fwd(x, ppm, packed))

    assert y.shape == (N, H, W), y.shape
    assert bool(jnp.isfinite(y).all())
    print("KERNEL_OK")
</pallas_src>

<mosaic_0001>
module attributes {stable_mosaic.version = 11 : i64} {
  func.func @_rescnn2d_kernel(%arg0: memref<2x16x256xf32, #tpu.memory_space<vmem>>, %arg1: memref<256x256xf32, #tpu.memory_space<vmem>>, %arg2: memref<27x256x256xbf16, #tpu.memory_space<vmem>>, %arg3: memref<3x1x256xf32, #tpu.memory_space<vmem>>, %arg4: memref<24x256x256xbf16, #tpu.memory_space<vmem>>, %arg5: memref<4x16x256xf32, #tpu.memory_space<vmem>>, %arg6: memref<256x128xbf16, #tpu.memory_space<vmem>>, %arg7: memref<1x128xf32, #tpu.memory_space<vmem>>, %arg8: memref<32x128xf32, #tpu.memory_space<vmem>>, %arg9: memref<4x32x256xf32, #tpu.memory_space<vmem>>) attributes {dimension_semantics = [], scalar_prefetch = 0 : i64, scratch_operands = 1 : i64, tpu.core_type = #tpu.core_type<tc>} {
    %cst = arith.constant 0.000000e+00 : f32
    %0 = vector.broadcast %cst : f32 to vector<4x32x256xf32>
    %c0 = arith.constant 0 : index
    %c0_0 = arith.constant 0 : index
    %c0_1 = arith.constant 0 : index
    %1 = vector.load %arg9[%c0, %c0_0, %c0_1] : memref<4x32x256xf32, #tpu.memory_space<vmem>>, vector<4x32x256xf32>
    tpu.vector_store %arg9[%c0, %c0_0, %c0_1], %0 {strides = array<i32>} : memref<4x32x256xf32, #tpu.memory_space<vmem>>, vector<4x32x256xf32>,
    %c0_2 = arith.constant 0 : index
    %c0_3 = arith.constant 0 : index
    %c0_4 = arith.constant 0 : index
    %2 = vector.load %arg0[%c0_2, %c0_3, %c0_4] : memref<2x16x256xf32, #tpu.memory_space<vmem>>, vector<2x16x256xf32>
    %3 = vector.shape_cast %2 : vector<2x16x256xf32> to vector<32x256xf32>
    %c0_5 = arith.constant 0 : index
    %c0_6 = arith.constant 0 : index
    %4 = vector.load %arg1[%c0_5, %c0_6] : memref<256x256xf32, #tpu.memory_space<vmem>>, vector<256x256xf32>
    %cst_7 = arith.constant dense<0.000000e+00> : vector<32x256xf32>
    %5 = tpu.matmul %3, %4, %cst_7 {dimension_numbers = #tpu.dot_dimension_numbers<[1], [0], [0], [1], [0, 0, 1, 1], [], []>} : vector<32x256xf32>, vector<256x256xf32>, vector<32x256xf32> -> vector<32x256xf32>
    %cst_8 = arith.constant 6.250000e-02 : f32
    %6 = vector.broadcast %cst_8 : f32 to vector<32x256xf32>
    %7 = arith.mulf %5, %6 : vector<32x256xf32>
    %c0_9 = arith.constant 0 : index
    %c8 = arith.constant 8 : index
    %c0_10 = arith.constant 0 : index
    %8 = vector.load %arg9[%c0_9, %c8, %c0_10] : memref<4x32x256xf32, #tpu.memory_space<vmem>>, vector<2x16x256xf32>
    tpu.vector_store %arg9[%c0_9, %c8, %c0_10], %2 {strides = array<i32>} : memref<4x32x256xf32, #tpu.memory_space<vmem>>, vector<2x16x256xf32>,
    %9 = vector.shape_cast %7 : vector<32x256xf32> to vector<2x16x256xf32>
    %c2 = arith.constant 2 : index
    %c8_11 = arith.constant 8 : index
    %c0_12 = arith.constant 0 : index
    %10 = vector.load %arg9[%c2, %c8_11, %c0_12] : memref<4x32x256xf32, #tpu.memory_space<vmem>>, vector<2x16x256xf32>
    tpu.vector_store %arg9[%c2, %c8_11, %c0_12], %9 {strides = array<i32>} : memref<4x32x256xf32, #tpu.memory_space<vmem>>, vector<2x16x256xf32>,
    %c0_i32 = arith.constant 0 : i32
    %c3_i32 = arith.constant 3 : i32
    %11 = arith.addi %c0_i32, %c3_i32 : i32
    %c1_i32 = arith.constant 1 : i32
    scf.for %arg10 = %c0_i32 to %11 step %c1_i32  : i32 {
      %c0_30 = arith.constant 0 : index
      %c4 = arith.constant 4 : index
      %c0_31 = arith.constant 0 : index
      %25 = vector.load %arg9[%c0_30, %c4, %c0_31] : memref<4x32x256xf32, #tpu.memory_space<vmem>>, vector<4x16x256xf32>
      %26 = vector.shape_cast %25 : vector<4x16x256xf32> to vector<64x256xf32>
      %27 = arith.truncf %26 : vector<64x256xf32> to vector<64x256xbf16>
      %c9_i32 = arith.constant 9 : i32
      %28 = arith.muli %arg10, %c9_i32 : i32
      %c0_i32_32 = arith.constant 0 : i32
      %29 = arith.addi %28, %c0_i32_32 : i32
      %30 = arith.index_cast %29 : i32 to index
      %c0_33 = arith.constant 0 : index
      %c0_34 = arith.constant 0 : index
      %31 = vector.load %arg2[%30, %c0_33, %c0_34] : memref<27x256x256xbf16, #tpu.memory_space<vmem>>, vector<1x256x256xbf16>
      %32 = vector.shape_cast %31 : vector<1x256x256xbf16> to vector<256x256xbf16>
      %cst_35 = arith.constant dense<0.000000e+00> : vector<64x256xf32>
      %33 = tpu.matmul %27, %32, %cst_35 {dimension_numbers = #tpu.dot_dimension_numbers<[1], [0], [0], [1], [0, 0, 1, 1], [], []>} : vector<64x256xbf16>, vector<256x256xbf16>, vector<64x256xf32> -> vector<64x256xf32>
      %c0_36 = arith.constant 0 : index
      %c5 = arith.constant 5 : index
      %c0_37 = arith.constant 0 : index
      %34 = vector.load %arg9[%c0_36, %c5, %c0_37] : memref<4x32x256xf32, #tpu.memory_space<vmem>>, vector<4x16x256xf32>
      %35 = vector.shape_cast %34 : vector<4x16x256xf32> to vector<64x256xf32>
      %36 = arith.truncf %35 : vector<64x256xf32> to vector<64x256xbf16>
      %c9_i32_38 = arith.constant 9 : i32
      %37 = arith.muli %arg10, %c9_i32_38 : i32
      %c1_i32_39 = arith.constant 1 : i32
      %38 = arith.addi %37, %c1_i32_39 : i32
      %39 = arith.index_cast %38 : i32 to index
      %c0_40 = arith.constant 0 : index
      %c0_41 = arith.constant 0 : index
      %40 = vector.load %arg2[%39, %c0_40, %c0_41] : memref<27x256x256xbf16, #tpu.memory_space<vmem>>, vector<1x256x256xbf16>
      %41 = vector.shape_cast %40 : vector<1x256x256xbf16> to vector<256x256xbf16>
      %cst_42 = arith.constant dense<0.000000e+00> : vector<64x256xf32>
      %42 = tpu.matmul %36, %41, %cst_42 {dimension_numbers = #tpu.dot_dimension_numbers<[1], [0], [0], [1], [0, 0, 1, 1], [], []>} : vector<64x256xbf16>, vector<256x256xbf16>, vector<64x256xf32> -> vector<64x256xf32>
      %43 = arith.addf %33, %42 : vector<64x256xf32>
      %c0_43 = arith.constant 0 : index
      %c6 = arith.constant 6 : index
      %c0_44 = arith.constant 0 : index
      %44 = vector.load %arg9[%c0_43, %c6, %c0_44] : memref<4x32x256xf32, #tpu.memory_space<vmem>>, vector<4x16x256xf32>
      %45 = vector.shape_cast %44 : vector<4x16x256xf32> to vector<64x256xf32>
      %46 = arith.truncf %45 : vector<64x256xf32> to vector<64x256xbf16>
      %c9_i32_45 = arith.constant 9 : i32
      %47 = arith.muli %arg10, %c9_i32_45 : i32
      %c2_i32 = arith.constant 2 : i32
      %48 = arith.addi %47, %c2_i32 : i32
      %49 = arith.index_cast %48 : i32 to index
      %c0_46 = arith.constant 0 : index
      %c0_47 = arith.constant 0 : index
      %50 = vector.load %arg2[%49, %c0_46, %c0_47] : memref<27x256x256xbf16, #tpu.memory_space<vmem>>, vector<1x256x256xbf16>
      %51 = vector.shape_cast %50 : vector<1x256x256xbf16> to vector<256x256xbf16>
      %cst_48 = arith.constant dense<0.000000e+00> : vector<64x256xf32>
      %52 = tpu.matmul %46, %51, %cst_48 {dimension_numbers = #tpu.dot_dimension_numbers<[1], [0], [0], [1], [0, 0, 1, 1], [], []>} : vector<64x256xbf16>, vector<256x256xbf16>, vector<64x256xf32> -> vector<64x256xf32>
      %53 = arith.addf %43, %52 : vector<64x256xf32>
      %c0_49 = arith.constant 0 : index
      %c7 = arith.constant 7 : index
      %c0_50 = arith.constant 0 : index
      %54 = vector.load %arg9[%c0_49, %c7, %c0_50] : memref<4x32x256xf32, #tpu.memory_space<vmem>>, vector<4x16x256xf32>
      %55 = vector.shape_cast %54 : vector<4x16x256xf32> to vector<64x256xf32>
      %56 = arith.truncf %55 : vector<64x256xf32> to vector<64x256xbf16>
      %c9_i32_51 = arith.constant 9 : i32
      %57 = arith.muli %arg10, %c9_i32_51 : i32
      %c3_i32_52 = arith.constant 3 : i32
      %58 = arith.addi %57, %c3_i32_52 : i32
      %59 = arith.index_cast %58 : i32 to index
      %c0_53 = arith.constant 0 : index
      %c0_54 = arith.constant 0 : index
      %60 = vector.load %arg2[%59, %c0_53, %c0_54] : memref<27x256x256xbf16, #tpu.memory_space<vmem>>, vector<1x256x256xbf16>
      %61 = vector.shape_cast %60 : vector<1x256x256xbf16> to vector<256x256xbf16>
      %cst_55 = arith.constant dense<0.000000e+00> : vector<64x256xf32>
      %62 = tpu.matmul %56, %61, %cst_55 {dimension_numbers = #tpu.dot_dimension_numbers<[1], [0], [0], [1], [0, 0, 1, 1], [], []>} : vector<64x256xbf16>, vector<256x256xbf16>, vector<64x256xf32> -> vector<64x256xf32>
      %63 = arith.addf %53, %62 : vector<64x256xf32>
      %c0_56 = arith.constant 0 : index
      %c8_57 = arith.constant 8 : index
      %c0_58 = arith.constant 0 : index
      %64 = vector.load %arg9[%c0_56, %c8_57, %c0_58] : memref<4x32x256xf32, #tpu.memory_space<vmem>>, vector<4x16x256xf32>
      %65 = vector.shape_cast %64 : vector<4x16x256xf32> to vector<64x256xf32>
      %66 = arith.truncf %65 : vector<64x256xf32> to vector<64x256xbf16>
      %c9_i32_59 = arith.constant 9 : i32
      %67 = arith.muli %arg10, %c9_i32_59 : i32
      %c4_i32_60 = arith.constant 4 : i32
      %68 = arith.addi %67, %c4_i32_60 : i32
      %69 = arith.index_cast %68 : i32 to index
      %c0_61 = arith.constant 0 : index
      %c0_62 = arith.constant 0 : index
      %70 = vector.load %arg2[%69, %c0_61, %c0_62] : memref<27x256x256xbf16, #tpu.memory_space<vmem>>, vector<1x256x256xbf16>
      %71 = vector.shape_cast %70 : vector<1x256x256xbf16> to vector<256x256xbf16>
      %cst_63 = arith.constant dense<0.000000e+00> : vector<64x256xf32>
      %72 = tpu.matmul %66, %71, %cst_63 {dimension_numbers = #tpu.dot_dimension_numbers<[1], [0], [0], [1], [0, 0, 1, 1], [], []>} : vector<64x256xbf16>, vector<256x256xbf16>, vector<64x256xf32> -> vector<64x256xf32>
      %73 = arith.addf %63, %72 : vector<64x256xf32>
      %c0_64 = arith.constant 0 : index
      %c9 = arith.constant 9 : index
      %c0_65 = arith.constant 0 : index
      %74 = vector.load %arg9[%c0_64, %c9, %c0_65] : memref<4x32x256xf32, #tpu.memory_space<vmem>>, vector<4x16x256xf32>
      %75 = vector.shape_cast %74 : vector<4x16x256xf32> to vector<64x256xf32>
      %76 = arith.truncf %75 : vector<64x256xf32> to vector<64x256xbf16>
      %c9_i32_66 = arith.constant 9 : i32
      %77 = arith.muli %arg10, %c9_i32_66 : i32
      %c5_i32 = arith.constant 5 : i32
      %78 = arith.addi %77, %c5_i32 : i32
      %79 = arith.index_cast %78 : i32 to index
      %c0_67 = arith.constant 0 : index
      %c0_68 = arith.constant 0 : index
      %80 = vector.load %arg2[%79, %c0_67, %c0_68] : memref<27x256x256xbf16, #tpu.memory_space<vmem>>, vector<1x256x256xbf16>
      %81 = vector.shape_cast %80 : vector<1x256x256xbf16> to vector<256x256xbf16>
      %cst_69 = arith.constant dense<0.000000e+00> : vector<64x256xf32>
      %82 = tpu.matmul %76, %81, %cst_69 {dimension_numbers = #tpu.dot_dimension_numbers<[1], [0], [0], [1], [0, 0, 1, 1], [], []>} : vector<64x256xbf16>, vector<256x256xbf16>, vector<64x256xf32> -> vector<64x256xf32>
      %83 = arith.addf %73, %82 : vector<64x256xf32>
      %c0_70 = arith.constant 0 : index
      %c10 = arith.constant 10 : index
      %c0_71 = arith.constant 0 : index
      %84 = vector.load %arg9[%c0_70, %c10, %c0_71] : memref<4x32x256xf32, #tpu.memory_space<vmem>>, vector<4x16x256xf32>
      %85 = vector.shape_cast %84 : vector<4x16x256xf32> to vector<64x256xf32>
      %86 = arith.truncf %85 : vector<64x256xf32> to vector<64x256xbf16>
      %c9_i32_72 = arith.constant 9 : i32
      %87 = arith.muli %arg10, %c9_i32_72 : i32
      %c6_i32 = arith.constant 6 : i32
      %88 = arith.addi %87, %c6_i32 : i32
      %89 = arith.index_cast %88 : i32 to index
      %c0_73 = arith.constant 0 : index
      %c0_74 = arith.constant 0 : index
      %90 = vector.load %arg2[%89, %c0_73, %c0_74] : memref<27x256x256xbf16, #tpu.memory_space<vmem>>, vector<1x256x256xbf16>
      %91 = vector.shape_cast %90 : vector<1x256x256xbf16> to vector<256x256xbf16>
      %cst_75 = arith.constant dense<0.000000e+00> : vector<64x256xf32>
      %92 = tpu.matmul %86, %91, %cst_75 {dimension_numbers = #tpu.dot_dimension_numbers<[1], [0], [0], [1], [0, 0, 1, 1], [], []>} : vector<64x256xbf16>, vector<256x256xbf16>, vector<64x256xf32> -> vector<64x256xf32>
      %93 = arith.addf %83, %92 : vector<64x256xf32>
      %c0_76 = arith.constant 0 : index
      %c11 = arith.constant 11 : index
      %c0_77 = arith.constant 0 : index
      %94 = vector.load %arg9[%c0_76, %c11, %c0_77] : memref<4x32x256xf32, #tpu.memory_space<vmem>>, vector<4x16x256xf32>
      %95 = vector.shape_cast %94 : vector<4x16x256xf32> to vector<64x256xf32>
      %96 = arith.truncf %95 : vector<64x256xf32> to vector<64x256xbf16>
      %c9_i32_78 = arith.constant 9 : i32
      %97 = arith.muli %arg10, %c9_i32_78 : i32
      %c7_i32 = arith.constant 7 : i32
      %98 = arith.addi %97, %c7_i32 : i32
      %99 = arith.index_cast %98 : i32 to index
      %c0_79 = arith.constant 0 : index
      %c0_80 = arith.constant 0 : index
      %100 = vector.load %arg2[%99, %c0_79, %c0_80] : memref<27x256x256xbf16, #tpu.memory_space<vmem>>, vector<1x256x256xbf16>
      %101 = vector.shape_cast %100 : vector<1x256x256xbf16> to vector<256x256xbf16>
      %cst_81 = arith.constant dense<0.000000e+00> : vector<64x256xf32>
      %102 = tpu.matmul %96, %101, %cst_81 {dimension_numbers = #tpu.dot_dimension_numbers<[1], [0], [0], [1], [0, 0, 1, 1], [], []>} : vector<64x256xbf16>, vector<256x256xbf16>, vector<64x256xf32> -> vector<64x256xf32>
      %103 = arith.addf %93, %102 : vector<64x256xf32>
      %c0_82 = arith.constant 0 : index
      %c12 = arith.constant 12 : index
      %c0_83 = arith.constant 0 : index
      %104 = vector.load %arg9[%c0_82, %c12, %c0_83] : memref<4x32x256xf32, #tpu.memory_space<vmem>>, vector<4x16x256xf32>
      %105 = vector.shape_cast %104 : vector<4x16x256xf32> to vector<64x256xf32>
      %106 = arith.truncf %105 : vector<64x256xf32> to vector<64x256xbf16>
      %c9_i32_84 = arith.constant 9 : i32
      %107 = arith.muli %arg10, %c9_i32_84 : i32
      %c8_i32 = arith.constant 8 : i32
      %108 = arith.addi %107, %c8_i32 : i32
      %109 = arith.index_cast %108 : i32 to index
      %c0_85 = arith.constant 0 : index
      %c0_86 = arith.constant 0 : index
      %110 = vector.load %arg2[%109, %c0_85, %c0_86] : memref<27x256x256xbf16, #tpu.memory_space<vmem>>, vector<1x256x256xbf16>
      %111 = vector.shape_cast %110 : vector<1x256x256xbf16> to vector<256x256xbf16>
      %cst_87 = arith.constant dense<0.000000e+00> : vector<64x256xf32>
      %112 = tpu.matmul %106, %111, %cst_87 {dimension_numbers = #tpu.dot_dimension_numbers<[1], [0], [0], [1], [0, 0, 1, 1], [], []>} : vector<64x256xbf16>, vector<256x256xbf16>, vector<64x256xf32> -> vector<64x256xf32>
      %113 = arith.addf %103, %112 : vector<64x256xf32>
      %114 = arith.index_cast %arg10 : i32 to index
      %c0_88 = arith.constant 0 : index
      %c0_89 = arith.constant 0 : index
      %115 = vector.load %arg3[%114, %c0_88, %c0_89] : memref<3x1x256xf32, #tpu.memory_space<vmem>>, vector<1x1x256xf32>
      %116 = vector.shape_cast %115 : vector<1x1x256xf32> to vector<1x256xf32>
      %117 = vector.broadcast %116 : vector<1x256xf32> to vector<64x256xf32>
      %118 = arith.addf %113, %117 : vector<64x256xf32>
      %cst_90 = arith.constant 0.000000e+00 : f32
      %119 = vector.broadcast %cst_90 : f32 to vector<64x256xf32>
      %120 = arith.maximumf %118, %119 : vector<64x256xf32>
      %121 = vector.shape_cast %120 : vector<64x256xf32> to vector<4x16x256xf32>
      %c0_91 = arith.constant 0 : index
      %c8_92 = arith.constant 8 : index
      %c0_93 = arith.constant 0 : index
      %122 = vector.load %arg9[%c0_91, %c8_92, %c0_93] : memref<4x32x256xf32, #tpu.memory_space<vmem>>, vector<4x16x256xf32>
      tpu.vector_store %arg9[%c0_91, %c8_92, %c0_93], %121 {strides = array<i32>} : memref<4x32x256xf32, #tpu.memory_space<vmem>>, vector<4x16x256xf32>,
    }
    %c3_i32_13 = arith.constant 3 : i32
    %c0_14 = arith.constant 0 : index
    %c8_15 = arith.constant 8 : index
    %c0_16 = arith.constant 0 : index
    %12 = vector.load %arg9[%c0_14, %c8_15, %c0_16] : memref<4x32x256xf32, #tpu.memory_space<vmem>>, vector<2x16x256xf32>
    %13 = vector.shape_cast %12 : vector<2x16x256xf32> to vector<32x256xf32>
    %c2_17 = arith.constant 2 : index
    %c8_18 = arith.constant 8 : index
    %c0_19 = arith.constant 0 : index
    %14 = vector.load %arg9[%c2_17, %c8_18, %c0_19] : memref<4x32x256xf32, #tpu.memory_space<vmem>>, vector<2x16x256xf32>
    %15 = vector.shape_cast %14 : vector<2x16x256xf32> to vector<32x256xf32>
    %c0_i32_20 = arith.constant 0 : i32
    %c4_i32 = arith.constant 4 : i32
    %16 = arith.addi %c0_i32_20, %c4_i32 : i32
    %c1_i32_21 = arith.constant 1 : i32
    %17:2 = scf.for %arg10 = %c0_i32_20 to %16 step %c1_i32_21 iter_args(%arg11 = %13, %arg12 = %15) -> (vector<32x256xf32>, vector<32x256xf32>)  : i32 {
      %25 = arith.index_cast %arg10 : i32 to index
      %c0_30 = arith.constant 0 : index
      %c0_31 = arith.constant 0 : index
      %26 = vector.load %arg5[%25, %c0_30, %c0_31] : memref<4x16x256xf32, #tpu.memory_space<vmem>>, vector<1x16x256xf32>
      %27 = vector.shape_cast %26 : vector<1x16x256xf32> to vector<16x256xf32>
      %28 = arith.subf %arg11, %arg12 : vector<32x256xf32>
      %29 = vector.extract_strided_slice %27 {offsets = [0, 0], sizes = [1, 256], strides = [1, 1]} : vector<16x256xf32> to vector<1x256xf32>
      %30 = vector.extract_strided_slice %27 {offsets = [1, 0], sizes = [1, 256], strides = [1, 1]} : vector<16x256xf32> to vector<1x256xf32>
      %cst_32 = arith.constant dense<0.000000e+00> : vector<256xf32>
      %31 = vector.multi_reduction <add>, %28, %cst_32 [0] : vector<32x256xf32> to vector<256xf32>
      %32 = vector.shape_cast %31 : vector<256xf32> to vector<1x256xf32>
      %33 = arith.mulf %28, %28 : vector<32x256xf32>
      %cst_33 = arith.constant dense<0.000000e+00> : vector<256xf32>
      %34 = vector.multi_reduction <add>, %33, %cst_33 [0] : vector<32x256xf32> to vector<256xf32>
      %35 = vector.shape_cast %34 : vector<256xf32> to vector<1x256xf32>
      %36 = tpu.concatenate %32, %35 in 0 : vector<1x256xf32>, vector<1x256xf32> -> vector<2x256xf32>
      %c0_34 = arith.constant 0 : index
      %c0_35 = arith.constant 0 : index
      %37 = vector.load %arg1[%c0_34, %c0_35] : memref<256x256xf32, #tpu.memory_space<vmem>>, vector<256x256xf32>
      %cst_36 = arith.constant dense<0.000000e+00> : vector<2x256xf32>
      %38 = tpu.matmul %36, %37, %cst_36 {dimension_numbers = #tpu.dot_dimension_numbers<[1], [0], [0], [1], [0, 0, 1, 1], [], []>} : vector<2x256xf32>, vector<256x256xf32>, vector<2x256xf32> -> vector<2x256xf32>
      %cst_37 = arith.constant 0.001953125 : f32
      %39 = vector.broadcast %cst_37 : f32 to vector<2x256xf32>
      %40 = arith.mulf %38, %39 : vector<2x256xf32>
      %41 = vector.extract_strided_slice %40 {offsets = [0, 0], sizes = [1, 256], strides = [1, 1]} : vector<2x256xf32> to vector<1x256xf32>
      %42 = vector.extract_strided_slice %40 {offsets = [1, 0], sizes = [1, 256], strides = [1, 1]} : vector<2x256xf32> to vector<1x256xf32>
      %43 = arith.mulf %41, %41 : vector<1x256xf32>
      %44 = arith.subf %42, %43 : vector<1x256xf32>
      %45 = vector.broadcast %41 : vector<1x256xf32> to vector<32x256xf32>
      %46 = arith.subf %28, %45 : vector<32x256xf32>
      %cst_38 = arith.constant 9.99999974E-6 : f32
      %47 = vector.broadcast %cst_38 : f32 to vector<1x256xf32>
      %48 = arith.addf %44, %47 : vector<1x256xf32>
      %49 = math.rsqrt %48 : vector<1x256xf32>
      %50 = vector.broadcast %49 : vector<1x256xf32> to vector<32x256xf32>
      %51 = arith.mulf %46, %50 : vector<32x256xf32>
      %52 = vector.broadcast %29 : vector<1x256xf32> to vector<32x256xf32>
      %53 = arith.mulf %51, %52 : vector<32x256xf32>
      %54 = vector.broadcast %30 : vector<1x256xf32> to vector<32x256xf32>
      %55 = arith.addf %53, %54 : vector<32x256xf32>
      %56 = math.tanh %55 : vector<32x256xf32>
      %c2_i32 = arith.constant 2 : i32
      %57 = arith.muli %arg10, %c2_i32 : i32
      %c3_i32_39 = arith.constant 3 : i32
      %58 = arith.muli %57, %c3_i32_39 : i32
      %59 = vector.shape_cast %56 : vector<32x256xf32> to vector<2x16x256xf32>
      %c0_40 = arith.constant 0 : index
      %c8_41 = arith.constant 8 : index
      %c0_42 = arith.constant 0 : index
      %60 = vector.load %arg9[%c0_40, %c8_41, %c0_42] : memref<4x32x256xf32, #tpu.memory_space<vmem>>, vector<2x16x256xf32>
      tpu.vector_store %arg9[%c0_40, %c8_41, %c0_42], %59 {strides = array<i32>} : memref<4x32x256xf32, #tpu.memory_space<vmem>>, vector<2x16x256xf32>,
      %c0_43 = arith.constant 0 : index
      %c7 = arith.constant 7 : index
      %c0_44 = arith.constant 0 : index
      %61 = vector.load %arg9[%c0_43, %c7, %c0_44] : memref<4x32x256xf32, #tpu.memory_space<vmem>>, vector<2x16x256xf32>
      %62 = vector.shape_cast %61 : vector<2x16x256xf32> to vector<32x256xf32>
      %63 = arith.truncf %62 : vector<32x256xf32> to vector<32x256xbf16>
      %c0_i32_45 = arith.constant 0 : i32
      %64 = arith.addi %58, %c0_i32_45 : i32
      %65 = arith.index_cast %64 : i32 to index
      %c0_46 = arith.constant 0 : index
      %c0_47 = arith.constant 0 : index
      %66 = vector.load %arg4[%65, %c0_46, %c0_47] : memref<24x256x256xbf16, #tpu.memory_space<vmem>>, vector<1x256x256xbf16>
      %67 = vector.shape_cast %66 : vector<1x256x256xbf16> to vector<256x256xbf16>
      %cst_48 = arith.constant dense<0.000000e+00> : vector<32x256xf32>
      %68 = tpu.matmul %63, %67, %cst_48 {dimension_numbers = #tpu.dot_dimension_numbers<[1], [0], [0], [1], [0, 0, 1, 1], [], []>} : vector<32x256xbf16>, vector<256x256xbf16>, vector<32x256xf32> -> vector<32x256xf32>
      %c0_49 = arith.constant 0 : index
      %c8_50 = arith.constant 8 : index
      %c0_51 = arith.constant 0 : index
      %69 = vector.load %arg9[%c0_49, %c8_50, %c0_51] : memref<4x32x256xf32, #tpu.memory_space<vmem>>, vector<2x16x256xf32>
      %70 = vector.shape_cast %69 : vector<2x16x256xf32> to vector<32x256xf32>
      %71 = arith.truncf %70 : vector<32x256xf32> to vector<32x256xbf16>
      %c1_i32_52 = arith.constant 1 : i32
      %72 = arith.addi %58, %c1_i32_52 : i32
      %73 = arith.index_cast %72 : i32 to index
      %c0_53 = arith.constant 0 : index
      %c0_54 = arith.constant 0 : index
      %74 = vector.load %arg4[%73, %c0_53, %c0_54] : memref<24x256x256xbf16, #tpu.memory_space<vmem>>, vector<1x256x256xbf16>
      %75 = vector.shape_cast %74 : vector<1x256x256xbf16> to vector<256x256xbf16>
      %cst_55 = arith.constant dense<0.000000e+00> : vector<32x256xf32>
      %76 = tpu.matmul %71, %75, %cst_55 {dimension_numbers = #tpu.dot_dimension_numbers<[1], [0], [0], [1], [0, 0, 1, 1], [], []>} : vector<32x256xbf16>, vector<256x256xbf16>, vector<32x256xf32> -> vector<32x256xf32>
      %77 = arith.addf %68, %76 : vector<32x256xf32>
      %c0_56 = arith.constant 0 : index
      %c9 = arith.constant 9 : index
      %c0_57 = arith.constant 0 : index
      %78 = vector.load %arg9[%c0_56, %c9, %c0_57] : memref<4x32x256xf32, #tpu.memory_space<vmem>>, vector<2x16x256xf32>
      %79 = vector.shape_cast %78 : vector<2x16x256xf32> to vector<32x256xf32>
      %80 = arith.truncf %79 : vector<32x256xf32> to vector<32x256xbf16>
      %c2_i32_58 = arith.constant 2 : i32
      %81 = arith.addi %58, %c2_i32_58 : i32
      %82 = arith.index_cast %81 : i32 to index
      %c0_59 = arith.constant 0 : index
      %c0_60 = arith.constant 0 : index
      %83 = vector.load %arg4[%82, %c0_59, %c0_60] : memref<24x256x256xbf16, #tpu.memory_space<vmem>>, vector<1x256x256xbf16>
      %84 = vector.shape_cast %83 : vector<1x256x256xbf16> to vector<256x256xbf16>
      %cst_61 = arith.constant dense<0.000000e+00> : vector<32x256xf32>
      %85 = tpu.matmul %80, %84, %cst_61 {dimension_numbers = #tpu.dot_dimension_numbers<[1], [0], [0], [1], [0, 0, 1, 1], [], []>} : vector<32x256xbf16>, vector<256x256xbf16>, vector<32x256xf32> -> vector<32x256xf32>
      %86 = arith.addf %77, %85 : vector<32x256xf32>
      %87 = vector.extract_strided_slice %27 {offsets = [2, 0], sizes = [1, 256], strides = [1, 1]} : vector<16x256xf32> to vector<1x256xf32>
      %88 = vector.extract_strided_slice %27 {offsets = [3, 0], sizes = [1, 256], strides = [1, 1]} : vector<16x256xf32> to vector<1x256xf32>
      %cst_62 = arith.constant dense<0.000000e+00> : vector<256xf32>
      %89 = vector.multi_reduction <add>, %86, %cst_62 [0] : vector<32x256xf32> to vector<256xf32>
      %90 = vector.shape_cast %89 : vector<256xf32> to vector<1x256xf32>
      %91 = arith.mulf %86, %86 : vector<32x256xf32>
      %cst_63 = arith.constant dense<0.000000e+00> : vector<256xf32>
      %92 = vector.multi_reduction <add>, %91, %cst_63 [0] : vector<32x256xf32> to vector<256xf32>
      %93 = vector.shape_cast %92 : vector<256xf32> to vector<1x256xf32>
      %94 = tpu.concatenate %90, %93 in 0 : vector<1x256xf32>, vector<1x256xf32> -> vector<2x256xf32>
      %c0_64 = arith.constant 0 : index
      %c0_65 = arith.constant 0 : index
      %95 = vector.load %arg1[%c0_64, %c0_65] : memref<256x256xf32, #tpu.memory_space<vmem>>, vector<256x256xf32>
      %cst_66 = arith.constant dense<0.000000e+00> : vector<2x256xf32>
      %96 = tpu.matmul %94, %95, %cst_66 {dimension_numbers = #tpu.dot_dimension_numbers<[1], [0], [0], [1], [0, 0, 1, 1], [], []>} : vector<2x256xf32>, vector<256x256xf32>, vector<2x256xf32> -> vector<2x256xf32>
      %cst_67 = arith.constant 0.001953125 : f32
      %97 = vector.broadcast %cst_67 : f32 to vector<2x256xf32>
      %98 = arith.mulf %96, %97 : vector<2x256xf32>
      %99 = vector.extract_strided_slice %98 {offsets = [0, 0], sizes = [1, 256], strides = [1, 1]} : vector<2x256xf32> to vector<1x256xf32>
      %100 = vector.extract_strided_slice %98 {offsets = [1, 0], sizes = [1, 256], strides = [1, 1]} : vector<2x256xf32> to vector<1x256xf32>
      %101 = arith.mulf %99, %99 : vector<1x256xf32>
      %102 = arith.subf %100, %101 : vector<1x256xf32>
      %103 = vector.broadcast %99 : vector<1x256xf32> to vector<32x256xf32>
      %104 = arith.subf %86, %103 : vector<32x256xf32>
      %cst_68 = arith.constant 9.99999974E-6 : f32
      %105 = vector.broadcast %cst_68 : f32 to vector<1x256xf32>
      %106 = arith.addf %102, %105 : vector<1x256xf32>
      %107 = math.rsqrt %106 : vector<1x256xf32>
      %108 = vector.broadcast %107 : vector<1x256xf32> to vector<32x256xf32>
      %109 = arith.mulf %104, %108 : vector<32x256xf32>
      %110 = vector.broadcast %87 : vector<1x256xf32> to vector<32x256xf32>
      %111 = arith.mulf %109, %110 : vector<32x256xf32>
      %112 = vector.broadcast %88 : vector<1x256xf32> to vector<32x256xf32>
      %113 = arith.addf %111, %112 : vector<32x256xf32>
      %114 = math.tanh %113 : vector<32x256xf32>
      %c2_i32_69 = arith.constant 2 : i32
      %115 = arith.muli %arg10, %c2_i32_69 : i32
      %c3_i32_70 = arith.constant 3 : i32
      %116 = arith.muli %115, %c3_i32_70 : i32
      %c3_i32_71 = arith.constant 3 : i32
      %117 = arith.addi %116, %c3_i32_71 : i32
      %118 = vector.shape_cast %114 : vector<32x256xf32> to vector<2x16x256xf32>
      %c0_72 = arith.constant 0 : index
      %c8_73 = arith.constant 8 : index
      %c0_74 = arith.constant 0 : index
      %119 = vector.load %arg9[%c0_72, %c8_73, %c0_74] : memref<4x32x256xf32, #tpu.memory_space<vmem>>, vector<2x16x256xf32>
      tpu.vector_store %arg9[%c0_72, %c8_73, %c0_74], %118 {strides = array<i32>} : memref<4x32x256xf32, #tpu.memory_space<vmem>>, vector<2x16x256xf32>,
      %c0_75 = arith.constant 0 : index
      %c7_76 = arith.constant 7 : index
      %c0_77 = arith.constant 0 : index
      %120 = vector.load %arg9[%c0_75, %c7_76, %c0_77] : memref<4x32x256xf32, #tpu.memory_space<vmem>>, vector<2x16x256xf32>
      %121 = vector.shape_cast %120 : vector<2x16x256xf32> to vector<32x256xf32>
      %122 = arith.truncf %121 : vector<32x256xf32> to vector<32x256xbf16>
      %c0_i32_78 = arith.constant 0 : i32
      %123 = arith.addi %117, %c0_i32_78 : i32
      %124 = arith.index_cast %123 : i32 to index
      %c0_79 = arith.constant 0 : index
      %c0_80 = arith.constant 0 : index
      %125 = vector.load %arg4[%124, %c0_79, %c0_80] : memref<24x256x256xbf16, #tpu.memory_space<vmem>>, vector<1x256x256xbf16>
      %126 = vector.shape_cast %125 : vector<1x256x256xbf16> to vector<256x256xbf16>
      %cst_81 = arith.constant dense<0.000000e+00> : vector<32x256xf32>
      %127 = tpu.matmul %122, %126, %cst_81 {dimension_numbers = #tpu.dot_dimension_numbers<[1], [0], [0], [1], [0, 0, 1, 1], [], []>} : vector<32x256xbf16>, vector<256x256xbf16>, vector<32x256xf32> -> vector<32x256xf32>
      %c0_82 = arith.constant 0 : index
      %c8_83 = arith.constant 8 : index
      %c0_84 = arith.constant 0 : index
      %128 = vector.load %arg9[%c0_82, %c8_83, %c0_84] : memref<4x32x256xf32, #tpu.memory_space<vmem>>, vector<2x16x256xf32>
      %129 = vector.shape_cast %128 : vector<2x16x256xf32> to vector<32x256xf32>
      %130 = arith.truncf %129 : vector<32x256xf32> to vector<32x256xbf16>
      %c1_i32_85 = arith.constant 1 : i32
      %131 = arith.addi %117, %c1_i32_85 : i32
      %132 = arith.index_cast %131 : i32 to index
      %c0_86 = arith.constant 0 : index
      %c0_87 = arith.constant 0 : index
      %133 = vector.load %arg4[%132, %c0_86, %c0_87] : memref<24x256x256xbf16, #tpu.memory_space<vmem>>, vector<1x256x256xbf16>
      %134 = vector.shape_cast %133 : vector<1x256x256xbf16> to vector<256x256xbf16>
      %cst_88 = arith.constant dense<0.000000e+00> : vector<32x256xf32>
      %135 = tpu.matmul %130, %134, %cst_88 {dimension_numbers = #tpu.dot_dimension_numbers<[1], [0], [0], [1], [0, 0, 1, 1], [], []>} : vector<32x256xbf16>, vector<256x256xbf16>, vector<32x256xf32> -> vector<32x256xf32>
      %136 = arith.addf %127, %135 : vector<32x256xf32>
      %c0_89 = arith.constant 0 : index
      %c9_90 = arith.constant 9 : index
      %c0_91 = arith.constant 0 : index
      %137 = vector.load %arg9[%c0_89, %c9_90, %c0_91] : memref<4x32x256xf32, #tpu.memory_space<vmem>>, vector<2x16x256xf32>
      %138 = vector.shape_cast %137 : vector<2x16x256xf32> to vector<32x256xf32>
      %139 = arith.truncf %138 : vector<32x256xf32> to vector<32x256xbf16>
      %c2_i32_92 = arith.constant 2 : i32
      %140 = arith.addi %117, %c2_i32_92 : i32
      %141 = arith.index_cast %140 : i32 to index
      %c0_93 = arith.constant 0 : index
      %c0_94 = arith.constant 0 : index
      %142 = vector.load %arg4[%141, %c0_93, %c0_94] : memref<24x256x256xbf16, #tpu.memory_space<vmem>>, vector<1x256x256xbf16>
      %143 = vector.shape_cast %142 : vector<1x256x256xbf16> to vector<256x256xbf16>
      %cst_95 = arith.constant dense<0.000000e+00> : vector<32x256xf32>
      %144 = tpu.matmul %139, %143, %cst_95 {dimension_numbers = #tpu.dot_dimension_numbers<[1], [0], [0], [1], [0, 0, 1, 1], [], []>} : vector<32x256xbf16>, vector<256x256xbf16>, vector<32x256xf32> -> vector<32x256xf32>
      %145 = arith.addf %136, %144 : vector<32x256xf32>
      %146 = vector.extract_strided_slice %27 {offsets = [4, 0], sizes = [1, 256], strides = [1, 1]} : vector<16x256xf32> to vector<1x256xf32>
      %147 = vector.broadcast %146 : vector<1x256xf32> to vector<32x256xf32>
      %148 = arith.addf %145, %147 : vector<32x256xf32>
      %149 = vector.shape_cast %148 : vector<32x256xf32> to vector<2x16x256xf32>
      %c0_96 = arith.constant 0 : index
      %c8_97 = arith.constant 8 : index
      %c0_98 = arith.constant 0 : index
      %150 = vector.load %arg9[%c0_96, %c8_97, %c0_98] : memref<4x32x256xf32, #tpu.memory_space<vmem>>, vector<2x16x256xf32>
      tpu.vector_store %arg9[%c0_96, %c8_97, %c0_98], %149 {strides = array<i32>} : memref<4x32x256xf32, #tpu.memory_space<vmem>>, vector<2x16x256xf32>,
      %c0_99 = arith.constant 0 : index
      %c7_100 = arith.constant 7 : index
      %c0_101 = arith.constant 0 : index
      %151 = vector.load %arg9[%c0_99, %c7_100, %c0_101] : memref<4x32x256xf32, #tpu.memory_space<vmem>>, vector<2x16x256xf32>
      %152 = vector.shape_cast %151 : vector<2x16x256xf32> to vector<32x256xf32>
      %153 = vector.extract_strided_slice %27 {offsets = [5, 0], sizes = [1, 256], strides = [1, 1]} : vector<16x256xf32> to vector<1x256xf32>
      %154 = vector.broadcast %153 : vector<1x256xf32> to vector<32x256xf32>
      %155 = arith.mulf %152, %154 : vector<32x256xf32>
      %c0_102 = arith.constant 0 : index
      %c8_103 = arith.constant 8 : index
      %c0_104 = arith.constant 0 : index
      %156 = vector.load %arg9[%c0_102, %c8_103, %c0_104] : memref<4x32x256xf32, #tpu.memory_space<vmem>>, vector<2x16x256xf32>
      %157 = vector.shape_cast %156 : vector<2x16x256xf32> to vector<32x256xf32>
      %158 = vector.extract_strided_slice %27 {offsets = [6, 0], sizes = [1, 256], strides = [1, 1]} : vector<16x256xf32> to vector<1x256xf32>
      %159 = vector.broadcast %158 : vector<1x256xf32> to vector<32x256xf32>
      %160 = arith.mulf %157, %159 : vector<32x256xf32>
      %161 = arith.addf %155, %160 : vector<32x256xf32>
      %c0_105 = arith.constant 0 : index
      %c9_106 = arith.constant 9 : index
      %c0_107 = arith.constant 0 : index
      %162 = vector.load %arg9[%c0_105, %c9_106, %c0_107] : memref<4x32x256xf32, #tpu.memory_space<vmem>>, vector<2x16x256xf32>
      %163 = vector.shape_cast %162 : vector<2x16x256xf32> to vector<32x256xf32>
      %164 = vector.extract_strided_slice %27 {offsets = [7, 0], sizes = [1, 256], strides = [1, 1]} : vector<16x256xf32> to vector<1x256xf32>
      %165 = vector.broadcast %164 : vector<1x256xf32> to vector<32x256xf32>
      %166 = arith.mulf %163, %165 : vector<32x256xf32>
      %167 = arith.addf %161, %166 : vector<32x256xf32>
      %cst_108 = arith.constant dense<0.000000e+00> : vector<32xf32>
      %168 = vector.multi_reduction <add>, %167, %cst_108 [1] : vector<32x256xf32> to vector<32xf32>
      %169 = vector.shape_cast %168 : vector<32xf32> to vector<32x1xf32>
      %170 = vector.broadcast %169 : vector<32x1xf32> to vector<32x256xf32>
      %171 = arith.addf %arg12, %170 : vector<32x256xf32>
      %172 = vector.extract_strided_slice %27 {offsets = [8, 0], sizes = [1, 256], strides = [1, 1]} : vector<16x256xf32> to vector<1x256xf32>
      %173 = vector.broadcast %172 : vector<1x256xf32> to vector<32x256xf32>
      %174 = arith.addf %171, %173 : vector<32x256xf32>
      scf.yield %148, %174 : vector<32x256xf32>, vector<32x256xf32>
    }
    %c4_i32_22 = arith.constant 4 : i32
    %18 = arith.truncf %17#0 : vector<32x256xf32> to vector<32x256xbf16>
    %c0_23 = arith.constant 0 : index
    %c0_24 = arith.constant 0 : index
    %19 = vector.load %arg6[%c0_23, %c0_24] : memref<256x128xbf16, #tpu.memory_space<vmem>>, vector<256x128xbf16>
    %cst_25 = arith.constant dense<0.000000e+00> : vector<32x128xf32>
    %20 = tpu.matmul %18, %19, %cst_25 {dimension_numbers = #tpu.dot_dimension_numbers<[1], [0], [0], [1], [0, 0, 1, 1], [], []>} : vector<32x256xbf16>, vector<256x128xbf16>, vector<32x128xf32> -> vector<32x128xf32>
    %c0_26 = arith.constant 0 : index
    %c0_27 = arith.constant 0 : index
    %21 = vector.load %arg7[%c0_26, %c0_27] : memref<1x128xf32, #tpu.memory_space<vmem>>, vector<1x128xf32>
    %22 = vector.broadcast %21 : vector<1x128xf32> to vector<32x128xf32>
    %23 = arith.addf %20, %22 : vector<32x128xf32>
    %c0_28 = arith.constant 0 : index
    %c0_29 = arith.constant 0 : index
    %24 = vector.load %arg8[%c0_28, %c0_29] : memref<32x128xf32, #tpu.memory_space<vmem>>, vector<32x128xf32>
    tpu.vector_store %arg8[%c0_28, %c0_29], %23 {strides = array<i32>} : memref<32x128xf32, #tpu.memory_space<vmem>>, vector<32x128xf32>,
    return
  }
}

</mosaic_0001>

<bundles_post_ra>
// kernel: rescnn2d_forward.1
= control target key start
LH: loop header
LB: loop body
LE: loop exit
PB: predicated region body
PF: predicated region fallthrough
CT: control target
= control target key end

     0   :  { %13 = vsyncpa [#allocation4], 0  ;;  %s10935_s0 = inlined_call_operand.vmem [shape: f32[2,16,256], index: 0, kind: input, shape index: {}]   ;;  %s10936_s1 = inlined_call_operand.hbm [shape: f32[256,256], index: 1, kind: input, shape index: {}]   ;;  %s10937_s2 = inlined_call_operand.hbm [shape: bf16[27,256,256], index: 2, kind: input, shape index: {}]   ;;  %s10938_s3 = inlined_call_operand.hbm [shape: f32[3,1,256], index: 3, kind: input, shape index: {}]   ;;  %s10939_s4 = inlined_call_operand.hbm [shape: bf16[24,256,256], index: 4, kind: input, shape index: {}]   ;;  %s10940_s5 = inlined_call_operand.hbm [shape: f32[4,16,256], index: 5, kind: input, shape index: {}]   ;;  %s10941_s6 = inlined_call_operand.hbm [shape: bf16[256,128], index: 6, kind: input, shape index: {}]   ;;  %s10942_s7 = inlined_call_operand.hbm [shape: f32[1,128], index: 7, kind: input, shape index: {}]   ;;  %s10943_s8 = inlined_call_operand.hbm [shape: f32[32,128], index: 8, kind: output, shape index: {}]  }
   0x1   :  { %14 = vsyncpa [#allocation7], 0 }
   0x2   :  { %15 = vsyncpa [#allocation10], 0 }
   0x3   :  { %16 = vsyncpa [#allocation13], 0 }
   0x4   :  { %17 = vsyncpa [#allocation5], 0  ;;  %s9368_s27 = smov [#allocation6]   ;;  %s9038_s9 = scalar_lea.hbm %s10937_s2, 110592 }
   0x5   :  { %s37_s28 = sshll.u32 %s9368_s27, 4  ;;  %p9039_p0 = scmp.ne.s32.totalorder %s10937_s2, %s9038_s9  ;;  %s38_s28 = int_to_ptr.vmem [resolvable:$true] %s37_s28 }
   0x6   :  { %p9042_p1 = scmp.lt.u32.totalorder %s9038_s9, %s10937_s2 }
   0x8   :  { %p9044_p2 = pnand %p9042_p1, %p9039_p0 }
   0xa   :  { %9047 = shalt.err (!%p9044_p2)
}
   0xb   :  { %s9048_s14 = scalar_lea.vmem %s38_s28, 110592  ;;  %p9053_p4 = scmp.lt.s32.totalorder %s38_s28, %s38_s28 }
   0xc   :  { %p9049_p3 = scmp.ne.s32.totalorder %s38_s28, %s9048_s14  ;;  %p9054_p5 = scmp.lt.s32.totalorder %s9048_s14, %s9048_s14 }
   0xe   :  { %p9055_p6 = por %p9054_p5, %p9053_p4 }
  0x10   :  { %p9056_p7 = pnand %p9055_p6, %p9049_p3 }
  0x12   :  { %9059 = shalt.err (!%p9056_p7)
}
  0x13   :  { %s9369_s15 = smov 128   ;;  %s9370_s16 = smov 8  }
  0x14   :  { %43 = dma.hbm_to_vmem [thread:$0]  %s10937_s2, 110592, %s38_s28, [#allocation7], %s9369_s15, %s9369_s15, %s9370_s16  }
  0x15   :  { %s9371_s19 = smov [#allocation9]   ;;  %s9372_s21 = smov [#allocation12]  }
  0x16   :  { %s61_s20 = sshll.u32 %s9371_s19, 4  ;;  %s85_s22 = sshll.u32 %s9372_s21, 4  ;;  %s62_s20 = int_to_ptr.vmem [resolvable:$true] %s61_s20  ;;  %s86_s22 = int_to_ptr.vmem [resolvable:$true] %s85_s22 }
  0x17   :  { %s9060_s25 = scalar_lea.hbm %s10939_s4, 98304 }
  0x18   :  { %p9061_p8 = scmp.ne.s32.totalorder %s10939_s4, %s9060_s25  ;;  %p9064_p9 = scmp.lt.u32.totalorder %s9060_s25, %s10939_s4 }
  0x1a   :  { %p9066_p10 = pnand %p9064_p9, %p9061_p8 }
  0x1c   :  { %9069 = shalt.err (!%p9066_p10)
}
  0x1d   :  { %s9070_s2 = scalar_lea.vmem %s62_s20, 98304  ;;  %p9075_p12 = scmp.lt.s32.totalorder %s62_s20, %s62_s20 }
  0x1e   :  { %p9071_p11 = scmp.ne.s32.totalorder %s62_s20, %s9070_s2  ;;  %p9076_p13 = scmp.lt.s32.totalorder %s9070_s2, %s9070_s2 }
  0x20   :  { %p9077_p0 = por %p9076_p13, %p9075_p12 }
  0x22   :  { %p9078_p1 = pnand %p9077_p0, %p9071_p11 }
  0x24   :  { %9081 = shalt.err (!%p9078_p1)
}
  0x25   :  { %67 = dma.hbm_to_vmem [thread:$0]  %s10939_s4, 98304, %s62_s20, [#allocation10], %s9369_s15, %s9369_s15, %s9370_s16  }
  0x26   :  { %s9082_s12 = scalar_lea.hbm %s10941_s6, 2048 }
  0x27   :  { %p9083_p2 = scmp.ne.s32.totalorder %s10941_s6, %s9082_s12  ;;  %p9086_p3 = scmp.lt.u32.totalorder %s9082_s12, %s10941_s6 }
  0x29   :  { %p9088_p4 = pnand %p9086_p3, %p9083_p2 }
  0x2b   :  { %9091 = shalt.err (!%p9088_p4)
}
  0x2c   :  { %s9092_s19 = scalar_lea.vmem %s86_s22, 2048  ;;  %p9097_p6 = scmp.lt.s32.totalorder %s86_s22, %s86_s22 }
  0x2d   :  { %p9093_p5 = scmp.ne.s32.totalorder %s86_s22, %s9092_s19  ;;  %p9098_p7 = scmp.lt.s32.totalorder %s9092_s19, %s9092_s19 }
  0x2f   :  { %p9099_p8 = por %p9098_p7, %p9097_p6 }
  0x31   :  { %p9100_p9 = pnand %p9099_p8, %p9093_p5 }
  0x33   :  { %9103 = shalt.err (!%p9100_p9)
}
  0x34   :  { %s9373_s4 = smov 64   ;;  %s9374_s20 = smov 4  }
  0x35   :  { %91 = dma.hbm_to_vmem [thread:$0]  %s10941_s6, 2048, %s86_s22, [#allocation13], %s9373_s4, %s9373_s4, %s9374_s20  }
  0x36   :  { %s9375_s24 = smov [#allocation3]   ;;  %s9104_s29 = scalar_lea.hbm %s10936_s1, 8192 }
  0x37   :  { %s25_s25 = sshll.u32 %s9375_s24, 4  ;;  %p9105_p10 = scmp.ne.s32.totalorder %s10936_s1, %s9104_s29  ;;  %s26_s25 = int_to_ptr.vmem [resolvable:$true] %s25_s25 }
  0x38   :  { %p9108_p11 = scmp.lt.u32.totalorder %s9104_s29, %s10936_s1 }
  0x3a   :  { %p9110_p12 = pnand %p9108_p11, %p9105_p10 }
  0x3c   :  { %9113 = shalt.err (!%p9110_p12)
}
  0x3d   :  { %s9114_s10 = scalar_lea.vmem %s26_s25, 8192  ;;  %p9119_p0 = scmp.lt.s32.totalorder %s26_s25, %s26_s25 }
  0x3e   :  { %p9115_p13 = scmp.ne.s32.totalorder %s26_s25, %s9114_s10  ;;  %p9120_p1 = scmp.lt.s32.totalorder %s9114_s10, %s9114_s10 }
  0x40   :  { %p9121_p2 = por %p9120_p1, %p9119_p0 }
  0x42   :  { %p9122_p3 = pnand %p9121_p2, %p9115_p13 }
  0x44   :  { %9125 = shalt.err (!%p9122_p3)
}
  0x45   :  { %s9376_s6 = smov 256   ;;  %s9377_s22 = smov 16  }
  0x46   :  { %31 = dma.hbm_to_vmem [thread:$0]  %s10936_s1, 8192, %s26_s25, [#allocation4], %s9376_s6, %s9376_s6, %s9377_s22  }
  0x47   :  { %s9378_s13 = smov [#allocation8]   ;;  %s9126_s19 = scalar_lea.hbm %s10938_s3, 96 }
  0x48   :  { %s49_s14 = sshll.u32 %s9378_s13, 4  ;;  %p9127_p4 = scmp.ne.s32.totalorder %s10938_s3, %s9126_s19  ;;  %s50_s14 = int_to_ptr.vmem [resolvable:$true] %s49_s14 }
  0x49   :  { %p9130_p5 = scmp.lt.u32.totalorder %s9126_s19, %s10938_s3 }
  0x4b   :  { %p9132_p6 = pnand %p9130_p5, %p9127_p4 }
  0x4d   :  { %9135 = shalt.err (!%p9132_p6)
}
  0x4e   :  { %s9136_s24 = scalar_lea.vmem %s50_s14, 96  ;;  %p9141_p8 = scmp.lt.s32.totalorder %s50_s14, %s50_s14 }
  0x4f   :  { %p9137_p7 = scmp.ne.s32.totalorder %s50_s14, %s9136_s24  ;;  %p9142_p9 = scmp.lt.s32.totalorder %s9136_s24, %s9136_s24 }
  0x51   :  { %p9143_p10 = por %p9142_p9, %p9141_p8 }
  0x53   :  { %p9144_p11 = pnand %p9143_p10, %p9137_p7 }
  0x55   :  { %9147 = shalt.err (!%p9144_p11)
}
  0x56   :  { %s9379_s1 = smov 32   ;;  %s9380_s25 = smov 2  }
  0x57   :  { %55 = dma.hbm_to_vmem [thread:$0]  %s10938_s3, 96, %s50_s14, [#allocation7], %s9379_s1, %s9379_s1, %s9380_s25  }
  0x58   :  { %s9381_s29 = smov [#allocation11]   ;;  %s9382_s2 = smov [#allocation14]  }
  0x59   :  { %s73_s30 = sshll.u32 %s9381_s29, 4  ;;  %s98_s28 = sshll.u32 %s9382_s2, 4  ;;  %s74_s30 = int_to_ptr.vmem [resolvable:$true] %s73_s30  ;;  %s99_s28 = int_to_ptr.vmem [resolvable:$true] %s98_s28 }
  0x5a   :  { %s9148_s11 = scalar_lea.hbm %s10940_s5, 2048 }
  0x5b   :  { %p9149_p12 = scmp.ne.s32.totalorder %s10940_s5, %s9148_s11  ;;  %p9152_p13 = scmp.lt.u32.totalorder %s9148_s11, %s10940_s5 }
  0x5d   :  { %p9154_p0 = pnand %p9152_p13, %p9149_p12 }
  0x5f   :  { %9157 = shalt.err (!%p9154_p0)
}
  0x60   :  { %s9158_s3 = scalar_lea.vmem %s74_s30, 2048  ;;  %p9163_p2 = scmp.lt.s32.totalorder %s74_s30, %s74_s30 }
  0x61   :  { %p9159_p1 = scmp.ne.s32.totalorder %s74_s30, %s9158_s3  ;;  %p9164_p3 = scmp.lt.s32.totalorder %s9158_s3, %s9158_s3 }
  0x63   :  { %p9165_p4 = por %p9164_p3, %p9163_p2 }
  0x65   :  { %p9166_p5 = pnand %p9165_p4, %p9159_p1 }
  0x67   :  { %9169 = shalt.err (!%p9166_p5)
}
  0x68   :  { %79 = dma.hbm_to_vmem [thread:$0]  %s10940_s5, 2048, %s74_s30, [#allocation10], %s9376_s6, %s9376_s6, %s9377_s22  }
  0x69   :  { %s9170_s21 = scalar_lea.hbm %s10942_s7, 16 }
  0x6a   :  { %p9171_p6 = scmp.ne.s32.totalorder %s10942_s7, %s9170_s21  ;;  %p9174_p7 = scmp.lt.u32.totalorder %s9170_s21, %s10942_s7 }
  0x6c   :  { %p9176_p8 = pnand %p9174_p7, %p9171_p6 }
  0x6e   :  { %9179 = shalt.err (!%p9176_p8)
}
  0x6f   :  { %s9180_s26 = scalar_lea.vmem %s99_s28, 16  ;;  %s9184_s27 = scalar_lea.vmem %s99_s28, 32 }
  0x70   :  { %p9181_p9 = scmp.ne.s32.totalorder %s99_s28, %s9180_s26  ;;  %p9185_p10 = scmp.lt.s32.totalorder %s99_s28, %s99_s28 }
  0x71   :  { %p9186_p11 = scmp.lt.s32.totalorder %s9184_s27, %s9180_s26 }
  0x73   :  { %p9187_p12 = por %p9186_p11, %p9185_p10 }
  0x75   :  { %p9188_p13 = pnand %p9187_p12, %p9181_p9 }
  0x77   :  { %9191 = shalt.err (!%p9188_p13)
}
  0x78   :  { %101 = dma.hbm_to_vmem [thread:$0]  %s10942_s7, 16, %s99_s28, [#allocation13]  }
  0x79   :  { %9286 = dma.done.wait [#allocation4], 8192  }
  0x7a   :  { %9287 = vsyncadd [#allocation4], 4294959104 }
  0x7b   :  { %9288 = dma.done.wait [#allocation7], 110688  }
  0x7c   :  { %9289 = vsyncadd [#allocation7], 4294856608 }
  0x7d   :  { %9290 = dma.done.wait [#allocation10], 100352  }
  0x7e   :  { %9291 = vsyncadd [#allocation10], 4294866944 }
  0x7f   :  { %9292 = dma.done.wait [#allocation13], 2064  }
  0x80   :  { %9293 = vsyncadd [#allocation13], 4294965232  ;;  %v9383_v0 = vmov 0.0   ;;  %v165_v1 = vld [vmem:[#allocation3 + $0x8] sm:$0xff]  ;;  %v167_v2 = vld [vmem:[#allocation3 + $0x18] sm:$0xff] }
  0x81   :  { %124 = vst [vmem:[#allocation2] sm:$0xff] %v9383_v0  ;;  %125 = vst [vmem:[#allocation2 + $0x8] sm:$0xff] %v9383_v0  ;;  %v164_v3 = vld [vmem:[#allocation3] sm:$0xff]  ;;  %v7647_v4 = vpack.c.bf16 %v167_v2, %v165_v1  ;;  %v166_v5 = vld [vmem:[#allocation3 + $0x10] sm:$0xff] }
  0x82   :  { %130 = vst [vmem:[#allocation2 + $0x30] sm:$0xff] %v9383_v0  ;;  %131 = vst [vmem:[#allocation2 + $0x38] sm:$0xff] %v9383_v0  ;;  %v169_v6 = vld [vmem:[#allocation3 + $0x28] sm:$0xff]  ;;  %v171_v7 = vld [vmem:[#allocation3 + $0x38] sm:$0xff]  ;;  %v7649_v8 = vpack.c.bf16 %v166_v5, %v164_v3 }
  0x83   :  { %132 = vst [vmem:[#allocation2 + $0x40] sm:$0xff] %v9383_v0  ;;  %133 = vst [vmem:[#allocation2 + $0x48] sm:$0xff] %v9383_v0  ;;  %v7651_v9 = vpack.c.bf16 %v171_v7, %v169_v6  ;;  %v168_v10 = vld [vmem:[#allocation3 + $0x20] sm:$0xff]  ;;  %v170_v11 = vld [vmem:[#allocation3 + $0x30] sm:$0xff]  ;;  %7648 = vmatprep.subr.bf16.mxu0 %v7647_v4  ;;  %7839 = vmatprep.subr.bf16.mxu1 %v7647_v4 }
  0x84   :  { %138 = vst [vmem:[#allocation2 + $0x70] sm:$0xff] %v9383_v0  ;;  %139 = vst [vmem:[#allocation2 + $0x78] sm:$0xff] %v9383_v0  ;;  %v173_v12 = vld [vmem:[#allocation3 + $0x48] sm:$0xff]  ;;  %v175_v13 = vld [vmem:[#allocation3 + $0x58] sm:$0xff]  ;;  %7650 = vmatpush1.bf16.msra.mxu0 %v7649_v8  ;;  %7855 = vmatpush1.bf16.msra.mxu1 %v7649_v8  ;;  %v7653_v14 = vpack.c.bf16 %v170_v11, %v168_v10 }
  0x85   :  { %140 = vst [vmem:[#allocation2 + $0x80] sm:$0xff] %v9383_v0  ;;  %141 = vst [vmem:[#allocation2 + $0x88] sm:$0xff] %v9383_v0  ;;  %7652 = vmatprep.subr.bf16.mxu0 %v7651_v9  ;;  %7840 = vmatprep.subr.bf16.mxu1 %v7651_v9  ;;  %v7655_v15 = vpack.c.bf16 %v175_v13, %v173_v12  ;;  %v172_v16 = vld [vmem:[#allocation3 + $0x40] sm:$0xff]  ;;  %v174_v17 = vld [vmem:[#allocation3 + $0x50] sm:$0xff] }
  0x86   :  { %146 = vst [vmem:[#allocation2 + $0xb0] sm:$0xff] %v9383_v0  ;;  %147 = vst [vmem:[#allocation2 + $0xb8] sm:$0xff] %v9383_v0  ;;  %v177_v18 = vld [vmem:[#allocation3 + $0x68] sm:$0xff]  ;;  %v179_v19 = vld [vmem:[#allocation3 + $0x78] sm:$0xff]  ;;  %v7657_v20 = vpack.c.bf16 %v174_v17, %v172_v16 }
  0x87   :  { %148 = vst [vmem:[#allocation2 + $0xc0] sm:$0xff] %v9383_v0  ;;  %149 = vst [vmem:[#allocation2 + $0xc8] sm:$0xff] %v9383_v0  ;;  %v7659_v21 = vpack.c.bf16 %v179_v19, %v177_v18  ;;  %v176_v22 = vld [vmem:[#allocation3 + $0x60] sm:$0xff]  ;;  %v178_v23 = vld [vmem:[#allocation3 + $0x70] sm:$0xff] }
  0x88   :  { %154 = vst [vmem:[#allocation2 + $0xf0] sm:$0xff] %v9383_v0  ;;  %155 = vst [vmem:[#allocation2 + $0xf8] sm:$0xff] %v9383_v0  ;;  %7654 = vmatpush1.bf16.msra.mxu0 %v7653_v14  ;;  %7856 = vmatpush1.bf16.msra.mxu1 %v7653_v14  ;;  %v181_v24 = vld [vmem:[#allocation3 + $0x88] sm:$0xff]  ;;  %v183_v25 = vld [vmem:[#allocation3 + $0x98] sm:$0xff]  ;;  %v7661_v26 = vpack.c.bf16 %v178_v23, %v176_v22 }
  0x89   :  { %7656 = vmatprep.subr.bf16.mxu0 %v7655_v15  ;;  %7841 = vmatprep.subr.bf16.mxu1 %v7655_v15  ;;  %v7663_v27 = vpack.c.bf16 %v183_v25, %v181_v24  ;;  %v180_v28 = vld [vmem:[#allocation3 + $0x80] sm:$0xff]  ;;  %v182_v29 = vld [vmem:[#allocation3 + $0x90] sm:$0xff]  ;;  %v185_v30 = vld [vmem:[#allocation3 + $0xa8] sm:$0xff] }
  0x8a   :  { %v187_v31 = vld [vmem:[#allocation3 + $0xb8] sm:$0xff]  ;;  %v7665_v32 = vpack.c.bf16 %v182_v29, %v180_v28  ;;  %v184_v34 = vld [vmem:[#allocation3 + $0xa0] sm:$0xff]  ;;  %v186_v35 = vld [vmem:[#allocation3 + $0xb0] sm:$0xff] }
  0x8b   :  { %v7667_v33 = vpack.c.bf16 %v187_v31, %v185_v30  ;;  %v189_v36 = vld [vmem:[#allocation3 + $0xc8] sm:$0xff]  ;;  %v191_v37 = vld [vmem:[#allocation3 + $0xd8] sm:$0xff]  ;;  %v7669_v38 = vpack.c.bf16 %v186_v35, %v184_v34  ;;  %v188_v39 = vld [vmem:[#allocation3 + $0xc0] sm:$0xff] }
  0x8c   :  { %7658 = vmatpush1.bf16.msra.mxu0 %v7657_v20  ;;  %7857 = vmatpush1.bf16.msra.mxu1 %v7657_v20  ;;  %v190_v40 = vld [vmem:[#allocation3 + $0xd0] sm:$0xff]  ;;  %v193_v41 = vld [vmem:[#allocation3 + $0xe8] sm:$0xff]  ;;  %v7671_v42 = vpack.c.bf16 %v191_v37, %v189_v36  ;;  %v195_v43 = vld [vmem:[#allocation3 + $0xf8] sm:$0xff] }
  0x8d   :  { %7660 = vmatprep.subr.bf16.mxu0 %v7659_v21  ;;  %7842 = vmatprep.subr.bf16.mxu1 %v7659_v21  ;;  %v157_v44 = vld [vmem:[%s10935_s0 + $0x8] sm:$0xff]  ;;  %v9535_v46 = vld [vmem:[%s10935_s0] sm:$0xff]  ;;  %v9545_v48 = vld [vmem:[%s10935_s0 + $0x18] sm:$0xff]  ;;  %v7673_v52 = vpack.c.bf16 %v190_v40, %v188_v39  ;;  %v7675_v53 = vpack.c.bf16 %v195_v43, %v193_v41 }
  0x8e   :  { %v161_v45 = vld [vmem:[%s10935_s0 + $0x28] sm:$0xff]  ;;  %292 = vmatprep.mubr.f32.mxu0 %v157_v44  ;;  %326 = vst [vmem:[#allocation2 + $0x18] sm:$0xff] %v157_v44  ;;  %v9540_v47 = vld [vmem:[%s10935_s0 + $0x20] sm:$0xff]  ;;  %325 = vst [vmem:[#allocation2 + $0x10] sm:$0xff] %v9535_v46 }
  0x8f   :  { %304 = vmatprep.mubr.f32.mxu1 %v161_v45  ;;  %330 = vst [vmem:[#allocation2 + $0x58] sm:$0xff] %v161_v45  ;;  %329 = vst [vmem:[#allocation2 + $0x50] sm:$0xff] %v9540_v47  ;;  %v9553_v49 = vld [vmem:[%s10935_s0 + $0x38] sm:$0xff]  ;;  %v9558_v50 = vld [vmem:[%s10935_s0 + $0x10] sm:$0xff] }
  0x90   :  { %7662 = vmatpush1.bf16.msra.mxu0 %v7661_v26  ;;  %7858 = vmatpush1.bf16.msra.mxu1 %v7661_v26  ;;  %328 = vst [vmem:[#allocation2 + $0x28] sm:$0xff] %v9545_v48  ;;  %v9563_v51 = vld [vmem:[%s10935_s0 + $0x30] sm:$0xff]  ;;  %332 = vst [vmem:[#allocation2 + $0x68] sm:$0xff] %v9553_v49  ;;  %v192_v54 = vld [vmem:[#allocation3 + $0xe0] sm:$0xff]  ;;  %s9574_s0 = smov 0  }
  0x91   :  { %7664 = vmatprep.subr.bf16.mxu0 %v7663_v27  ;;  %7843 = vmatprep.subr.bf16.mxu1 %v7663_v27  ;;  %327 = vst [vmem:[#allocation2 + $0x20] sm:$0xff] %v9558_v50  ;;  %331 = vst [vmem:[#allocation2 + $0x60] sm:$0xff] %v9563_v51  ;;  %v194_v55 = vld [vmem:[#allocation3 + $0xf0] sm:$0xff]  ;;  %v197_v56 = vld [vmem:[#allocation3 + $0x108] sm:$0xff] }
  0x92   :  { %v199_v57 = vld [vmem:[#allocation3 + $0x118] sm:$0xff]  ;;  %v7677_v58 = vpack.c.bf16 %v194_v55, %v192_v54  ;;  %v196_v60 = vld [vmem:[#allocation3 + $0x100] sm:$0xff]  ;;  %v198_v61 = vld [vmem:[#allocation3 + $0x110] sm:$0xff] }
  0x93   :  { %v7679_v59 = vpack.c.bf16 %v199_v57, %v197_v56  ;;  %v201_v62 = vld [vmem:[#allocation3 + $0x128] sm:$0xff]  ;;  %v203_v63 = vld [vmem:[#allocation3 + $0x138] sm:$0xff]  ;;  %v7681_v0 = vpack.c.bf16 %v198_v61, %v196_v60  ;;  %v200_v2 = vld [vmem:[#allocation3 + $0x120] sm:$0xff] }
  0x94   :  { %7666 = vmatpush1.bf16.msra.mxu0 %v7665_v32  ;;  %7859 = vmatpush1.bf16.msra.mxu1 %v7665_v32  ;;  %v7683_v1 = vpack.c.bf16 %v203_v63, %v201_v62  ;;  %v202_v3 = vld [vmem:[#allocation3 + $0x130] sm:$0xff]  ;;  %v205_v4 = vld [vmem:[#allocation3 + $0x148] sm:$0xff]  ;;  %v207_v5 = vld [vmem:[#allocation3 + $0x158] sm:$0xff] }
  0x95   :  { %7668 = vmatprep.subr.bf16.mxu0 %v7667_v33  ;;  %7844 = vmatprep.subr.bf16.mxu1 %v7667_v33  ;;  %v7685_v6 = vpack.c.bf16 %v202_v3, %v200_v2  ;;  %v7687_v7 = vpack.c.bf16 %v207_v5, %v205_v4  ;;  %v204_v8 = vld [vmem:[#allocation3 + $0x140] sm:$0xff]  ;;  %v206_v9 = vld [vmem:[#allocation3 + $0x150] sm:$0xff]  ;;  %v209_v10 = vld [vmem:[#allocation3 + $0x168] sm:$0xff] }
  0x96   :  { %v211_v11 = vld [vmem:[#allocation3 + $0x178] sm:$0xff]  ;;  %v7689_v12 = vpack.c.bf16 %v206_v9, %v204_v8  ;;  %v208_v14 = vld [vmem:[#allocation3 + $0x160] sm:$0xff]  ;;  %v210_v15 = vld [vmem:[#allocation3 + $0x170] sm:$0xff] }
  0x97   :  { %v7691_v13 = vpack.c.bf16 %v211_v11, %v209_v10  ;;  %v213_v16 = vld [vmem:[#allocation3 + $0x188] sm:$0xff]  ;;  %v215_v17 = vld [vmem:[#allocation3 + $0x198] sm:$0xff]  ;;  %v7693_v18 = vpack.c.bf16 %v210_v15, %v208_v14  ;;  %v212_v20 = vld [vmem:[#allocation3 + $0x180] sm:$0xff] }
  0x98   :  { %7670 = vmatpush1.bf16.msra.mxu0 %v7669_v38  ;;  %7860 = vmatpush1.bf16.msra.mxu1 %v7669_v38  ;;  %v7695_v19 = vpack.c.bf16 %v215_v17, %v213_v16  ;;  %v214_v21 = vld [vmem:[#allocation3 + $0x190] sm:$0xff]  ;;  %v217_v22 = vld [vmem:[#allocation3 + $0x1a8] sm:$0xff]  ;;  %v219_v23 = vld [vmem:[#allocation3 + $0x1b8] sm:$0xff] }
  0x99   :  { %7672 = vmatprep.subr.bf16.mxu0 %v7671_v42  ;;  %7845 = vmatprep.subr.bf16.mxu1 %v7671_v42  ;;  %v7697_v24 = vpack.c.bf16 %v214_v21, %v212_v20  ;;  %v7699_v25 = vpack.c.bf16 %v219_v23, %v217_v22  ;;  %v216_v26 = vld [vmem:[#allocation3 + $0x1a0] sm:$0xff]  ;;  %v218_v27 = vld [vmem:[#allocation3 + $0x1b0] sm:$0xff]  ;;  %v221_v28 = vld [vmem:[#allocation3 + $0x1c8] sm:$0xff] }
  0x9a   :  { %v223_v29 = vld [vmem:[#allocation3 + $0x1d8] sm:$0xff]  ;;  %v7701_v30 = vpack.c.bf16 %v218_v27, %v216_v26  ;;  %v220_v32 = vld [vmem:[#allocation3 + $0x1c0] sm:$0xff]  ;;  %v222_v33 = vld [vmem:[#allocation3 + $0x1d0] sm:$0xff] }
  0x9b   :  { %v7703_v31 = vpack.c.bf16 %v223_v29, %v221_v28  ;;  %v225_v34 = vld [vmem:[#allocation3 + $0x1e8] sm:$0xff]  ;;  %v227_v35 = vld [vmem:[#allocation3 + $0x1f8] sm:$0xff]  ;;  %v7705_v36 = vpack.c.bf16 %v222_v33, %v220_v32  ;;  %v224_v38 = vld [vmem:[#allocation3 + $0x1e0] sm:$0xff] }
  0x9c   :  { %7674 = vmatpush1.bf16.msra.mxu0 %v7673_v52  ;;  %7861 = vmatpush1.bf16.msra.mxu1 %v7673_v52  ;;  %v7707_v37 = vpack.c.bf16 %v227_v35, %v225_v34  ;;  %v226_v39 = vld [vmem:[#allocation3 + $0x1f0] sm:$0xff] }
  0x9d   :  { %7676 = vmatprep.subr.bf16.mxu0 %v7675_v53  ;;  %7846 = vmatprep.subr.bf16.mxu1 %v7675_v53  ;;  %v7709_v40 = vpack.c.bf16 %v226_v39, %v224_v38 }
  0xa0   :  { %7678 = vmatpush1.bf16.msra.mxu0 %v7677_v58  ;;  %7862 = vmatpush1.bf16.msra.mxu1 %v7677_v58 }
  0xa1   :  { %7680 = vmatprep.subr.bf16.mxu0 %v7679_v59  ;;  %7847 = vmatprep.subr.bf16.mxu1 %v7679_v59 }
  0xa4   :  { %7682 = vmatpush1.bf16.msra.mxu0 %v7681_v0  ;;  %7863 = vmatpush1.bf16.msra.mxu1 %v7681_v0 }
  0xa5   :  { %7684 = vmatprep.subr.bf16.mxu0 %v7683_v1  ;;  %7848 = vmatprep.subr.bf16.mxu1 %v7683_v1 }
  0xa8   :  { %7686 = vmatpush1.bf16.msra.mxu0 %v7685_v6  ;;  %7864 = vmatpush1.bf16.msra.mxu1 %v7685_v6 }
  0xa9   :  { %7688 = vmatprep.subr.bf16.mxu0 %v7687_v7  ;;  %7849 = vmatprep.subr.bf16.mxu1 %v7687_v7 }
  0xac   :  { %7690 = vmatpush1.bf16.msra.mxu0 %v7689_v12  ;;  %7865 = vmatpush1.bf16.msra.mxu1 %v7689_v12 }
  0xad   :  { %7692 = vmatprep.subr.bf16.mxu0 %v7691_v13  ;;  %7850 = vmatprep.subr.bf16.mxu1 %v7691_v13 }
  0xb0   :  { %7694 = vmatpush1.bf16.msra.mxu0 %v7693_v18  ;;  %7866 = vmatpush1.bf16.msra.mxu1 %v7693_v18 }
  0xb1   :  { %7696 = vmatprep.subr.bf16.mxu0 %v7695_v19  ;;  %7851 = vmatprep.subr.bf16.mxu1 %v7695_v19 }
  0xb4   :  { %7698 = vmatpush1.bf16.msra.mxu0 %v7697_v24  ;;  %7867 = vmatpush1.bf16.msra.mxu1 %v7697_v24 }
  0xb5   :  { %7700 = vmatprep.subr.bf16.mxu0 %v7699_v25  ;;  %7852 = vmatprep.subr.bf16.mxu1 %v7699_v25 }
  0xb8   :  { %7702 = vmatpush1.bf16.msra.mxu0 %v7701_v30  ;;  %7868 = vmatpush1.bf16.msra.mxu1 %v7701_v30 }
  0xb9   :  { %7704 = vmatprep.subr.bf16.mxu0 %v7703_v31  ;;  %7853 = vmatprep.subr.bf16.mxu1 %v7703_v31 }
  0xbc   :  { %7706 = vmatpush1.bf16.msra.mxu0 %v7705_v36  ;;  %7869 = vmatpush1.bf16.msra.mxu1 %v7705_v36 }
  0xbd   :  { %7708 = vmatprep.subr.bf16.mxu0 %v7707_v37  ;;  %7854 = vmatprep.subr.bf16.mxu1 %v7707_v37 }
  0xc0   :  { %7710 = vmatpush1.bf16.msra.mxu0 %v7709_v40  ;;  %7870 = vmatpush1.bf16.msra.mxu1 %v7709_v40 }
  0xc3   :  { %293 = vmatmul.mubr.f32.vlgmr.msra.gmra.mrb[0].mxu0 %v9535_v46  ;;  %305 = vmatmul.mubr.f32.vlgmr.msra.gmra.mrb[0].mxu1 %v9540_v47 }
  0xc4   :  { %298 = vmatprep.mubr.f32.mxu0 %v9545_v48  ;;  %310 = vmatprep.mubr.f32.mxu1 %v9553_v49 }
  0xc7   :  { %299 = vmatmul.mubr.f32.gmra.mrb[2].mxu0 %v9558_v50  ;;  %311 = vmatmul.mubr.f32.gmra.mrb[2].mxu1 %v9563_v51 }
 0x196   :  { %v294_v41 = vpop.f32.mrb[0].mxu0  ;;  %v306_v42 = vpop.f32.mrb[0].mxu1 }
 0x197   :  { %v317_v43 = vmul.f32 0.0625, %v294_v41  ;;  %v321_v44 = vmul.f32 0.0625, %v306_v42  ;;  %v296_v45 = vpop.f32.mrb[1].mxu0  ;;  %v308_v52 = vpop.f32.mrb[1].mxu1 }
 0x198   :  { %v318_v53 = vmul.f32 0.0625, %v296_v45  ;;  %v322_v54 = vmul.f32 0.0625, %v308_v52 }
 0x199   :  { %334 = vst [vmem:[#allocation2 + $0x90] sm:$0xff] %v317_v43  ;;  %338 = vst [vmem:[#allocation2 + $0xd0] sm:$0xff] %v321_v44 }
 0x19a   :  { %335 = vst [vmem:[#allocation2 + $0x98] sm:$0xff] %v318_v53  ;;  %339 = vst [vmem:[#allocation2 + $0xd8] sm:$0xff] %v322_v54  ;;  %v300_v46 = vpop.f32.mrb[2].mxu0  ;;  %v312_v47 = vpop.f32.mrb[2].mxu1 }
 0x19b   :  { %v319_v48 = vmul.f32 0.0625, %v300_v46  ;;  %v323_v49 = vmul.f32 0.0625, %v312_v47  ;;  %v302_v55 = vpop.f32.mrb[3].mxu0  ;;  %v314_v50 = vpop.f32.mrb[3].mxu1 }
 0x19c   :  { %v320_v56 = vmul.f32 0.0625, %v302_v55  ;;  %v324_v51 = vmul.f32 0.0625, %v314_v50 }
 0x19d   :  { %336 = vst [vmem:[#allocation2 + $0xa0] sm:$0xff] %v319_v48  ;;  %340 = vst [vmem:[#allocation2 + $0xe0] sm:$0xff] %v323_v49 }
 0x19e   :  { %337 = vst [vmem:[#allocation2 + $0xa8] sm:$0xff] %v320_v56  ;;  %341 = vst [vmem:[#allocation2 + $0xe8] sm:$0xff] %v324_v51 }
 0x19f LB: > { %v9579_v57 = vld [vmem:[#allocation2 + $0x18] sm:$0xff]  ;;  %v498_v58 = vld [vmem:[#allocation2 + $0x8] sm:$0xe0]  ;;  %v500_v59 = vld [vmem:[#allocation2 + $0x28] sm:$0x1f]  ;;  %vm529_vm0 = vcmask 1042432   ;;  %s9298_s0 = sphi %s9574_s0, %s347_s0  }
 0x1a0   : > { %v533_v60 = vrot.slane %v498_v58, 5  ;;  %v534_v61 = vrot.slane %v9579_v57, 5  ;;  %v538_v62 = vrot.slane %v500_v59, 5  ;;  %v9582_v63 = vld [vmem:[#allocation2 + $0x28] sm:$0xff]  ;;  %s7616_s4 = smul.u32 2304, %s9298_s0  ;;  %v9645_v59 = vld [vmem:[#allocation2 + $0x10] sm:$0xff] }
 0x1a1   : > { %v1869_v0 = vpack.c.bf16 %v9582_v63, %v9579_v57  ;;  %vm396_vm1 = vcmask 1043456   ;;  %vm2209_vm2 = vcmask 1046528   ;;  %vm1128_vm3 = vcmask 1041408   ;;  %s7237_s21 = sshll.u32 %s9298_s0, 1  ;;  %s347_s0 = sadd.s32 1, %s9298_s0  }
 0x1a2   : > { %v535_v1 = vsel %vm529_vm0, %v533_v60, %v534_v61  ;;  %v539_v2 = vsel %vm529_vm0, %v534_v61, %v538_v62  ;;  %s9589_s20 = scalar_lea.vmem [#allocation6], %s7616_s4  ;;  %v497_v62 = vld [vmem:[#allocation2] sm:$0xe0]  ;;  %vm2591_vm4 = vcmask 1045504   ;;  %vm1510_vm5 = vcmask 1040384   ;;  %s3705_s23 = scalar_lea.vmem [#allocation8], %s7237_s21 }
 0x1a3   : > { %v587_v3 = vpack.c.bf16 %v539_v2, %v535_v1  ;;  %2104 = vmatprep.mubr.bf16.mxu0 %v1869_v0  ;;  %v8240_v4 = vld [vmem:[%s9589_s20 + $0x104] ss:$8 sps:$4 sm:$0xff]   ;;  %v8244_v6 = vld [vmem:[%s9589_s20 + $0x100] ss:$8 sps:$4 sm:$0xff]   ;;  %v8246_v8 = vld [vmem:[%s9589_s20 + $0x114] ss:$8 sps:$4 sm:$0xff]  }
 0x1a4   : > { %v8242_v5 = vld [vmem:[%s9589_s20 + $0x404] ss:$8 sps:$4 sm:$0xff]   ;;  %790 = vmatprep.subr.bf16.mxu1 %v8240_v4  ;;  %v8245_v7 = vld [vmem:[%s9589_s20 + $0x400] ss:$8 sps:$4 sm:$0xff]   ;;  %v8248_v9 = vld [vmem:[%s9589_s20 + $0x414] ss:$8 sps:$4 sm:$0xff]  }
 0x1a5   : > { %822 = vmatprep.mubr.bf16.mxu1 %v587_v3  ;;  %2072 = vmatprep.subr.bf16.mxu0 %v8242_v5  ;;  %v8250_v10 = vld [vmem:[%s9589_s20 + $0x110] ss:$8 sps:$4 sm:$0xff]   ;;  %v8252_v12 = vld [vmem:[%s9589_s20 + $0x124] ss:$8 sps:$4 sm:$0xff]   ;;  %v8256_v14 = vld [vmem:[%s9589_s20 + $0x120] ss:$8 sps:$4 sm:$0xff]  }
 0x1a6   : > { %791 = vmatpush1.bf16.msra.mxu1 %v8244_v6  ;;  %2073 = vmatpush1.bf16.msra.mxu0 %v8245_v7  ;;  %v8251_v11 = vld [vmem:[%s9589_s20 + $0x410] ss:$8 sps:$4 sm:$0xff]   ;;  %v8254_v13 = vld [vmem:[%s9589_s20 + $0x424] ss:$8 sps:$4 sm:$0xff]   ;;  %v8257_v15 = vld [vmem:[%s9589_s20 + $0x420] ss:$8 sps:$4 sm:$0xff]  }
 0x1a7   : > { %792 = vmatprep.subr.bf16.mxu1 %v8246_v8  ;;  %2074 = vmatprep.subr.bf16.mxu0 %v8248_v9  ;;  %v8258_v16 = vld [vmem:[%s9589_s20 + $0x134] ss:$8 sps:$4 sm:$0xff]   ;;  %v8262_v18 = vld [vmem:[%s9589_s20 + $0x130] ss:$8 sps:$4 sm:$0xff]   ;;  %v8264_v20 = vld [vmem:[%s9589_s20 + $0x144] ss:$8 sps:$4 sm:$0xff]  }
 0x1a8   : > { %v8260_v17 = vld [vmem:[%s9589_s20 + $0x434] ss:$8 sps:$4 sm:$0xff]   ;;  %v8263_v19 = vld [vmem:[%s9589_s20 + $0x430] ss:$8 sps:$4 sm:$0xff]   ;;  %v8266_v21 = vld [vmem:[%s9589_s20 + $0x444] ss:$8 sps:$4 sm:$0xff]  }
 0x1a9   : > { %v8268_v22 = vld [vmem:[%s9589_s20 + $0x140] ss:$8 sps:$4 sm:$0xff]   ;;  %v8270_v24 = vld [vmem:[%s9589_s20 + $0x154] ss:$8 sps:$4 sm:$0xff]   ;;  %v8274_v26 = vld [vmem:[%s9589_s20 + $0x150] ss:$8 sps:$4 sm:$0xff]  }
 0x1aa   : > { %793 = vmatpush1.bf16.msra.mxu1 %v8250_v10  ;;  %2075 = vmatpush1.bf16.msra.mxu0 %v8251_v11  ;;  %v8269_v23 = vld [vmem:[%s9589_s20 + $0x440] ss:$8 sps:$4 sm:$0xff]   ;;  %v8272_v25 = vld [vmem:[%s9589_s20 + $0x454] ss:$8 sps:$4 sm:$0xff]   ;;  %v8275_v27 = vld [vmem:[%s9589_s20 + $0x450] ss:$8 sps:$4 sm:$0xff]  }
 0x1ab   : > { %794 = vmatprep.subr.bf16.mxu1 %v8252_v12  ;;  %2076 = vmatprep.subr.bf16.mxu0 %v8254_v13  ;;  %v8276_v28 = vld [vmem:[%s9589_s20 + $0x164] ss:$8 sps:$4 sm:$0xff]   ;;  %v8280_v30 = vld [vmem:[%s9589_s20 + $0x160] ss:$8 sps:$4 sm:$0xff]   ;;  %v8282_v32 = vld [vmem:[%s9589_s20 + $0x174] ss:$8 sps:$4 sm:$0xff]  }
 0x1ac   : > { %v8278_v29 = vld [vmem:[%s9589_s20 + $0x464] ss:$8 sps:$4 sm:$0xff]   ;;  %v8281_v31 = vld [vmem:[%s9589_s20 + $0x460] ss:$8 sps:$4 sm:$0xff]   ;;  %v8284_v33 = vld [vmem:[%s9589_s20 + $0x474] ss:$8 sps:$4 sm:$0xff]  }
 0x1ad   : > { %v8286_v34 = vld [vmem:[%s9589_s20 + $0x170] ss:$8 sps:$4 sm:$0xff]   ;;  %v8288_v36 = vld [vmem:[%s9589_s20 + $0x184] ss:$8 sps:$4 sm:$0xff]   ;;  %v8292_v38 = vld [vmem:[%s9589_s20 + $0x180] ss:$8 sps:$4 sm:$0xff]  }
 0x1ae   : > { %795 = vmatpush1.bf16.msra.mxu1 %v8256_v14  ;;  %2077 = vmatpush1.bf16.msra.mxu0 %v8257_v15  ;;  %v8287_v35 = vld [vmem:[%s9589_s20 + $0x470] ss:$8 sps:$4 sm:$0xff]   ;;  %v8290_v37 = vld [vmem:[%s9589_s20 + $0x484] ss:$8 sps:$4 sm:$0xff]   ;;  %v8293_v39 = vld [vmem:[%s9589_s20 + $0x480] ss:$8 sps:$4 sm:$0xff]  }
 0x1af   : > { %796 = vmatprep.subr.bf16.mxu1 %v8258_v16  ;;  %2078 = vmatprep.subr.bf16.mxu0 %v8260_v17  ;;  %v8294_v40 = vld [vmem:[%s9589_s20 + $0x194] ss:$8 sps:$4 sm:$0xff]   ;;  %v8298_v42 = vld [vmem:[%s9589_s20 + $0x190] ss:$8 sps:$4 sm:$0xff]   ;;  %v8300_v44 = vld [vmem:[%s9589_s20 + $0x1a4] ss:$8 sps:$4 sm:$0xff]  }
 0x1b0   : > { %v8296_v41 = vld [vmem:[%s9589_s20 + $0x494] ss:$8 sps:$4 sm:$0xff]   ;;  %v8299_v43 = vld [vmem:[%s9589_s20 + $0x490] ss:$8 sps:$4 sm:$0xff]   ;;  %v8302_v45 = vld [vmem:[%s9589_s20 + $0x4a4] ss:$8 sps:$4 sm:$0xff]  }
 0x1b1   : > { %v8304_v52 = vld [vmem:[%s9589_s20 + $0x1a0] ss:$8 sps:$4 sm:$0xff]   ;;  %v8306_v54 = vld [vmem:[%s9589_s20 + $0x1b4] ss:$8 sps:$4 sm:$0xff]   ;;  %v8310_v47 = vld [vmem:[%s9589_s20 + $0x1b0] ss:$8 sps:$4 sm:$0xff]  }
 0x1b2   : > { %797 = vmatpush1.bf16.msra.mxu1 %v8262_v18  ;;  %2079 = vmatpush1.bf16.msra.mxu0 %v8263_v19  ;;  %v8305_v53 = vld [vmem:[%s9589_s20 + $0x4a0] ss:$8 sps:$4 sm:$0xff]   ;;  %v8308_v46 = vld [vmem:[%s9589_s20 + $0x4b4] ss:$8 sps:$4 sm:$0xff]   ;;  %v8311_v48 = vld [vmem:[%s9589_s20 + $0x4b0] ss:$8 sps:$4 sm:$0xff]  }
 0x1b3   : > { %798 = vmatprep.subr.bf16.mxu1 %v8264_v20  ;;  %2080 = vmatprep.subr.bf16.mxu0 %v8266_v21  ;;  %v8312_v49 = vld [vmem:[%s9589_s20 + $0x1c4] ss:$8 sps:$4 sm:$0xff]   ;;  %v8316_v50 = vld [vmem:[%s9589_s20 + $0x1c0] ss:$8 sps:$4 sm:$0xff]   ;;  %v8318_v51 = vld [vmem:[%s9589_s20 + $0x1d4] ss:$8 sps:$4 sm:$0xff]  }
 0x1b4   : > { %v8314_v55 = vld [vmem:[%s9589_s20 + $0x4c4] ss:$8 sps:$4 sm:$0xff]   ;;  %v8317_v56 = vld [vmem:[%s9589_s20 + $0x4c0] ss:$8 sps:$4 sm:$0xff]   ;;  %v8320_v58 = vld [vmem:[%s9589_s20 + $0x4d4] ss:$8 sps:$4 sm:$0xff]  }
 0x1b5   : > { %v8322_v60 = vld [vmem:[%s9589_s20 + $0x1d0] ss:$8 sps:$4 sm:$0xff]   ;;  %v499_v0 = vld [vmem:[#allocation2 + $0x20] sm:$0x1f]  ;;  %v502_v4 = vld [vmem:[#allocation2 + $0x48] sm:$0xe0] }
 0x1b6   : > { %799 = vmatpush1.bf16.msra.mxu1 %v8268_v22  ;;  %2081 = vmatpush1.bf16.msra.mxu0 %v8269_v23  ;;  %v8323_v61 = vld [vmem:[%s9589_s20 + $0x4d0] ss:$8 sps:$4 sm:$0xff]   ;;  %v8324_v1 = vld [vmem:[%s9589_s20 + $0x1e4] ss:$8 sps:$4 sm:$0xff]   ;;  %v8328_v6 = vld [vmem:[%s9589_s20 + $0x1e0] ss:$8 sps:$4 sm:$0xff]  }
 0x1b7   : > { %800 = vmatprep.subr.bf16.mxu1 %v8270_v24  ;;  %2082 = vmatprep.subr.bf16.mxu0 %v8272_v25  ;;  %v8326_v2 = vld [vmem:[%s9589_s20 + $0x4e4] ss:$8 sps:$4 sm:$0xff]   ;;  %v9651_v3 = vld [vmem:[#allocation2 + $0x58] sm:$0xff]  ;;  %v8329_v7 = vld [vmem:[%s9589_s20 + $0x4e0] ss:$8 sps:$4 sm:$0xff]   ;;  %v531_v8 = vrot.slane %v9645_v59, 5 }
 0x1b8   : > { %v504_v5 = vld [vmem:[#allocation2 + $0x68] sm:$0x1f]  ;;  %v8330_v9 = vld [vmem:[%s9589_s20 + $0x1f4] ss:$8 sps:$4 sm:$0xff]   ;;  %v530_v10 = vrot.slane %v497_v62, 5  ;;  %v536_v11 = vrot.slane %v499_v0, 5 }
 0x1b9   : > { %v8332_v12 = vld [vmem:[%s9589_s20 + $0x4f4] ss:$8 sps:$4 sm:$0xff]   ;;  %v9658_v13 = vld [vmem:[#allocation2 + $0x20] sm:$0xff]  ;;  %v543_v14 = vrot.slane %v502_v4, 5  ;;  %v544_v15 = vrot.slane %v9651_v3, 5  ;;  %v548_v18 = vrot.slane %v504_v5, 5 }
 0x1ba   : > { %801 = vmatpush1.bf16.msra.mxu1 %v8274_v26  ;;  %2083 = vmatpush1.bf16.msra.mxu0 %v8275_v27  ;;  %v8334_v16 = vld [vmem:[%s9589_s20 + $0x1f0] ss:$8 sps:$4 sm:$0xff]   ;;  %v8338_v19 = vld [vmem:[%s9589_s20 + $0x4] ss:$8 sps:$4 sm:$0xff]   ;;  %v532_v20 = vsel %vm529_vm0, %v530_v10, %v531_v8  ;;  %v537_v21 = vsel %vm529_vm0, %v531_v8, %v536_v11  ;;  %v8336_v24 = vld [vmem:[%s9589_s20] ss:$8 sps:$4 sm:$0xff]   ;;  %v1868_v27 = vpack.c.bf16 %v9658_v13, %v9645_v59 }
 0x1bb   : > { %802 = vmatprep.subr.bf16.mxu1 %v8276_v28  ;;  %2084 = vmatprep.subr.bf16.mxu0 %v8278_v29  ;;  %v8335_v17 = vld [vmem:[%s9589_s20 + $0x4f0] ss:$8 sps:$4 sm:$0xff]   ;;  %v8341_v22 = vld [vmem:[%s9589_s20 + $0x504] ss:$8 sps:$4 sm:$0xff]   ;;  %v8339_v25 = vld [vmem:[%s9589_s20 + $0x500] ss:$8 sps:$4 sm:$0xff]   ;;  %v586_v26 = vpack.c.bf16 %v537_v21, %v532_v20  ;;  %v545_v28 = vsel %vm529_vm0, %v543_v14, %v544_v15  ;;  %v549_v29 = vsel %vm529_vm0, %v544_v15, %v548_v18 }
 0x1bc   : > { %v9667_v23 = vld [vmem:[#allocation2 + $0x68] sm:$0xff]  ;;  %v9712_v10 = vld [vmem:[#allocation2 + $0x90] sm:$0xff]  ;;  %v507_v14 = vld [vmem:[#allocation2 + $0xa0] sm:$0x1f]  ;;  %vm2973_vm6 = vcmask 1044480   ;;  %p344_p0 = scmp.ge.s32.totalorder %s347_s0, 3  }
 0x1bd   : > { %v8365_v62 = vld [vmem:[%s9589_s20 + $0x544] ss:$8 sps:$4 sm:$0xff]   ;;  %v8360_v4 = vld [vmem:[%s9589_s20 + $0x40] ss:$8 sps:$4 sm:$0xff]   ;;  %v551_v15 = vrot.slane %v9712_v10, 5  ;;  %s10237_s24 = smov (%p344_p0), 0  }
 0x1be   : > { %803 = vmatpush1.bf16.msra.mxu1 %v8280_v30  ;;  %2085 = vmatpush1.bf16.msra.mxu0 %v8281_v31  ;;  %v8344_v30 = vld [vmem:[%s9589_s20 + $0x14] ss:$8 sps:$4 sm:$0xff]   ;;  %v8366_v21 = vld [vmem:[%s9589_s20 + $0x50] ss:$8 sps:$4 sm:$0xff]  }
 0x1bf   : > { %804 = vmatprep.subr.bf16.mxu1 %v8282_v32  ;;  %2086 = vmatprep.subr.bf16.mxu0 %v8284_v33  ;;  %v8347_v31 = vld [vmem:[%s9589_s20 + $0x514] ss:$8 sps:$4 sm:$0xff]   ;;  %v589_v32 = vpack.c.bf16 %v549_v29, %v545_v28  ;;  %v1871_v33 = vpack.c.bf16 %v9667_v23, %v9651_v3  ;;  %v510_v29 = vld [vmem:[#allocation2 + $0xc8] sm:$0xe0] }
 0x1c2   : > { %805 = vmatpush1.bf16.msra.mxu1 %v8286_v34  ;;  %2087 = vmatpush1.bf16.msra.mxu0 %v8287_v35  ;;  %v9679_v34 = vld [vmem:[#allocation2 + $0x50] sm:$0xff] }
 0x1c3   : > { %806 = vmatprep.subr.bf16.mxu1 %v8288_v36  ;;  %2088 = vmatprep.subr.bf16.mxu0 %v8290_v37  ;;  %v8342_v35 = vld [vmem:[%s9589_s20 + $0x10] ss:$8 sps:$4 sm:$0xff]   ;;  %v8350_v37 = vld [vmem:[%s9589_s20 + $0x24] ss:$8 sps:$4 sm:$0xff]  }
 0x1c4   : > { %v8345_v36 = vld [vmem:[%s9589_s20 + $0x510] ss:$8 sps:$4 sm:$0xff]  }
 0x1c6   : > { %807 = vmatpush1.bf16.msra.mxu1 %v8292_v38  ;;  %2089 = vmatpush1.bf16.msra.mxu0 %v8293_v39  ;;  %v8353_v38 = vld [vmem:[%s9589_s20 + $0x524] ss:$8 sps:$4 sm:$0xff]   ;;  %v8348_v39 = vld [vmem:[%s9589_s20 + $0x20] ss:$8 sps:$4 sm:$0xff]  }
 0x1c7   : > { %808 = vmatprep.subr.bf16.mxu1 %v8294_v40  ;;  %2090 = vmatprep.subr.bf16.mxu0 %v8296_v41  ;;  %v8351_v40 = vld [vmem:[%s9589_s20 + $0x520] ss:$8 sps:$4 sm:$0xff]   ;;  %v8356_v41 = vld [vmem:[%s9589_s20 + $0x34] ss:$8 sps:$4 sm:$0xff]  }
 0x1ca   : > { %809 = vmatpush1.bf16.msra.mxu1 %v8298_v42  ;;  %2091 = vmatpush1.bf16.msra.mxu0 %v8299_v43  ;;  %v541_v42 = vrot.slane %v9679_v34, 5  ;;  %v501_v43 = vld [vmem:[#allocation2 + $0x40] sm:$0xe0] }
 0x1cb   : > { %810 = vmatprep.subr.bf16.mxu1 %v8300_v44  ;;  %2092 = vmatprep.subr.bf16.mxu0 %v8302_v45  ;;  %v503_v44 = vld [vmem:[#allocation2 + $0x60] sm:$0x1f] }
 0x1cc   : > { %v9689_v45 = vld [vmem:[#allocation2 + $0x60] sm:$0xff] }
 0x1ce   : > { %811 = vmatpush1.bf16.msra.mxu1 %v8304_v52  ;;  %2093 = vmatpush1.bf16.msra.mxu0 %v8305_v53  ;;  %v8359_v52 = vld [vmem:[%s9589_s20 + $0x534] ss:$8 sps:$4 sm:$0xff]   ;;  %v540_v53 = vrot.slane %v501_v43, 5 }
 0x1cf   : > { %812 = vmatprep.subr.bf16.mxu1 %v8306_v54  ;;  %2094 = vmatprep.subr.bf16.mxu0 %v8308_v46  ;;  %v546_v54 = vrot.slane %v503_v44, 5  ;;  %v1870_v46 = vpack.c.bf16 %v9689_v45, %v9679_v34  ;;  %v9738_v43 = vld [vmem:[#allocation2 + $0xd0] sm:$0xff] }
 0x1d2   : > { %813 = vmatpush1.bf16.msra.mxu1 %v8310_v47  ;;  %2095 = vmatpush1.bf16.msra.mxu0 %v8311_v48  ;;  %v8354_v47 = vld [vmem:[%s9589_s20 + $0x30] ss:$8 sps:$4 sm:$0xff]  }
 0x1d3   : > { %814 = vmatprep.subr.bf16.mxu1 %v8312_v49  ;;  %2096 = vmatprep.subr.bf16.mxu0 %v8314_v55  ;;  %v8357_v48 = vld [vmem:[%s9589_s20 + $0x530] ss:$8 sps:$4 sm:$0xff]   ;;  %v8362_v49 = vld [vmem:[%s9589_s20 + $0x44] ss:$8 sps:$4 sm:$0xff]   ;;  %v542_v55 = vsel %vm529_vm0, %v540_v53, %v541_v42 }
 0x1d4   : > { %v511_v53 = vld [vmem:[#allocation2 + $0xe0] sm:$0x1f] }
 0x1d6   : > { %815 = vmatpush1.bf16.msra.mxu1 %v8316_v50  ;;  %2097 = vmatpush1.bf16.msra.mxu0 %v8317_v56  ;;  %v547_v50 = vsel %vm529_vm0, %v541_v42, %v546_v54  ;;  %v9699_v56 = vld [vmem:[#allocation2 + $0x98] sm:$0xff]  ;;  %v561_v54 = vrot.slane %v9738_v43, 5 }
 0x1d7   : > { %816 = vmatprep.subr.bf16.mxu1 %v8318_v51  ;;  %2098 = vmatprep.subr.bf16.mxu0 %v8320_v58  ;;  %v588_v51 = vpack.c.bf16 %v547_v50, %v542_v55  ;;  %v506_v58 = vld [vmem:[#allocation2 + $0x88] sm:$0xe0]  ;;  %v401_v50 = vrot.slane %v9579_v57, 4 }
 0x1d8   : > { %v553_v0 = vrot.slane %v506_v58, 5  ;;  %v8381_v58 = vld [vmem:[%s9589_s20 + $0x570] ss:$8 sps:$4 sm:$0xff]   ;;  %v8386_v57 = vld [vmem:[%s9589_s20 + $0x84] ss:$8 sps:$4 sm:$0xff]  }
 0x1da   : > { %817 = vmatpush1.bf16.msra.mxu1 %v8322_v60  ;;  %2099 = vmatpush1.bf16.msra.mxu0 %v8323_v61  ;;  %v508_v60 = vld [vmem:[#allocation2 + $0xa8] sm:$0x1f]  ;;  %v554_v61 = vrot.slane %v9699_v56, 5 }
 0x1db   : > { %818 = vmatprep.subr.bf16.mxu1 %v8324_v1  ;;  %2100 = vmatprep.subr.bf16.mxu0 %v8326_v2  ;;  %v558_v1 = vrot.slane %v508_v60, 5  ;;  %v9703_v2 = vld [vmem:[#allocation2 + $0xa8] sm:$0xff] }
 0x1dc   : > { %v1873_v5 = vpack.c.bf16 %v9703_v2, %v9699_v56  ;;  %v555_v8 = vsel %vm529_vm0, %v553_v0, %v554_v61 }
 0x1de   : > { %819 = vmatpush1.bf16.msra.mxu1 %v8328_v6  ;;  %2101 = vmatpush1.bf16.msra.mxu0 %v8329_v7  ;;  %v8363_v6 = vld [vmem:[%s9589_s20 + $0x540] ss:$8 sps:$4 sm:$0xff]   ;;  %v8368_v7 = vld [vmem:[%s9589_s20 + $0x54] ss:$8 sps:$4 sm:$0xff]  }
 0x1df   : > { %820 = vmatprep.subr.bf16.mxu1 %v8330_v9  ;;  %2102 = vmatprep.subr.bf16.mxu0 %v8332_v12  ;;  %v559_v9 = vsel %vm529_vm0, %v554_v61, %v558_v1  ;;  %v505_v12 = vld [vmem:[#allocation2 + $0x80] sm:$0xe0]  ;;  %v353_v1 = vld [vmem:[#allocation2 + $0x28] sm:$0xf] }
 0x1e0   : > { %v591_v11 = vpack.c.bf16 %v559_v9, %v555_v8  ;;  %v550_v18 = vrot.slane %v505_v12, 5  ;;  %v2162_v9 = vld [vmem:[#allocation2 + $0x18] sm:$0xfe] }
 0x1e2   : > { %821 = vmatpush1.bf16.msra.mxu1 %v8334_v16  ;;  %2103 = vmatpush1.bf16.msra.mxu0 %v8335_v17  ;;  %v9715_v16 = vld [vmem:[#allocation2 + $0xa0] sm:$0xff]  ;;  %v8371_v17 = vld [vmem:[%s9589_s20 + $0x554] ss:$8 sps:$4 sm:$0xff]  }
 0x1e3   : > { %1023 = vmatprep.subr.bf16.mxu1 %v8338_v19  ;;  %2470 = vmatprep.subr.bf16.mxu0 %v8341_v22  ;;  %v556_v19 = vrot.slane %v507_v14, 5  ;;  %v1872_v20 = vpack.c.bf16 %v9715_v16, %v9712_v10  ;;  %v8369_v22 = vld [vmem:[%s9589_s20 + $0x550] ss:$8 sps:$4 sm:$0xff]   ;;  %v2213_v14 = vrot.slane %v2162_v9, 1 }
 0x1e5   : > { %823 = vmatmul.mubr.bf16.vlgmr.msra.gmra.mrb[0].mxu1 %v586_v26  ;;  %2105 = vmatmul.mubr.bf16.vlgmr.msra.gmra.mrb[0].mxu0 %v1868_v27  ;;  %v557_v26 = vsel %vm529_vm0, %v551_v15, %v556_v19  ;;  %v9725_v27 = vld [vmem:[#allocation2 + $0xd8] sm:$0xff] }
 0x1e6   : > { %1024 = vmatpush1.bf16.msra.mxu1 %v8336_v24  ;;  %2471 = vmatpush1.bf16.msra.mxu0 %v8339_v25  ;;  %v8374_v24 = vld [vmem:[%s9589_s20 + $0x64] ss:$8 sps:$4 sm:$0xff]   ;;  %v552_v25 = vsel %vm529_vm0, %v550_v18, %v551_v15  ;;  %v8384_v15 = vld [vmem:[%s9589_s20 + $0x80] ss:$8 sps:$4 sm:$0xff]   ;;  %v8392_v18 = vld [vmem:[%s9589_s20 + $0x94] ss:$8 sps:$4 sm:$0xff]  }
 0x1e7   : > { %1025 = vmatprep.subr.bf16.mxu1 %v8344_v30  ;;  %2472 = vmatprep.subr.bf16.mxu0 %v8347_v31  ;;  %v590_v28 = vpack.c.bf16 %v557_v26, %v552_v25  ;;  %v512_v30 = vld [vmem:[#allocation2 + $0xe8] sm:$0x1f]  ;;  %v564_v31 = vrot.slane %v9725_v27, 5  ;;  %v8390_v25 = vld [vmem:[%s9589_s20 + $0x90] ss:$8 sps:$4 sm:$0xff]  }
 0x1e8   : > { %832 = vmatprep.mubr.bf16.mxu1 %v589_v32  ;;  %2114 = vmatprep.mubr.bf16.mxu0 %v1871_v33  ;;  %v8377_v32 = vld [vmem:[%s9589_s20 + $0x564] ss:$8 sps:$4 sm:$0xff]   ;;  %v563_v33 = vrot.slane %v510_v29, 5  ;;  %v8393_v26 = vld [vmem:[%s9589_s20 + $0x590] ss:$8 sps:$4 sm:$0xff]  }
 0x1e9   : > { %v8401_v29 = vld [vmem:[%s9589_s20 + $0x5a4] ss:$8 sps:$4 sm:$0xff]  }
 0x1ea   : > { %1026 = vmatpush1.bf16.msra.mxu1 %v8342_v35  ;;  %2473 = vmatpush1.bf16.msra.mxu0 %v8345_v36  ;;  %v568_v35 = vrot.slane %v512_v30, 5  ;;  %v9729_v36 = vld [vmem:[#allocation2 + $0xe8] sm:$0xff] }
 0x1eb   : > { %1027 = vmatprep.subr.bf16.mxu1 %v8350_v37  ;;  %2474 = vmatprep.subr.bf16.mxu0 %v8353_v38  ;;  %v8372_v37 = vld [vmem:[%s9589_s20 + $0x60] ss:$8 sps:$4 sm:$0xff]   ;;  %v1875_v38 = vpack.c.bf16 %v9729_v36, %v9725_v27 }
 0x1ec   : > { %v569_v42 = vsel %vm529_vm0, %v564_v31, %v568_v35  ;;  %v8396_v30 = vld [vmem:[%s9589_s20 + $0xa0] ss:$8 sps:$4 sm:$0xff]   ;;  %v8402_v35 = vld [vmem:[%s9589_s20 + $0xb0] ss:$8 sps:$4 sm:$0xff]  }
 0x1ed   : > { %2115 = vmatmul.mubr.bf16.gmra.mrb[4].mxu0 %v1870_v46  ;;  %833 = vmatmul.mubr.bf16.gmra.mrb[4].mxu1 %v588_v51  ;;  %v9741_v46 = vld [vmem:[#allocation2 + $0xe0] sm:$0xff]  ;;  %v8378_v51 = vld [vmem:[%s9589_s20 + $0x70] ss:$8 sps:$4 sm:$0xff]  }
 0x1ee   : > { %1028 = vmatpush1.bf16.msra.mxu1 %v8348_v39  ;;  %2475 = vmatpush1.bf16.msra.mxu0 %v8351_v40  ;;  %v8375_v39 = vld [vmem:[%s9589_s20 + $0x560] ss:$8 sps:$4 sm:$0xff]   ;;  %v8380_v40 = vld [vmem:[%s9589_s20 + $0x74] ss:$8 sps:$4 sm:$0xff]   ;;  %v1874_v55 = vpack.c.bf16 %v9741_v46, %v9738_v43 }
 0x1ef   : > { %1029 = vmatprep.subr.bf16.mxu1 %v8356_v41  ;;  %2476 = vmatprep.subr.bf16.mxu0 %v8359_v52  ;;  %v565_v41 = vsel %vm529_vm0, %v563_v33, %v564_v31  ;;  %v509_v52 = vld [vmem:[#allocation2 + $0xc0] sm:$0xe0]  ;;  %v8399_v31 = vld [vmem:[%s9589_s20 + $0x5a0] ss:$8 sps:$4 sm:$0xff]   ;;  %v8407_v33 = vld [vmem:[%s9589_s20 + $0x5b4] ss:$8 sps:$4 sm:$0xff]  }
 0x1f0   : > { %842 = vmatprep.mubr.bf16.mxu1 %v591_v11  ;;  %2124 = vmatprep.mubr.bf16.mxu0 %v1873_v5  ;;  %v593_v44 = vpack.c.bf16 %v569_v42, %v565_v41  ;;  %v2214_v5 = vrot.slane %v9582_v63, 1  ;;  %v2166_v11 = vld [vmem:[#allocation2 + $0x38] sm:$0x1]  ;;  %v8411_v41 = vld [vmem:[%s9589_s20 + $0x5c0] ss:$8 sps:$4 sm:$0xff]  }
 0x1f1   : > { %v2218_v63 = vrot.slane %v2166_v11, 1  ;;  %v8416_v42 = vld [vmem:[%s9589_s20 + $0xd4] ss:$8 sps:$4 sm:$0xff]   ;;  %v359_v11 = vld [vmem:[#allocation2 + $0x68] sm:$0xf] }
 0x1f2   : > { %1030 = vmatpush1.bf16.msra.mxu1 %v8354_v47  ;;  %2477 = vmatpush1.bf16.msra.mxu0 %v8357_v48  ;;  %v8383_v47 = vld [vmem:[%s9589_s20 + $0x574] ss:$8 sps:$4 sm:$0xff]   ;;  %v560_v48 = vrot.slane %v509_v52, 5  ;;  %v8414_v52 = vld [vmem:[%s9589_s20 + $0xd0] ss:$8 sps:$4 sm:$0xff]  }
 0x1f3   : > { %1031 = vmatprep.subr.bf16.mxu1 %v8362_v49  ;;  %2478 = vmatprep.subr.bf16.mxu0 %v8365_v62  ;;  %v566_v49 = vrot.slane %v511_v53, 5  ;;  %v349_v62 = vld [vmem:[#allocation2 + $0x8] sm:$0xf0]  ;;  %v8417_v53 = vld [vmem:[%s9589_s20 + $0x5d0] ss:$8 sps:$4 sm:$0xff]  }
 0x1f4   : > { %v562_v60 = vsel %vm529_vm0, %v560_v48, %v561_v54  ;;  %v2161_v48 = vld [vmem:[#allocation2 + $0x10] sm:$0xfe] }
 0x1f5   : > { %2125 = vmatmul.mubr.bf16.gmra.mrb[8].mxu0 %v1872_v20  ;;  %843 = vmatmul.mubr.bf16.gmra.mrb[8].mxu1 %v590_v28  ;;  %v567_v61 = vsel %vm529_vm0, %v561_v54, %v566_v49  ;;  %v8395_v20 = vld [vmem:[%s9589_s20 + $0x594] ss:$8 sps:$4 sm:$0xff]   ;;  %v8398_v28 = vld [vmem:[%s9589_s20 + $0xa4] ss:$8 sps:$4 sm:$0xff]   ;;  %v2165_v49 = vld [vmem:[#allocation2 + $0x30] sm:$0x1] }
 0x1f6   : > { %1032 = vmatpush1.bf16.msra.mxu1 %v8360_v4  ;;  %2479 = vmatpush1.bf16.msra.mxu0 %v8363_v6  ;;  %v592_v0 = vpack.c.bf16 %v567_v61, %v562_v60  ;;  %v400_v4 = vrot.slane %v349_v62, 4  ;;  %v8389_v6 = vld [vmem:[%s9589_s20 + $0x584] ss:$8 sps:$4 sm:$0xff]   ;;  %v2211_v61 = vrot.slane %v9658_v13, 1  ;;  %v411_v62 = vrot.slane %v9651_v3, 4 }
 0x1f7   : > { %1033 = vmatprep.subr.bf16.mxu1 %v8368_v7  ;;  %2480 = vmatprep.subr.bf16.mxu0 %v8371_v17  ;;  %v405_v7 = vrot.slane %v353_v1, 4  ;;  %v8387_v17 = vld [vmem:[%s9589_s20 + $0x580] ss:$8 sps:$4 sm:$0xff]   ;;  %v348_v54 = vld [vmem:[#allocation2] sm:$0xf0]  ;;  %v2210_v1 = vrot.slane %v2161_v48, 1 }
 0x1f8   : > { %852 = vmatprep.mubr.bf16.mxu1 %v593_v44  ;;  %2134 = vmatprep.mubr.bf16.mxu0 %v1875_v38  ;;  %v402_v8 = vsel %vm396_vm1, %v400_v4, %v401_v50  ;;  %v8410_v38 = vld [vmem:[%s9589_s20 + $0xc4] ss:$8 sps:$4 sm:$0xff]   ;;  %v8419_v44 = vld [vmem:[%s9589_s20 + $0x5d4] ss:$8 sps:$4 sm:$0xff]   ;;  %v397_v60 = vrot.slane %v348_v54, 4  ;;  %v2216_v4 = vrot.slane %v2165_v49, 1 }
 0x1f9   : > { %v406_v12 = vsel %vm396_vm1, %v401_v50, %v405_v7  ;;  %v8425_v50 = vld [vmem:[%s9589_s20 + $0x5e4] ss:$8 sps:$4 sm:$0xff]   ;;  %v8428_v13 = vld [vmem:[%s9589_s20 + $0xf4] ss:$8 sps:$4 sm:$0xff]   ;;  %v418_v48 = vrot.slane %v9712_v10, 4 }
 0x1fa   : > { %1034 = vmatpush1.bf16.msra.mxu1 %v8366_v21  ;;  %2481 = vmatpush1.bf16.msra.mxu0 %v8369_v22  ;;  %v454_v19 = vpack.c.bf16 %v406_v12, %v402_v8  ;;  %v2215_v21 = vsel %vm2209_vm2, %v2213_v14, %v2214_v5  ;;  %v2219_v22 = vsel %vm2209_vm2, %v2214_v5, %v2218_v63  ;;  %v2224_v5 = vrot.slane %v9667_v23, 1  ;;  %v8431_v3 = vld [vmem:[%s9589_s20 + $0x5f4] ss:$8 sps:$4 sm:$0xff]   ;;  %v355_v8 = vld [vmem:[#allocation2 + $0x48] sm:$0xf0] }
 0x1fb   : > { %1035 = vmatprep.subr.bf16.mxu1 %v8374_v24  ;;  %2482 = vmatprep.subr.bf16.mxu0 %v8377_v32  ;;  %v2267_v24 = vpack.c.bf16 %v2219_v22, %v2215_v21  ;;  %v8404_v32 = vld [vmem:[%s9589_s20 + $0xb4] ss:$8 sps:$4 sm:$0xff]   ;;  %v410_v23 = vrot.slane %v355_v8, 4  ;;  %v2221_v12 = vrot.slane %v9689_v45, 1  ;;  %v8426_v14 = vld [vmem:[%s9589_s20 + $0xf0] ss:$8 sps:$4 sm:$0xff]  }
 0x1fc   : > { %v8429_v63 = vld [vmem:[%s9589_s20 + $0x5f0] ss:$8 sps:$4 sm:$0xff]   ;;  %v421_v21 = vrot.slane %v9699_v56, 4  ;;  %v8434_v22 = vld [vmem:[%s9589_s20 + $0x204] ss:$8 sps:$4 sm:$0xff]  }
 0x1fd   : > { %2135 = vmatmul.mubr.bf16.gmra.mrb[12].mxu0 %v1874_v55  ;;  %853 = vmatmul.mubr.bf16.gmra.mrb[12].mxu1 %v592_v0  ;;  %v8422_v55 = vld [vmem:[%s9589_s20 + $0xe4] ss:$8 sps:$4 sm:$0xff]   ;;  %v8443_v54 = vld [vmem:[%s9589_s20 + $0x614] ss:$8 sps:$4 sm:$0xff]   ;;  %v8438_v49 = vld [vmem:[%s9589_s20 + $0x210] ss:$8 sps:$4 sm:$0xff]  }
 0x1fe   : > { %1036 = vmatpush1.bf16.msra.mxu1 %v8372_v37  ;;  %2483 = vmatpush1.bf16.msra.mxu0 %v8375_v39  ;;  %v8405_v37 = vld [vmem:[%s9589_s20 + $0x5b0] ss:$8 sps:$4 sm:$0xff]   ;;  %v8413_v39 = vld [vmem:[%s9589_s20 + $0x5c4] ss:$8 sps:$4 sm:$0xff]   ;;  %v8455_v56 = vld [vmem:[%s9589_s20 + $0x634] ss:$8 sps:$4 sm:$0xff]  }
 0x1ff   : > { %1037 = vmatprep.subr.bf16.mxu1 %v8380_v40  ;;  %2484 = vmatprep.subr.bf16.mxu0 %v8383_v47  ;;  %v8408_v40 = vld [vmem:[%s9589_s20 + $0xc0] ss:$8 sps:$4 sm:$0xff]   ;;  %v8437_v45 = vld [vmem:[%s9589_s20 + $0x604] ss:$8 sps:$4 sm:$0xff]  }
 0x200   : > { %1055 = vmatprep.mubr.bf16.mxu1 %v454_v19  ;;  %2502 = vmatprep.mubr.bf16.mxu0 %v2267_v24  ;;  %v352_v47 = vld [vmem:[#allocation2 + $0x20] sm:$0xf]  ;;  %v2168_v19 = vld [vmem:[#allocation2 + $0x58] sm:$0xfe] }
 0x201   : > { %v403_v0 = vrot.slane %v352_v47, 4  ;;  %v2223_v24 = vrot.slane %v2168_v19, 1  ;;  %v2234_v47 = vrot.slane %v9703_v2, 1 }
 0x202   : > { %1038 = vmatpush1.bf16.msra.mxu1 %v8378_v51  ;;  %2485 = vmatpush1.bf16.msra.mxu0 %v8381_v58  ;;  %v398_v51 = vrot.slane %v9645_v59, 4  ;;  %v8420_v58 = vld [vmem:[%s9589_s20 + $0xe0] ss:$8 sps:$4 sm:$0xff]   ;;  %v408_v59 = vrot.slane %v9679_v34, 4 }
 0x203   : > { %1039 = vmatprep.subr.bf16.mxu1 %v8386_v57  ;;  %2486 = vmatprep.subr.bf16.mxu0 %v8389_v6  ;;  %v8423_v57 = vld [vmem:[%s9589_s20 + $0x5e0] ss:$8 sps:$4 sm:$0xff]   ;;  %v9789_v6 = vld [vmem:[#allocation2 + $0x18] sm:$0xff] }
 0x204   : > { %v1133_v7 = vrot.slane %v9789_v6, 6  ;;  %v399_v9 = vsel %vm396_vm1, %v397_v60, %v398_v51  ;;  %v404_v34 = vsel %vm396_vm1, %v398_v51, %v403_v0  ;;  %v361_v60 = vld [vmem:[#allocation2 + $0x88] sm:$0xf0] }
 0x206   : > { %1040 = vmatpush1.bf16.msra.mxu1 %v8384_v15  ;;  %2487 = vmatpush1.bf16.msra.mxu0 %v8387_v17  ;;  %v2212_v15 = vsel %vm2209_vm2, %v2210_v1, %v2211_v61  ;;  %v2217_v17 = vsel %vm2209_vm2, %v2211_v61, %v2216_v4  ;;  %v365_v61 = vld [vmem:[#allocation2 + $0xa8] sm:$0xf]  ;;  %v420_v1 = vrot.slane %v361_v60, 4  ;;  %v370_v60 = vld [vmem:[#allocation2 + $0xe0] sm:$0xf] }
 0x207   : > { %1041 = vmatprep.subr.bf16.mxu1 %v8392_v18  ;;  %2488 = vmatprep.subr.bf16.mxu0 %v8395_v20  ;;  %v415_v18 = vrot.slane %v359_v11, 4  ;;  %v2172_v20 = vld [vmem:[#allocation2 + $0x78] sm:$0x1]  ;;  %v425_v4 = vrot.slane %v365_v61, 4  ;;  %v8447_v11 = vld [vmem:[%s9589_s20 + $0x620] ss:$8 sps:$4 sm:$0xff]  }
 0x208   : > { %v2179_v61 = vld [vmem:[#allocation2 + $0xd0] sm:$0xfe] }
 0x20a   : > { %1042 = vmatpush1.bf16.msra.mxu1 %v8390_v25  ;;  %2489 = vmatpush1.bf16.msra.mxu0 %v8393_v26  ;;  %v2228_v25 = vrot.slane %v2172_v20, 1  ;;  %v8432_v26 = vld [vmem:[%s9589_s20 + $0x200] ss:$8 sps:$4 sm:$0xff]  }
 0x20b   : > { %1043 = vmatprep.subr.bf16.mxu1 %v8398_v28  ;;  %2490 = vmatprep.subr.bf16.mxu0 %v8401_v29  ;;  %v453_v28 = vpack.c.bf16 %v404_v34, %v399_v9  ;;  %v2266_v29 = vpack.c.bf16 %v2217_v17, %v2212_v15  ;;  %v8444_v9 = vld [vmem:[%s9589_s20 + $0x220] ss:$8 sps:$4 sm:$0xff]   ;;  %v8452_v15 = vld [vmem:[%s9589_s20 + $0x234] ss:$8 sps:$4 sm:$0xff]   ;;  %v426_v17 = vsel %vm396_vm1, %v421_v21, %v425_v4 }
 0x20c   : > { %v364_v34 = vld [vmem:[#allocation2 + $0xa0] sm:$0xf]  ;;  %v8464_v4 = vld [vmem:[%s9589_s20 + $0x254] ss:$8 sps:$4 sm:$0xff]  }
 0x20e   : > { %1044 = vmatpush1.bf16.msra.mxu1 %v8396_v30  ;;  %2491 = vmatpush1.bf16.msra.mxu0 %v8399_v31  ;;  %v412_v30 = vsel %vm396_vm1, %v410_v23, %v411_v62  ;;  %v416_v31 = vsel %vm396_vm1, %v411_v62, %v415_v18  ;;  %v8441_v62 = vld [vmem:[%s9589_s20 + $0x610] ss:$8 sps:$4 sm:$0xff]  }
 0x20f   : > { %1045 = vmatprep.subr.bf16.mxu1 %v8404_v32  ;;  %2492 = vmatprep.subr.bf16.mxu0 %v8407_v33  ;;  %v354_v32 = vld [vmem:[#allocation2 + $0x40] sm:$0xf0]  ;;  %v358_v33 = vld [vmem:[#allocation2 + $0x60] sm:$0xf] }
 0x212   : > { %1046 = vmatpush1.bf16.msra.mxu1 %v8402_v35  ;;  %2493 = vmatpush1.bf16.msra.mxu0 %v8405_v37  ;;  %v2167_v35 = vld [vmem:[#allocation2 + $0x50] sm:$0xfe]  ;;  %v2225_v37 = vsel %vm2209_vm2, %v2223_v24, %v2224_v5  ;;  %v423_v24 = vrot.slane %v364_v34, 4  ;;  %v1099_v34 = vld [vmem:[#allocation2 + $0x28] sm:$0x3f] }
 0x213   : > { %1047 = vmatprep.subr.bf16.mxu1 %v8410_v38  ;;  %2494 = vmatprep.subr.bf16.mxu0 %v8413_v39  ;;  %v2229_v38 = vsel %vm2209_vm2, %v2224_v5, %v2228_v25  ;;  %v407_v39 = vrot.slane %v354_v32, 4  ;;  %v8446_v5 = vld [vmem:[%s9589_s20 + $0x224] ss:$8 sps:$4 sm:$0xff]  }
 0x215   : > { %v409_v51 = vsel %vm396_vm1, %v407_v39, %v408_v59  ;;  %v428_v39 = vrot.slane %v9738_v43, 4  ;;  %v2241_v43 = vrot.slane %v9741_v46, 1 }
 0x216   : > { %1048 = vmatpush1.bf16.msra.mxu1 %v8408_v40  ;;  %2495 = vmatpush1.bf16.msra.mxu0 %v8411_v41  ;;  %v413_v40 = vrot.slane %v358_v33, 4  ;;  %v2171_v41 = vld [vmem:[#allocation2 + $0x70] sm:$0x1] }
 0x217   : > { %1049 = vmatprep.subr.bf16.mxu1 %v8416_v42  ;;  %2496 = vmatprep.subr.bf16.mxu0 %v8419_v44  ;;  %v8435_v42 = vld [vmem:[%s9589_s20 + $0x600] ss:$8 sps:$4 sm:$0xff]   ;;  %v8440_v44 = vld [vmem:[%s9589_s20 + $0x214] ss:$8 sps:$4 sm:$0xff]  }
 0x21a   : > { %1050 = vmatpush1.bf16.msra.mxu1 %v8414_v52  ;;  %2497 = vmatpush1.bf16.msra.mxu0 %v8417_v53  ;;  %v2220_v52 = vrot.slane %v2167_v35, 1  ;;  %v2226_v53 = vrot.slane %v2171_v41, 1  ;;  %v367_v35 = vld [vmem:[#allocation2 + $0xc8] sm:$0xf0] }
 0x21b   : > { %1051 = vmatprep.subr.bf16.mxu1 %v8422_v55  ;;  %2498 = vmatprep.subr.bf16.mxu0 %v8425_v50  ;;  %v456_v55 = vpack.c.bf16 %v416_v31, %v412_v30  ;;  %v2269_v50 = vpack.c.bf16 %v2229_v38, %v2225_v37  ;;  %v8450_v30 = vld [vmem:[%s9589_s20 + $0x230] ss:$8 sps:$4 sm:$0xff]   ;;  %v371_v37 = vld [vmem:[#allocation2 + $0xe8] sm:$0xf]  ;;  %v430_v38 = vrot.slane %v367_v35, 4 }
 0x21c   : > { %v2222_v2 = vsel %vm2209_vm2, %v2220_v52, %v2221_v12  ;;  %v2227_v0 = vsel %vm2209_vm2, %v2221_v12, %v2226_v53  ;;  %v422_v12 = vsel %vm396_vm1, %v420_v1, %v421_v21  ;;  %v431_v21 = vrot.slane %v9725_v27, 4  ;;  %v8453_v31 = vld [vmem:[%s9589_s20 + $0x630] ss:$8 sps:$4 sm:$0xff]   ;;  %v8458_v27 = vld [vmem:[%s9589_s20 + $0x244] ss:$8 sps:$4 sm:$0xff]  }
 0x21d   : > { %v458_v32 = vpack.c.bf16 %v426_v17, %v422_v12  ;;  %v2180_v52 = vld [vmem:[#allocation2 + $0xd8] sm:$0xfe]  ;;  %v2184_v53 = vld [vmem:[#allocation2 + $0xf8] sm:$0x1]  ;;  %v2183_v1 = vld [vmem:[#allocation2 + $0xf0] sm:$0x1] }
 0x21e   : > { %1052 = vmatpush1.bf16.msra.mxu1 %v8420_v58  ;;  %2499 = vmatpush1.bf16.msra.mxu0 %v8423_v57  ;;  %v414_v58 = vsel %vm396_vm1, %v408_v59, %v413_v40  ;;  %v2174_v57 = vld [vmem:[#allocation2 + $0x98] sm:$0xfe]  ;;  %v2178_v59 = vld [vmem:[#allocation2 + $0xb8] sm:$0x1]  ;;  %v424_v40 = vsel %vm396_vm1, %v418_v48, %v423_v24  ;;  %v2248_v10 = vrot.slane %v2184_v53, 1 }
 0x21f   : > { %1053 = vmatprep.subr.bf16.mxu1 %v8428_v13  ;;  %2500 = vmatprep.subr.bf16.mxu0 %v8431_v3  ;;  %v8449_v13 = vld [vmem:[%s9589_s20 + $0x624] ss:$8 sps:$4 sm:$0xff]   ;;  %v2233_v3 = vrot.slane %v2174_v57, 1  ;;  %v2238_v8 = vrot.slane %v2178_v59, 1  ;;  %v455_v23 = vpack.c.bf16 %v414_v58, %v409_v51  ;;  %v2240_v57 = vrot.slane %v2179_v61, 1 }
 0x220   : > { %v366_v58 = vld [vmem:[#allocation2 + $0xc0] sm:$0xf0]  ;;  %v2246_v59 = vrot.slane %v2183_v1, 1  ;;  %v2562_v24 = vld [vmem:[#allocation2 + $0x38] sm:$0x3] }
 0x221   : > { %v2235_v18 = vsel %vm2209_vm2, %v2233_v3, %v2234_v47  ;;  %v2239_v19 = vsel %vm2209_vm2, %v2234_v47, %v2238_v8  ;;  %v8459_v47 = vld [vmem:[%s9589_s20 + $0x640] ss:$8 sps:$4 sm:$0xff]   ;;  %v2242_v17 = vsel %vm2209_vm2, %v2240_v57, %v2241_v43  ;;  %v8489_v53 = vld [vmem:[%s9589_s20 + $0x690] ss:$8 sps:$4 sm:$0xff]   ;;  %v8518_v1 = vld [vmem:[%s9589_s20 + $0x2e4] ss:$8 sps:$4 sm:$0xff]  }
 0x222   : > { %1054 = vmatpush1.bf16.msra.mxu1 %v8426_v14  ;;  %2501 = vmatpush1.bf16.msra.mxu0 %v8429_v63  ;;  %v2268_v14 = vpack.c.bf16 %v2227_v0, %v2222_v2  ;;  %v360_v63 = vld [vmem:[#allocation2 + $0x80] sm:$0xf0]  ;;  %v2271_v33 = vpack.c.bf16 %v2239_v19, %v2235_v18  ;;  %v427_v2 = vrot.slane %v366_v58, 4  ;;  %v433_v0 = vrot.slane %v370_v60, 4  ;;  %v8504_v60 = vld [vmem:[%s9589_s20 + $0x2c0] ss:$8 sps:$4 sm:$0xff]  }
 0x223   : > { %1389 = vmatprep.subr.bf16.mxu1 %v8434_v22  ;;  %2852 = vmatprep.subr.bf16.mxu0 %v8437_v45  ;;  %v417_v20 = vrot.slane %v360_v63, 4  ;;  %v2173_v22 = vld [vmem:[#allocation2 + $0x90] sm:$0xfe]  ;;  %v2177_v45 = vld [vmem:[#allocation2 + $0xb0] sm:$0x1]  ;;  %v2247_v18 = vsel %vm2209_vm2, %v2241_v43, %v2246_v59 }
 0x224   : > { %v2230_v25 = vrot.slane %v2173_v22, 1  ;;  %v434_v12 = vsel %vm396_vm1, %v428_v39, %v433_v0  ;;  %v1097_v63 = vld [vmem:[#allocation2 + $0x8] sm:$0xc0]  ;;  %v8507_v61 = vld [vmem:[%s9589_s20 + $0x6c0] ss:$8 sps:$4 sm:$0xff]   ;;  %v9910_v59 = vld [vmem:[#allocation2 + $0x10] sm:$0xff] }
 0x225   : > { %1056 = vmatmul.mubr.bf16.vlgmr.msra.gmra.mrb[0].mxu1 %v453_v28  ;;  %2503 = vmatmul.mubr.bf16.vlgmr.msra.gmra.mrb[0].mxu0 %v2266_v29  ;;  %v2236_v28 = vrot.slane %v2177_v45, 1  ;;  %v2244_v29 = vrot.slane %v9729_v36, 1  ;;  %v8461_v36 = vld [vmem:[%s9589_s20 + $0x644] ss:$8 sps:$4 sm:$0xff]   ;;  %v1132_v19 = vrot.slane %v1097_v63, 6 }
 0x226   : > { %1390 = vmatpush1.bf16.msra.mxu1 %v8432_v26  ;;  %2853 = vmatpush1.bf16.msra.mxu0 %v8435_v42  ;;  %v2231_v26 = vrot.slane %v9715_v16, 1  ;;  %v419_v16 = vsel %vm396_vm1, %v417_v20, %v418_v48  ;;  %v1137_v20 = vrot.slane %v1099_v34, 6  ;;  %v8473_v22 = vld [vmem:[%s9589_s20 + $0x664] ss:$8 sps:$4 sm:$0xff]   ;;  %v2560_v45 = vld [vmem:[#allocation2 + $0x18] sm:$0xfc] }
 0x227   : > { %1391 = vmatprep.subr.bf16.mxu1 %v8440_v44  ;;  %2854 = vmatprep.subr.bf16.mxu0 %v8443_v54  ;;  %v435_v44 = vrot.slane %v371_v37, 4  ;;  %v8456_v54 = vld [vmem:[%s9589_s20 + $0x240] ss:$8 sps:$4 sm:$0xff]   ;;  %v8494_v43 = vld [vmem:[%s9589_s20 + $0x2a4] ss:$8 sps:$4 sm:$0xff]  }
 0x228   : > { %1065 = vmatprep.mubr.bf16.mxu1 %v456_v55  ;;  %2512 = vmatprep.mubr.bf16.mxu0 %v2269_v50  ;;  %v2232_v41 = vsel %vm2209_vm2, %v2230_v25, %v2231_v26  ;;  %v2237_v42 = vsel %vm2209_vm2, %v2231_v26, %v2236_v28  ;;  %v457_v55 = vpack.c.bf16 %v424_v40, %v419_v16  ;;  %v2595_v25 = vrot.slane %v2560_v45, 2  ;;  %v8479_v16 = vld [vmem:[%s9589_s20 + $0x674] ss:$8 sps:$4 sm:$0xff]   ;;  %v8480_v40 = vld [vmem:[%s9589_s20 + $0x280] ss:$8 sps:$4 sm:$0xff]  }
 0x229   : > { %v2270_v48 = vpack.c.bf16 %v2237_v42, %v2232_v41  ;;  %v432_v50 = vsel %vm396_vm1, %v430_v38, %v431_v21  ;;  %v436_v51 = vsel %vm396_vm1, %v431_v21, %v435_v44  ;;  %v2600_v26 = vrot.slane %v2562_v24, 2  ;;  %v8483_v41 = vld [vmem:[%s9589_s20 + $0x680] ss:$8 sps:$4 sm:$0xff]   ;;  %v8488_v42 = vld [vmem:[%s9589_s20 + $0x294] ss:$8 sps:$4 sm:$0xff]  }
 0x22a   : > { %1392 = vmatpush1.bf16.msra.mxu1 %v8438_v49  ;;  %2855 = vmatpush1.bf16.msra.mxu0 %v8441_v62  ;;  %v2243_v49 = vrot.slane %v2180_v52, 1  ;;  %v2249_v62 = vsel %vm2209_vm2, %v2244_v29, %v2248_v10  ;;  %v460_v3 = vpack.c.bf16 %v436_v51, %v432_v50  ;;  %v1134_v21 = vsel %vm1128_vm3, %v1132_v19, %v1133_v7  ;;  %v8491_v44 = vld [vmem:[%s9589_s20 + $0x694] ss:$8 sps:$4 sm:$0xff]   ;;  %v8486_v52 = vld [vmem:[%s9589_s20 + $0x290] ss:$8 sps:$4 sm:$0xff]  }
 0x22b   : > { %1393 = vmatprep.subr.bf16.mxu1 %v8446_v5  ;;  %2856 = vmatprep.subr.bf16.mxu0 %v8449_v13  ;;  %v8467_v5 = vld [vmem:[%s9589_s20 + $0x654] ss:$8 sps:$4 sm:$0xff]   ;;  %v8462_v13 = vld [vmem:[%s9589_s20 + $0x250] ss:$8 sps:$4 sm:$0xff]   ;;  %v8506_v51 = vld [vmem:[%s9589_s20 + $0x2c4] ss:$8 sps:$4 sm:$0xff]  }
 0x22c   : > { %v2245_v46 = vsel %vm2209_vm2, %v2243_v49, %v2244_v29  ;;  %v1138_v29 = vsel %vm1128_vm3, %v1133_v7, %v1137_v20  ;;  %v8474_v7 = vld [vmem:[%s9589_s20 + $0x270] ss:$8 sps:$4 sm:$0xff]   ;;  %v8495_v49 = vld [vmem:[%s9589_s20 + $0x6a0] ss:$8 sps:$4 sm:$0xff]   ;;  %v8500_v10 = vld [vmem:[%s9589_s20 + $0x2b4] ss:$8 sps:$4 sm:$0xff]  }
 0x22d   : > { %1066 = vmatmul.mubr.bf16.gmra.mrb[4].mxu1 %v455_v23  ;;  %2513 = vmatmul.mubr.bf16.gmra.mrb[4].mxu0 %v2268_v14  ;;  %v2273_v8 = vpack.c.bf16 %v2249_v62, %v2245_v46  ;;  %v8465_v23 = vld [vmem:[%s9589_s20 + $0x650] ss:$8 sps:$4 sm:$0xff]   ;;  %v429_v14 = vsel %vm396_vm1, %v427_v2, %v428_v39  ;;  %v1186_v37 = vpack.c.bf16 %v1138_v29, %v1134_v21  ;;  %v8509_v58 = vld [vmem:[%s9589_s20 + $0x6c4] ss:$8 sps:$4 sm:$0xff]   ;;  %v8512_v46 = vld [vmem:[%s9589_s20 + $0x2d4] ss:$8 sps:$4 sm:$0xff]  }
 0x22e   : > { %1394 = vmatpush1.bf16.msra.mxu1 %v8444_v9  ;;  %2857 = vmatpush1.bf16.msra.mxu0 %v8447_v11  ;;  %v9860_v9 = vld [vmem:[#allocation2 + $0x28] sm:$0xff]  ;;  %v459_v28 = vpack.c.bf16 %v434_v12, %v429_v14  ;;  %v8477_v39 = vld [vmem:[%s9589_s20 + $0x670] ss:$8 sps:$4 sm:$0xff]   ;;  %v8515_v62 = vld [vmem:[%s9589_s20 + $0x6d4] ss:$8 sps:$4 sm:$0xff]  }
 0x22f   : > { %1395 = vmatprep.subr.bf16.mxu1 %v8452_v15  ;;  %2858 = vmatprep.subr.bf16.mxu0 %v8455_v56  ;;  %v2596_v11 = vrot.slane %v9860_v9, 2  ;;  %v8470_v15 = vld [vmem:[%s9589_s20 + $0x264] ss:$8 sps:$4 sm:$0xff]   ;;  %v2272_v56 = vpack.c.bf16 %v2247_v18, %v2242_v17  ;;  %v8501_v50 = vld [vmem:[%s9589_s20 + $0x6b0] ss:$8 sps:$4 sm:$0xff]  }
 0x230   : > { %1075 = vmatprep.mubr.bf16.mxu1 %v458_v32  ;;  %2522 = vmatprep.mubr.bf16.mxu0 %v2271_v33  ;;  %v8476_v32 = vld [vmem:[%s9589_s20 + $0x274] ss:$8 sps:$4 sm:$0xff]   ;;  %v8510_v2 = vld [vmem:[%s9589_s20 + $0x2d0] ss:$8 sps:$4 sm:$0xff]   ;;  %v1098_v57 = vld [vmem:[#allocation2 + $0x20] sm:$0x3f] }
 0x231   : > { %v2597_v33 = vsel %vm2591_vm4, %v2595_v25, %v2596_v11  ;;  %v2601_v35 = vsel %vm2591_vm4, %v2596_v11, %v2600_v26  ;;  %v8513_v0 = vld [vmem:[%s9589_s20 + $0x6d0] ss:$8 sps:$4 sm:$0xff]   ;;  %v8516_v11 = vld [vmem:[%s9589_s20 + $0x2e0] ss:$8 sps:$4 sm:$0xff]   ;;  %v1101_v14 = vld [vmem:[#allocation2 + $0x48] sm:$0xc0] }
 0x232   : > { %1396 = vmatpush1.bf16.msra.mxu1 %v8450_v30  ;;  %2859 = vmatpush1.bf16.msra.mxu0 %v8453_v31  ;;  %v8468_v30 = vld [vmem:[%s9589_s20 + $0x260] ss:$8 sps:$4 sm:$0xff]   ;;  %v2649_v38 = vpack.c.bf16 %v2601_v35, %v2597_v33  ;;  %v2564_v63 = vld [vmem:[#allocation2 + $0x58] sm:$0xfc]  ;;  %v2566_v19 = vld [vmem:[#allocation2 + $0x78] sm:$0x3] }
 0x233   : > { %1397 = vmatprep.subr.bf16.mxu1 %v8458_v27  ;;  %2860 = vmatprep.subr.bf16.mxu0 %v8461_v36  ;;  %v8471_v31 = vld [vmem:[%s9589_s20 + $0x660] ss:$8 sps:$4 sm:$0xff]   ;;  %v8482_v27 = vld [vmem:[%s9589_s20 + $0x284] ss:$8 sps:$4 sm:$0xff]   ;;  %v8524_v34 = vld [vmem:[%s9589_s20 + $0x2f4] ss:$8 sps:$4 sm:$0xff]  }
 0x234   : > { %v8485_v36 = vld [vmem:[%s9589_s20 + $0x684] ss:$8 sps:$4 sm:$0xff]   ;;  %v1135_v20 = vrot.slane %v1098_v57, 6  ;;  %v9919_v24 = vld [vmem:[#allocation2 + $0x58] sm:$0xff]  ;;  %v2605_v21 = vrot.slane %v2564_v63, 2  ;;  %v2610_v33 = vrot.slane %v2566_v19, 2 }
 0x235   : > { %1076 = vmatmul.mubr.bf16.gmra.mrb[8].mxu1 %v457_v55  ;;  %2523 = vmatmul.mubr.bf16.gmra.mrb[8].mxu0 %v2270_v48  ;;  %v8503_v55 = vld [vmem:[%s9589_s20 + $0x6b4] ss:$8 sps:$4 sm:$0xff]   ;;  %v8498_v48 = vld [vmem:[%s9589_s20 + $0x2b0] ss:$8 sps:$4 sm:$0xff]   ;;  %v1103_v12 = vld [vmem:[#allocation2 + $0x68] sm:$0x3f] }
 0x236   : > { %1398 = vmatpush1.bf16.msra.mxu1 %v8456_v54  ;;  %2861 = vmatpush1.bf16.msra.mxu0 %v8459_v47  ;;  %v8497_v54 = vld [vmem:[%s9589_s20 + $0x6a4] ss:$8 sps:$4 sm:$0xff]   ;;  %v8492_v47 = vld [vmem:[%s9589_s20 + $0x2a0] ss:$8 sps:$4 sm:$0xff]   ;;  %v1143_v25 = vrot.slane %v9919_v24, 6 }
 0x237   : > { %1399 = vmatprep.subr.bf16.mxu1 %v8464_v4  ;;  %2862 = vmatprep.subr.bf16.mxu0 %v8467_v5  ;;  %v8521_v4 = vld [vmem:[%s9589_s20 + $0x6e4] ss:$8 sps:$4 sm:$0xff]   ;;  %v8527_v26 = vld [vmem:[%s9589_s20 + $0x6f4] ss:$8 sps:$4 sm:$0xff]  }
 0x238   : > { %1085 = vmatprep.mubr.bf16.mxu1 %v460_v3  ;;  %2532 = vmatprep.mubr.bf16.mxu0 %v2273_v8  ;;  %v1096_v5 = vld [vmem:[#allocation2] sm:$0xc0]  ;;  %v2559_v3 = vld [vmem:[#allocation2 + $0x10] sm:$0xfc]  ;;  %v2561_v8 = vld [vmem:[#allocation2 + $0x30] sm:$0x3] }
 0x239   : > { %v9916_v17 = vld [vmem:[#allocation2 + $0x20] sm:$0xff]  ;;  %v2598_v45 = vrot.slane %v2561_v8, 2  ;;  %v9923_v29 = vld [vmem:[#allocation2 + $0x68] sm:$0xff]  ;;  %v8539_v57 = vld [vmem:[%s9589_s20 + $0x714] ss:$8 sps:$4 sm:$0xff]  }
 0x23a   : > { %1400 = vmatpush1.bf16.msra.mxu1 %v8462_v13  ;;  %2863 = vmatpush1.bf16.msra.mxu0 %v8465_v23  ;;  %v1130_v13 = vrot.slane %v9910_v59, 6  ;;  %v8519_v23 = vld [vmem:[%s9589_s20 + $0x6e0] ss:$8 sps:$4 sm:$0xff]   ;;  %v2593_v18 = vrot.slane %v9916_v17, 2  ;;  %v8545_v19 = vld [vmem:[%s9589_s20 + $0x724] ss:$8 sps:$4 sm:$0xff]  }
 0x23b   : > { %1401 = vmatprep.subr.bf16.mxu1 %v8470_v15  ;;  %2864 = vmatprep.subr.bf16.mxu0 %v8473_v22  ;;  %v1129_v15 = vrot.slane %v1096_v5, 6  ;;  %v2592_v22 = vrot.slane %v2559_v3, 2  ;;  %v8536_v5 = vld [vmem:[%s9589_s20 + $0x314] ss:$8 sps:$4 sm:$0xff]   ;;  %v9951_v8 = vld [vmem:[#allocation2 + $0xa8] sm:$0xff] }
 0x23d   : > { %1086 = vmatmul.mubr.bf16.gmra.mrb[12].mxu1 %v459_v28  ;;  %2533 = vmatmul.mubr.bf16.gmra.mrb[12].mxu0 %v2272_v56  ;;  %v1142_v28 = vrot.slane %v1101_v14, 6  ;;  %v1147_v56 = vrot.slane %v1103_v12, 6  ;;  %v1131_v35 = vsel %vm1128_vm3, %v1129_v15, %v1130_v13  ;;  %v8537_v14 = vld [vmem:[%s9589_s20 + $0x710] ss:$8 sps:$4 sm:$0xff]  }
 0x23e   : > { %1402 = vmatpush1.bf16.msra.mxu1 %v8468_v30  ;;  %2865 = vmatpush1.bf16.msra.mxu0 %v8471_v31  ;;  %v2606_v30 = vrot.slane %v9923_v29, 2  ;;  %v8522_v31 = vld [vmem:[%s9589_s20 + $0x2f0] ss:$8 sps:$4 sm:$0xff]  }
 0x23f   : > { %1403 = vmatprep.subr.bf16.mxu1 %v8476_v32  ;;  %2866 = vmatprep.subr.bf16.mxu0 %v8479_v16  ;;  %v8525_v32 = vld [vmem:[%s9589_s20 + $0x6f0] ss:$8 sps:$4 sm:$0xff]   ;;  %v1100_v16 = vld [vmem:[#allocation2 + $0x40] sm:$0xc0] }
 0x240   : > { %1421 = vmatprep.mubr.bf16.mxu1 %v1186_v37  ;;  %2884 = vmatprep.mubr.bf16.mxu0 %v2649_v38  ;;  %v1102_v37 = vld [vmem:[#allocation2 + $0x60] sm:$0x3f]  ;;  %v2563_v38 = vld [vmem:[#allocation2 + $0x50] sm:$0xfc] }
 0x242   : > { %1404 = vmatpush1.bf16.msra.mxu1 %v8474_v7  ;;  %2867 = vmatpush1.bf16.msra.mxu0 %v8477_v39  ;;  %v1136_v7 = vsel %vm1128_vm3, %v1130_v13, %v1135_v20  ;;  %v2594_v39 = vsel %vm2591_vm4, %v2592_v22, %v2593_v18 }
 0x243   : > { %1405 = vmatprep.subr.bf16.mxu1 %v8482_v27  ;;  %2868 = vmatprep.subr.bf16.mxu0 %v8485_v36  ;;  %v2599_v27 = vsel %vm2591_vm4, %v2593_v18, %v2598_v45  ;;  %v9932_v36 = vld [vmem:[#allocation2 + $0x50] sm:$0xff]  ;;  %v8542_v18 = vld [vmem:[%s9589_s20 + $0x324] ss:$8 sps:$4 sm:$0xff]  }
 0x246   : > { %1406 = vmatpush1.bf16.msra.mxu1 %v8480_v40  ;;  %2869 = vmatpush1.bf16.msra.mxu0 %v8483_v41  ;;  %v1140_v40 = vrot.slane %v9932_v36, 6  ;;  %v2565_v41 = vld [vmem:[#allocation2 + $0x70] sm:$0x3] }
 0x247   : > { %1407 = vmatprep.subr.bf16.mxu1 %v8488_v42  ;;  %2870 = vmatprep.subr.bf16.mxu0 %v8491_v44  ;;  %v8530_v42 = vld [vmem:[%s9589_s20 + $0x304] ss:$8 sps:$4 sm:$0xff]  }
 0x248   : > { %v8533_v44 = vld [vmem:[%s9589_s20 + $0x704] ss:$8 sps:$4 sm:$0xff]  }
 0x24a   : > { %1408 = vmatpush1.bf16.msra.mxu1 %v8486_v52  ;;  %2871 = vmatpush1.bf16.msra.mxu0 %v8489_v53  ;;  %v1144_v52 = vsel %vm1128_vm3, %v1142_v28, %v1143_v25  ;;  %v1148_v53 = vsel %vm1128_vm3, %v1143_v25, %v1147_v56  ;;  %v1106_v28 = vld [vmem:[#allocation2 + $0xa0] sm:$0x3f]  ;;  %v2567_v56 = vld [vmem:[#allocation2 + $0x90] sm:$0xfc] }
 0x24b   : > { %1409 = vmatprep.subr.bf16.mxu1 %v8494_v43  ;;  %2872 = vmatprep.subr.bf16.mxu0 %v8497_v54  ;;  %v2607_v43 = vsel %vm2591_vm4, %v2605_v21, %v2606_v30  ;;  %v9940_v54 = vld [vmem:[#allocation2 + $0x60] sm:$0xff]  ;;  %v1188_v13 = vpack.c.bf16 %v1148_v53, %v1144_v52  ;;  %v9962_v21 = vld [vmem:[#allocation2 + $0x90] sm:$0xff] }
 0x24e   : > { %1410 = vmatpush1.bf16.msra.mxu1 %v8492_v47  ;;  %2873 = vmatpush1.bf16.msra.mxu0 %v8495_v49  ;;  %v2603_v47 = vrot.slane %v9940_v54, 2  ;;  %v8528_v49 = vld [vmem:[%s9589_s20 + $0x300] ss:$8 sps:$4 sm:$0xff]  }
 0x24f   : > { %1411 = vmatprep.subr.bf16.mxu1 %v8500_v10  ;;  %2874 = vmatprep.subr.bf16.mxu0 %v8503_v55  ;;  %v8531_v10 = vld [vmem:[%s9589_s20 + $0x700] ss:$8 sps:$4 sm:$0xff]   ;;  %v2611_v55 = vsel %vm2591_vm4, %v2606_v30, %v2610_v33  ;;  %v1150_v30 = vrot.slane %v9962_v21, 6 }
 0x250   : > { %v2651_v3 = vpack.c.bf16 %v2611_v55, %v2607_v43  ;;  %v8540_v33 = vld [vmem:[%s9589_s20 + $0x320] ss:$8 sps:$4 sm:$0xff]  }
 0x252   : > { %1412 = vmatpush1.bf16.msra.mxu1 %v8498_v48  ;;  %2875 = vmatpush1.bf16.msra.mxu0 %v8501_v50  ;;  %v1139_v48 = vrot.slane %v1100_v16, 6  ;;  %v1145_v50 = vrot.slane %v1102_v37, 6 }
 0x253   : > { %1413 = vmatprep.subr.bf16.mxu1 %v8506_v51  ;;  %2876 = vmatprep.subr.bf16.mxu0 %v8509_v58  ;;  %v2602_v51 = vrot.slane %v2563_v38, 2  ;;  %v1105_v58 = vld [vmem:[#allocation2 + $0x88] sm:$0xc0] }
 0x254   : > { %v1141_v12 = vsel %vm1128_vm3, %v1139_v48, %v1140_v40  ;;  %v1146_v63 = vsel %vm1128_vm3, %v1140_v40, %v1145_v50  ;;  %v1152_v15 = vrot.slane %v1105_v58, 6  ;;  %v2572_v40 = vld [vmem:[#allocation2 + $0xd8] sm:$0xfc] }
 0x255   : > { %v1187_v16 = vpack.c.bf16 %v1146_v63, %v1141_v12  ;;  %v9976_v48 = vld [vmem:[#allocation2 + $0xd8] sm:$0xff] }
 0x256   : > { %1414 = vmatpush1.bf16.msra.mxu1 %v8504_v60  ;;  %2877 = vmatpush1.bf16.msra.mxu0 %v8507_v61  ;;  %v1185_v60 = vpack.c.bf16 %v1136_v7, %v1131_v35  ;;  %v2648_v61 = vpack.c.bf16 %v2599_v27, %v2594_v39  ;;  %v8543_v35 = vld [vmem:[%s9589_s20 + $0x720] ss:$8 sps:$4 sm:$0xff]   ;;  %v1163_v50 = vrot.slane %v9976_v48, 6  ;;  %v8549_v12 = vld [vmem:[%s9589_s20 + $0x730] ss:$8 sps:$4 sm:$0xff]  }
 0x257   : > { %1415 = vmatprep.subr.bf16.mxu1 %v8512_v46  ;;  %2878 = vmatprep.subr.bf16.mxu0 %v8515_v62  ;;  %v2608_v46 = vrot.slane %v2565_v41, 2  ;;  %v1107_v62 = vld [vmem:[#allocation2 + $0xa8] sm:$0x3f]  ;;  %v9968_v7 = vld [vmem:[#allocation2 + $0xa0] sm:$0xff]  ;;  %v8548_v41 = vld [vmem:[%s9589_s20 + $0x334] ss:$8 sps:$4 sm:$0xff]  }
 0x258   : > { %v1157_v22 = vrot.slane %v1107_v62, 6  ;;  %v2613_v39 = vrot.slane %v9968_v7, 2  ;;  %v1111_v27 = vld [vmem:[#allocation2 + $0xe8] sm:$0x3f] }
 0x259   : > { %v2609_v20 = vsel %vm2591_vm4, %v2603_v47, %v2608_v46  ;;  %v1167_v58 = vrot.slane %v1111_v27, 6  ;;  %v1481_v27 = vld [vmem:[#allocation2 + $0x28] sm:$0x7f] }
 0x25a   : > { %1416 = vmatpush1.bf16.msra.mxu1 %v8510_v2  ;;  %2879 = vmatpush1.bf16.msra.mxu0 %v8513_v0  ;;  %v9946_v2 = vld [vmem:[#allocation2 + $0x98] sm:$0xff] }
 0x25b   : > { %1417 = vmatprep.subr.bf16.mxu1 %v8518_v1  ;;  %2880 = vmatprep.subr.bf16.mxu0 %v8521_v4  ;;  %v1153_v0 = vrot.slane %v9946_v2, 6  ;;  %v2568_v1 = vld [vmem:[#allocation2 + $0x98] sm:$0xfc]  ;;  %v2570_v4 = vld [vmem:[#allocation2 + $0xb8] sm:$0x3] }
 0x25c   : > { %v2615_v45 = vrot.slane %v2568_v1, 2  ;;  %v2620_v25 = vrot.slane %v2570_v4, 2  ;;  %v1108_v4 = vld [vmem:[#allocation2 + $0xc0] sm:$0xc0] }
 0x25d   : > { %v1154_v38 = vsel %vm1128_vm3, %v1152_v15, %v1153_v0 }
 0x25e   : > { %1418 = vmatpush1.bf16.msra.mxu1 %v8516_v11  ;;  %2881 = vmatpush1.bf16.msra.mxu0 %v8519_v23  ;;  %v2616_v11 = vrot.slane %v9951_v8, 2  ;;  %v8534_v23 = vld [vmem:[%s9589_s20 + $0x310] ss:$8 sps:$4 sm:$0xff]  }
 0x25f   : > { %1419 = vmatprep.subr.bf16.mxu1 %v8524_v34  ;;  %2882 = vmatprep.subr.bf16.mxu0 %v8527_v26  ;;  %v2604_v34 = vsel %vm2591_vm4, %v2602_v51, %v2603_v47  ;;  %v1104_v26 = vld [vmem:[#allocation2 + $0x80] sm:$0xc0]  ;;  %v2574_v47 = vld [vmem:[#allocation2 + $0xf8] sm:$0x3] }
 0x260   : > { %v2650_v37 = vpack.c.bf16 %v2609_v20, %v2604_v34  ;;  %v2617_v52 = vsel %vm2591_vm4, %v2615_v45, %v2616_v11  ;;  %v2621_v53 = vsel %vm2591_vm4, %v2616_v11, %v2620_v25  ;;  %v1149_v43 = vrot.slane %v1104_v26, 6  ;;  %v2571_v11 = vld [vmem:[#allocation2 + $0xd0] sm:$0xfc]  ;;  %v8554_v20 = vld [vmem:[%s9589_s20 + $0x344] ss:$8 sps:$4 sm:$0xff]  }
 0x261   : > { %v2630_v1 = vrot.slane %v2574_v47, 2  ;;  %v1168_v25 = vsel %vm1128_vm3, %v1163_v50, %v1167_v58 }
 0x262   : > { %1420 = vmatpush1.bf16.msra.mxu1 %v8522_v31  ;;  %2883 = vmatpush1.bf16.msra.mxu0 %v8525_v32  ;;  %v2569_v31 = vld [vmem:[#allocation2 + $0xb0] sm:$0x3]  ;;  %v1109_v32 = vld [vmem:[#allocation2 + $0xc8] sm:$0xc0] }
 0x263   : > { %1771 = vmatprep.subr.bf16.mxu1 %v8530_v42  ;;  %3234 = vmatprep.subr.bf16.mxu0 %v8533_v44  ;;  %v8551_v42 = vld [vmem:[%s9589_s20 + $0x734] ss:$8 sps:$4 sm:$0xff]   ;;  %v1158_v44 = vsel %vm1128_vm3, %v1153_v0, %v1157_v22  ;;  %v2618_v55 = vrot.slane %v2569_v31, 2  ;;  %v1162_v51 = vrot.slane %v1109_v32, 6  ;;  %v2653_v0 = vpack.c.bf16 %v2621_v53, %v2617_v52  ;;  %v8557_v22 = vld [vmem:[%s9589_s20 + $0x744] ss:$8 sps:$4 sm:$0xff]  }
 0x264   : > { %v1190_v62 = vpack.c.bf16 %v1158_v44, %v1154_v38  ;;  %v2622_v32 = vrot.slane %v2571_v11, 2  ;;  %v1479_v38 = vld [vmem:[#allocation2 + $0x8] sm:$0x80]  ;;  %v8563_v44 = vld [vmem:[%s9589_s20 + $0x754] ss:$8 sps:$4 sm:$0xff]  }
 0x265   : > { %1422 = vmatmul.mubr.bf16.vlgmr.msra.gmra.mrb[0].mxu1 %v1185_v60  ;;  %2885 = vmatmul.mubr.bf16.vlgmr.msra.gmra.mrb[0].mxu0 %v2648_v61  ;;  %v2625_v60 = vrot.slane %v2572_v40, 2  ;;  %v9979_v61 = vld [vmem:[#allocation2 + $0xe8] sm:$0xff]  ;;  %v2619_v15 = vsel %vm2591_vm4, %v2613_v39, %v2618_v55  ;;  %v1164_v45 = vsel %vm1128_vm3, %v1162_v51, %v1163_v50  ;;  %v2942_v40 = vld [vmem:[#allocation2 + $0x18] sm:$0xf8]  ;;  %v1514_v50 = vrot.slane %v1479_v38, 7 }
 0x266   : > { %1772 = vmatpush1.bf16.msra.mxu1 %v8528_v49  ;;  %3235 = vmatpush1.bf16.msra.mxu0 %v8531_v10  ;;  %v1155_v49 = vrot.slane %v1106_v28, 6  ;;  %v2612_v10 = vrot.slane %v2567_v56, 2  ;;  %v2626_v46 = vrot.slane %v9979_v61, 2  ;;  %v1159_v28 = vrot.slane %v1108_v4, 6  ;;  %v8552_v56 = vld [vmem:[%s9589_s20 + $0x340] ss:$8 sps:$4 sm:$0xff]  }
 0x267   : > { %1773 = vmatprep.subr.bf16.mxu1 %v8536_v5  ;;  %3236 = vmatprep.subr.bf16.mxu0 %v8539_v57  ;;  %v1110_v5 = vld [vmem:[#allocation2 + $0xe0] sm:$0x3f]  ;;  %v1151_v57 = vsel %vm1128_vm3, %v1149_v43, %v1150_v30  ;;  %v1192_v52 = vpack.c.bf16 %v1168_v25, %v1164_v45  ;;  %v2978_v43 = vrot.slane %v9860_v9, 3  ;;  %v8558_v55 = vld [vmem:[%s9589_s20 + $0x350] ss:$8 sps:$4 sm:$0xff]   ;;  %v1519_v51 = vrot.slane %v1481_v27, 7 }
 0x268   : > { %1431 = vmatprep.mubr.bf16.mxu1 %v1188_v13  ;;  %2894 = vmatprep.mubr.bf16.mxu0 %v2651_v3  ;;  %v9983_v13 = vld [vmem:[#allocation2 + $0xd0] sm:$0xff]  ;;  %v1156_v63 = vsel %vm1128_vm3, %v1150_v30, %v1155_v49  ;;  %v2614_v34 = vsel %vm2591_vm4, %v2612_v10, %v2613_v39  ;;  %v2627_v26 = vsel %vm2591_vm4, %v2625_v60, %v2626_v46  ;;  %v1165_v31 = vrot.slane %v1110_v5, 6  ;;  %v8564_v11 = vld [vmem:[%s9589_s20 + $0x360] ss:$8 sps:$4 sm:$0xff]   ;;  %v8602_v27 = vld [vmem:[%s9589_s20 + $0x3c4] ss:$8 sps:$4 sm:$0xff]  }
 0x269   : > { %v1160_v3 = vrot.slane %v9983_v13, 6  ;;  %v2631_v30 = vsel %vm2591_vm4, %v2626_v46, %v2630_v1  ;;  %v1515_v39 = vrot.slane %v9789_v6, 7  ;;  %v2977_v58 = vrot.slane %v2942_v40, 3  ;;  %v8561_v9 = vld [vmem:[%s9589_s20 + $0x750] ss:$8 sps:$4 sm:$0xff]  }
 0x26a   : > { %1774 = vmatpush1.bf16.msra.mxu1 %v8534_v23  ;;  %3237 = vmatpush1.bf16.msra.mxu0 %v8537_v14  ;;  %v2573_v23 = vld [vmem:[#allocation2 + $0xf0] sm:$0x3]  ;;  %v2655_v53 = vpack.c.bf16 %v2631_v30, %v2627_v26  ;;  %v8566_v46 = vld [vmem:[%s9589_s20 + $0x364] ss:$8 sps:$4 sm:$0xff]   ;;  %v8576_v45 = vld [vmem:[%s9589_s20 + $0x380] ss:$8 sps:$4 sm:$0xff]  }
 0x26b   : > { %1775 = vmatprep.subr.bf16.mxu1 %v8542_v18  ;;  %3238 = vmatprep.subr.bf16.mxu0 %v8545_v19  ;;  %v8546_v14 = vld [vmem:[%s9589_s20 + $0x330] ss:$8 sps:$4 sm:$0xff]   ;;  %v9991_v18 = vld [vmem:[#allocation2 + $0xe0] sm:$0xff]  ;;  %v1161_v47 = vsel %vm1128_vm3, %v1159_v28, %v1160_v3  ;;  %v1166_v49 = vsel %vm1128_vm3, %v1160_v3, %v1165_v31  ;;  %v1516_v4 = vsel %vm1510_vm5, %v1514_v50, %v1515_v39  ;;  %v8584_v26 = vld [vmem:[%s9589_s20 + $0x394] ss:$8 sps:$4 sm:$0xff]  }
 0x26c   : > { %v2623_v19 = vrot.slane %v9991_v18, 2  ;;  %v1520_v5 = vsel %vm1510_vm5, %v1515_v39, %v1519_v51  ;;  %v8579_v25 = vld [vmem:[%s9589_s20 + $0x780] ss:$8 sps:$4 sm:$0xff]   ;;  %v8587_v28 = vld [vmem:[%s9589_s20 + $0x794] ss:$8 sps:$4 sm:$0xff]   ;;  %v1512_v51 = vrot.slane %v9910_v59, 7 }
 0x26d   : > { %1432 = vmatmul.mubr.bf16.gmra.mrb[4].mxu1 %v1187_v16  ;;  %2895 = vmatmul.mubr.bf16.gmra.mrb[4].mxu0 %v2650_v37  ;;  %v1189_v16 = vpack.c.bf16 %v1156_v63, %v1151_v57  ;;  %v2652_v37 = vpack.c.bf16 %v2619_v15, %v2614_v34  ;;  %v2979_v57 = vsel %vm2973_vm6, %v2977_v58, %v2978_v43  ;;  %v8570_v15 = vld [vmem:[%s9589_s20 + $0x370] ss:$8 sps:$4 sm:$0xff]   ;;  %v8590_v31 = vld [vmem:[%s9589_s20 + $0x3a4] ss:$8 sps:$4 sm:$0xff]   ;;  %v2975_v58 = vrot.slane %v9916_v17, 3 }
 0x26e   : > { %1776 = vmatpush1.bf16.msra.mxu1 %v8540_v33  ;;  %3239 = vmatpush1.bf16.msra.mxu0 %v8543_v35  ;;  %v2628_v33 = vrot.slane %v2573_v23, 2  ;;  %v8555_v35 = vld [vmem:[%s9589_s20 + $0x740] ss:$8 sps:$4 sm:$0xff]   ;;  %v2624_v6 = vsel %vm2591_vm4, %v2622_v32, %v2623_v19  ;;  %v1568_v63 = vpack.c.bf16 %v1520_v5, %v1516_v4  ;;  %v8585_v30 = vld [vmem:[%s9589_s20 + $0x790] ss:$8 sps:$4 sm:$0xff]  }
 0x26f   : > { %1777 = vmatprep.subr.bf16.mxu1 %v8548_v41  ;;  %3240 = vmatprep.subr.bf16.mxu0 %v8551_v42  ;;  %v2944_v41 = vld [vmem:[#allocation2 + $0x38] sm:$0x7]  ;;  %v8560_v42 = vld [vmem:[%s9589_s20 + $0x354] ss:$8 sps:$4 sm:$0xff]   ;;  %v8567_v23 = vld [vmem:[%s9589_s20 + $0x760] ss:$8 sps:$4 sm:$0xff]  }
 0x270   : > { %1441 = vmatprep.mubr.bf16.mxu1 %v1190_v62  ;;  %2904 = vmatprep.mubr.bf16.mxu0 %v2653_v0  ;;  %v2629_v10 = vsel %vm2591_vm4, %v2623_v19, %v2628_v33  ;;  %v2982_v60 = vrot.slane %v2944_v41, 3  ;;  %v8569_v62 = vld [vmem:[%s9589_s20 + $0x764] ss:$8 sps:$4 sm:$0xff]   ;;  %v1191_v0 = vpack.c.bf16 %v1166_v49, %v1161_v47  ;;  %v8573_v19 = vld [vmem:[%s9589_s20 + $0x770] ss:$8 sps:$4 sm:$0xff]  }
 0x271   : > { %v2654_v1 = vpack.c.bf16 %v2629_v10, %v2624_v6  ;;  %v8593_v32 = vld [vmem:[%s9589_s20 + $0x7a4] ss:$8 sps:$4 sm:$0xff]   ;;  %v8588_v33 = vld [vmem:[%s9589_s20 + $0x3a0] ss:$8 sps:$4 sm:$0xff]   ;;  %v8594_v38 = vld [vmem:[%s9589_s20 + $0x3b0] ss:$8 sps:$4 sm:$0xff]  }
 0x272   : > { %1778 = vmatpush1.bf16.msra.mxu1 %v8546_v14  ;;  %3241 = vmatpush1.bf16.msra.mxu0 %v8549_v12  ;;  %v2983_v3 = vsel %vm2973_vm6, %v2978_v43, %v2982_v60  ;;  %v8572_v14 = vld [vmem:[%s9589_s20 + $0x374] ss:$8 sps:$4 sm:$0xff]   ;;  %v8597_v39 = vld [vmem:[%s9589_s20 + $0x7b0] ss:$8 sps:$4 sm:$0xff]   ;;  %v8605_v40 = vld [vmem:[%s9589_s20 + $0x7c4] ss:$8 sps:$4 sm:$0xff]  }
 0x273   : > { %1779 = vmatprep.subr.bf16.mxu1 %v8554_v20  ;;  %3242 = vmatprep.subr.bf16.mxu0 %v8557_v22  ;;  %v8575_v12 = vld [vmem:[%s9589_s20 + $0x774] ss:$8 sps:$4 sm:$0xff]   ;;  %v3031_v34 = vpack.c.bf16 %v2983_v3, %v2979_v57  ;;  %v8578_v20 = vld [vmem:[%s9589_s20 + $0x384] ss:$8 sps:$4 sm:$0xff]   ;;  %v8600_v41 = vld [vmem:[%s9589_s20 + $0x3c0] ss:$8 sps:$4 sm:$0xff]  }
 0x274   : > { %v8581_v22 = vld [vmem:[%s9589_s20 + $0x784] ss:$8 sps:$4 sm:$0xff]   ;;  %v2941_v47 = vld [vmem:[#allocation2 + $0x10] sm:$0xf8]  ;;  %v2943_v10 = vld [vmem:[#allocation2 + $0x30] sm:$0x7] }
 0x275   : > { %1442 = vmatmul.mubr.bf16.gmra.mrb[8].mxu1 %v1189_v16  ;;  %2905 = vmatmul.mubr.bf16.gmra.mrb[8].mxu0 %v2652_v37  ;;  %v8596_v16 = vld [vmem:[%s9589_s20 + $0x3b4] ss:$8 sps:$4 sm:$0xff]   ;;  %v1480_v43 = vld [vmem:[#allocation2 + $0x20] sm:$0x7f]  ;;  %v8606_v49 = vld [vmem:[%s9589_s20 + $0x3d0] ss:$8 sps:$4 sm:$0xff]  }
 0x276   : > { %1780 = vmatpush1.bf16.msra.mxu1 %v8552_v56  ;;  %3243 = vmatpush1.bf16.msra.mxu0 %v8555_v35  ;;  %v8582_v56 = vld [vmem:[%s9589_s20 + $0x390] ss:$8 sps:$4 sm:$0xff]   ;;  %v8591_v35 = vld [vmem:[%s9589_s20 + $0x7a0] ss:$8 sps:$4 sm:$0xff]   ;;  %v8599_v37 = vld [vmem:[%s9589_s20 + $0x7b4] ss:$8 sps:$4 sm:$0xff]  }
 0x277   : > { %1781 = vmatprep.subr.bf16.mxu1 %v8560_v42  ;;  %3244 = vmatprep.subr.bf16.mxu0 %v8563_v44  ;;  %v8603_v42 = vld [vmem:[%s9589_s20 + $0x7c0] ss:$8 sps:$4 sm:$0xff]   ;;  %v8608_v44 = vld [vmem:[%s9589_s20 + $0x3d4] ss:$8 sps:$4 sm:$0xff]   ;;  %v8609_v6 = vld [vmem:[%s9589_s20 + $0x7d0] ss:$8 sps:$4 sm:$0xff]  }
 0x278   : > { %1451 = vmatprep.mubr.bf16.mxu1 %v1192_v52  ;;  %2914 = vmatprep.mubr.bf16.mxu0 %v2655_v53  ;;  %v8611_v52 = vld [vmem:[%s9589_s20 + $0x7d4] ss:$8 sps:$4 sm:$0xff]   ;;  %v1478_v53 = vld [vmem:[#allocation2] sm:$0x80]  ;;  %v8612_v60 = vld [vmem:[%s9589_s20 + $0x3e0] ss:$8 sps:$4 sm:$0xff]  }
 0x279   : > { %v8617_v50 = vld [vmem:[%s9589_s20 + $0x7e4] ss:$8 sps:$4 sm:$0xff]   ;;  %v2980_v4 = vrot.slane %v2943_v10, 3  ;;  %v2988_v57 = vrot.slane %v9923_v29, 3  ;;  %v2948_v59 = vld [vmem:[#allocation2 + $0x78] sm:$0x7] }
 0x27a   : > { %1782 = vmatpush1.bf16.msra.mxu1 %v8558_v55  ;;  %3245 = vmatpush1.bf16.msra.mxu0 %v8561_v9  ;;  %v8614_v55 = vld [vmem:[%s9589_s20 + $0x3e4] ss:$8 sps:$4 sm:$0xff]   ;;  %v1511_v9 = vrot.slane %v1478_v53, 7  ;;  %v8620_v17 = vld [vmem:[%s9589_s20 + $0x3f4] ss:$8 sps:$4 sm:$0xff]  }
 0x27b   : > { %1783 = vmatprep.subr.bf16.mxu1 %v8566_v46  ;;  %3246 = vmatprep.subr.bf16.mxu0 %v8569_v62  ;;  %v1517_v46 = vrot.slane %v1480_v43, 7  ;;  %v2974_v62 = vrot.slane %v2941_v47, 3  ;;  %v1483_v5 = vld [vmem:[#allocation2 + $0x48] sm:$0x80]  ;;  %v1485_v3 = vld [vmem:[#allocation2 + $0x68] sm:$0x7f] }
 0x27c   : > { %v8629_v53 = vld [vmem:[%s9589_s20 + $0x814] ss:$8 sps:$4 sm:$0xff]   ;;  %v1535_v43 = vrot.slane %v9946_v2, 7 }
 0x27d   : > { %1452 = vmatmul.mubr.bf16.gmra.mrb[12].mxu1 %v1191_v0  ;;  %2915 = vmatmul.mubr.bf16.gmra.mrb[12].mxu0 %v2654_v1  ;;  %v1525_v0 = vrot.slane %v9919_v24, 7  ;;  %v8615_v1 = vld [vmem:[%s9589_s20 + $0x7e0] ss:$8 sps:$4 sm:$0xff]   ;;  %v2985_v24 = vrot.slane %v9940_v54, 3  ;;  %v1518_v29 = vsel %vm1510_vm5, %v1512_v51, %v1517_v46 }
 0x27e   : > { %1784 = vmatpush1.bf16.msra.mxu1 %v8564_v11  ;;  %3247 = vmatpush1.bf16.msra.mxu0 %v8567_v23  ;;  %v2946_v11 = vld [vmem:[#allocation2 + $0x58] sm:$0xf8]  ;;  %v1484_v54 = vld [vmem:[#allocation2 + $0x60] sm:$0x7f] }
 0x27f   : > { %1785 = vmatprep.subr.bf16.mxu1 %v8572_v14  ;;  %3248 = vmatprep.subr.bf16.mxu0 %v8575_v12  ;;  %v8623_v23 = vld [vmem:[%s9589_s20 + $0x7f4] ss:$8 sps:$4 sm:$0xff]   ;;  %v1522_v14 = vrot.slane %v9932_v36, 7  ;;  %v1513_v12 = vsel %vm1510_vm5, %v1511_v9, %v1512_v51  ;;  %v8618_v36 = vld [vmem:[%s9589_s20 + $0x3f0] ss:$8 sps:$4 sm:$0xff]   ;;  %v2998_v51 = vrot.slane %v9951_v8, 3 }
 0x280   : > { %1803 = vmatprep.mubr.bf16.mxu1 %v1568_v63  ;;  %3266 = vmatprep.mubr.bf16.mxu0 %v3031_v34  ;;  %v2976_v63 = vsel %vm2973_vm6, %v2974_v62, %v2975_v58  ;;  %v1524_v34 = vrot.slane %v1483_v5, 7  ;;  %v8627_v9 = vld [vmem:[%s9589_s20 + $0x810] ss:$8 sps:$4 sm:$0xff]  }
 0x281   : > { %v2951_v5 = vld [vmem:[#allocation2 + $0xb0] sm:$0x7] }
 0x282   : > { %1786 = vmatpush1.bf16.msra.mxu1 %v8570_v15  ;;  %3249 = vmatpush1.bf16.msra.mxu0 %v8573_v19  ;;  %v2981_v15 = vsel %vm2973_vm6, %v2975_v58, %v2980_v4  ;;  %v1529_v19 = vrot.slane %v1485_v3, 7  ;;  %v2949_v4 = vld [vmem:[#allocation2 + $0x90] sm:$0xf8] }
 0x283   : > { %1787 = vmatprep.subr.bf16.mxu1 %v8578_v20  ;;  %3250 = vmatprep.subr.bf16.mxu0 %v8581_v22  ;;  %v2987_v20 = vrot.slane %v2946_v11, 3  ;;  %v2992_v22 = vrot.slane %v2948_v59, 3  ;;  %v1532_v59 = vrot.slane %v9962_v21, 7  ;;  %v8635_v21 = vld [vmem:[%s9589_s20 + $0x834] ss:$8 sps:$4 sm:$0xff]  }
 0x286   : > { %1788 = vmatpush1.bf16.msra.mxu1 %v8576_v45  ;;  %3251 = vmatpush1.bf16.msra.mxu0 %v8579_v25  ;;  %v1482_v45 = vld [vmem:[#allocation2 + $0x40] sm:$0x80]  ;;  %v8621_v25 = vld [vmem:[%s9589_s20 + $0x7f0] ss:$8 sps:$4 sm:$0xff]  }
 0x287   : > { %1789 = vmatprep.subr.bf16.mxu1 %v8584_v26  ;;  %3252 = vmatprep.subr.bf16.mxu0 %v8587_v28  ;;  %v8626_v26 = vld [vmem:[%s9589_s20 + $0x804] ss:$8 sps:$4 sm:$0xff]   ;;  %v2945_v28 = vld [vmem:[#allocation2 + $0x50] sm:$0xf8] }
 0x28a   : > { %1790 = vmatpush1.bf16.msra.mxu1 %v8582_v56  ;;  %3253 = vmatpush1.bf16.msra.mxu0 %v8585_v30  ;;  %v2947_v56 = vld [vmem:[#allocation2 + $0x70] sm:$0x7]  ;;  %v1567_v30 = vpack.c.bf16 %v1518_v29, %v1513_v12  ;;  %v1493_v29 = vld [vmem:[#allocation2 + $0xe8] sm:$0x7f] }
 0x28b   : > { %1791 = vmatprep.subr.bf16.mxu1 %v8590_v31  ;;  %3254 = vmatprep.subr.bf16.mxu0 %v8593_v32  ;;  %v3030_v31 = vpack.c.bf16 %v2981_v15, %v2976_v63  ;;  %v8624_v32 = vld [vmem:[%s9589_s20 + $0x800] ss:$8 sps:$4 sm:$0xff]   ;;  %v2954_v63 = vld [vmem:[#allocation2 + $0xd8] sm:$0xf8] }
 0x28c   : > { %v8630_v15 = vld [vmem:[%s9589_s20 + $0x820] ss:$8 sps:$4 sm:$0xff]  }
 0x28e   : > { %1792 = vmatpush1.bf16.msra.mxu1 %v8588_v33  ;;  %3255 = vmatpush1.bf16.msra.mxu0 %v8591_v35  ;;  %v1526_v33 = vsel %vm1510_vm5, %v1524_v34, %v1525_v0  ;;  %v1521_v35 = vrot.slane %v1482_v45, 7  ;;  %v2956_v34 = vld [vmem:[#allocation2 + $0xf8] sm:$0x7]  ;;  %v3000_v45 = vrot.slane %v2951_v5, 3 }
 0x28f   : > { %1793 = vmatprep.subr.bf16.mxu1 %v8596_v16  ;;  %3256 = vmatprep.subr.bf16.mxu0 %v8599_v37  ;;  %v1530_v16 = vsel %vm1510_vm5, %v1525_v0, %v1529_v19  ;;  %v2989_v37 = vsel %vm2973_vm6, %v2987_v20, %v2988_v57  ;;  %v8632_v0 = vld [vmem:[%s9589_s20 + $0x824] ss:$8 sps:$4 sm:$0xff]   ;;  %v2994_v20 = vrot.slane %v2949_v4, 3  ;;  %v3379_v4 = vrot.slane %v9951_v8, 4 }
 0x290   : > { %v1570_v47 = vpack.c.bf16 %v1530_v16, %v1526_v33  ;;  %v2953_v16 = vld [vmem:[#allocation2 + $0xd0] sm:$0xf8]  ;;  %v8644_v8 = vld [vmem:[%s9589_s20 + $0x864] ss:$8 sps:$4 sm:$0xff]  }
 0x292   : > { %1794 = vmatpush1.bf16.msra.mxu1 %v8594_v38  ;;  %3257 = vmatpush1.bf16.msra.mxu0 %v8597_v39  ;;  %v2993_v38 = vsel %vm2973_vm6, %v2988_v57, %v2992_v22  ;;  %v1527_v39 = vrot.slane %v1484_v54, 7  ;;  %v2995_v22 = vrot.slane %v9968_v7, 3  ;;  %v1545_v54 = vrot.slane %v9976_v48, 7 }
 0x293   : > { %1795 = vmatprep.subr.bf16.mxu1 %v8602_v27  ;;  %3258 = vmatprep.subr.bf16.mxu0 %v8605_v40  ;;  %v1487_v27 = vld [vmem:[#allocation2 + $0x88] sm:$0x80]  ;;  %v1489_v40 = vld [vmem:[#allocation2 + $0xa8] sm:$0x7f] }
 0x294   : > { %v1539_v10 = vrot.slane %v1489_v40, 7  ;;  %v1528_v46 = vsel %vm1510_vm5, %v1522_v14, %v1527_v39  ;;  %v2996_v39 = vsel %vm2973_vm6, %v2994_v20, %v2995_v22  ;;  %v8638_v40 = vld [vmem:[%s9589_s20 + $0x844] ss:$8 sps:$4 sm:$0xff]   ;;  %v8642_v20 = vld [vmem:[%s9589_s20 + $0x860] ss:$8 sps:$4 sm:$0xff]  }
 0x296   : > { %1796 = vmatpush1.bf16.msra.mxu1 %v8600_v41  ;;  %3259 = vmatpush1.bf16.msra.mxu0 %v8603_v42  ;;  %v2984_v41 = vrot.slane %v2945_v28, 3  ;;  %v2990_v42 = vrot.slane %v2947_v56, 3  ;;  %v1540_v3 = vsel %vm1510_vm5, %v1535_v43, %v1539_v10  ;;  %v1549_v56 = vrot.slane %v1493_v29, 7 }
 0x297   : > { %1797 = vmatprep.subr.bf16.mxu1 %v8608_v44  ;;  %3260 = vmatprep.subr.bf16.mxu0 %v8611_v52  ;;  %v2950_v44 = vld [vmem:[#allocation2 + $0x98] sm:$0xf8]  ;;  %v2952_v52 = vld [vmem:[#allocation2 + $0xb8] sm:$0x7] }
 0x298   : > { %v3002_v58 = vrot.slane %v2952_v52, 3  ;;  %v2986_v2 = vsel %vm2973_vm6, %v2984_v41, %v2985_v24  ;;  %v2991_v62 = vsel %vm2973_vm6, %v2985_v24, %v2990_v42  ;;  %v3005_v52 = vrot.slane %v9991_v18, 3 }
 0x29a   : > { %1798 = vmatpush1.bf16.msra.mxu1 %v8606_v49  ;;  %3261 = vmatpush1.bf16.msra.mxu0 %v8609_v6  ;;  %v3033_v49 = vpack.c.bf16 %v2993_v38, %v2989_v37  ;;  %v1534_v6 = vrot.slane %v1487_v27, 7  ;;  %v3003_v12 = vsel %vm2973_vm6, %v2998_v51, %v3002_v58  ;;  %v2955_v37 = vld [vmem:[#allocation2 + $0xf0] sm:$0x7]  ;;  %v3001_v27 = vsel %vm2973_vm6, %v2995_v22, %v3000_v45  ;;  %v3324_v58 = vld [vmem:[#allocation2 + $0x18] sm:$0xf0] }
 0x29b   : > { %1799 = vmatprep.subr.bf16.mxu1 %v8614_v55  ;;  %3262 = vmatprep.subr.bf16.mxu0 %v8617_v50  ;;  %v1523_v55 = vsel %vm1510_vm5, %v1521_v35, %v1522_v14  ;;  %v2997_v50 = vrot.slane %v2950_v44, 3  ;;  %v3032_v14 = vpack.c.bf16 %v2991_v62, %v2986_v2  ;;  %v1492_v35 = vld [vmem:[#allocation2 + $0xe0] sm:$0x7f]  ;;  %v8633_v38 = vld [vmem:[%s9589_s20 + $0x830] ss:$8 sps:$4 sm:$0xff]   ;;  %v1542_v44 = vrot.slane %v9983_v13, 7 }
 0x29c   : > { %v1536_v57 = vsel %vm1510_vm5, %v1534_v6, %v1535_v43  ;;  %v1547_v43 = vrot.slane %v1492_v35, 7  ;;  %v3034_v10 = vpack.c.bf16 %v3001_v27, %v2996_v39  ;;  %v3326_v13 = vld [vmem:[#allocation2 + $0x38] sm:$0xf]  ;;  %v8647_v22 = vld [vmem:[%s9589_s20 + $0x874] ss:$8 sps:$4 sm:$0xff]  }
 0x29d   : > { %v2999_v24 = vsel %vm2973_vm6, %v2997_v50, %v2998_v51  ;;  %v8660_v35 = vld [vmem:[%s9589_s20 + $0x8c0] ss:$8 sps:$4 sm:$0xff]   ;;  %v3325_v39 = vld [vmem:[#allocation2 + $0x30] sm:$0xf]  ;;  %v3331_v27 = vld [vmem:[#allocation2 + $0x90] sm:$0xf0] }
 0x29e   : > { %1800 = vmatpush1.bf16.msra.mxu1 %v8612_v60  ;;  %3263 = vmatpush1.bf16.msra.mxu0 %v8615_v1  ;;  %v1486_v60 = vld [vmem:[#allocation2 + $0x80] sm:$0x80]  ;;  %v1488_v1 = vld [vmem:[#allocation2 + $0xa0] sm:$0x7f]  ;;  %v3035_v28 = vpack.c.bf16 %v3003_v12, %v2999_v24  ;;  %v8639_v24 = vld [vmem:[%s9589_s20 + $0x850] ss:$8 sps:$4 sm:$0xff]  }
 0x29f   : > { %1801 = vmatprep.subr.bf16.mxu1 %v8620_v17  ;;  %3264 = vmatprep.subr.bf16.mxu0 %v8623_v23  ;;  %v1531_v11 = vrot.slane %v1486_v60, 7  ;;  %v1491_v17 = vld [vmem:[#allocation2 + $0xc8] sm:$0x80]  ;;  %v1569_v23 = vpack.c.bf16 %v1528_v46, %v1523_v55  ;;  %v1537_v19 = vrot.slane %v1488_v1, 7  ;;  %v8636_v55 = vld [vmem:[%s9589_s20 + $0x840] ss:$8 sps:$4 sm:$0xff]  }
 0x2a0   : > { %v3332_v60 = vld [vmem:[#allocation2 + $0x98] sm:$0xf0] }
 0x2a1   : > { %v1533_v33 = vsel %vm1510_vm5, %v1531_v11, %v1532_v59  ;;  %v1538_v48 = vsel %vm1510_vm5, %v1532_v59, %v1537_v19  ;;  %v8641_v46 = vld [vmem:[%s9589_s20 + $0x854] ss:$8 sps:$4 sm:$0xff]   ;;  %v3358_v59 = vrot.slane %v3324_v58, 4  ;;  %v8690_v58 = vld [vmem:[#allocation2 + $0x68] sm:$0xff] }
 0x2a2   : > { %1802 = vmatpush1.bf16.msra.mxu1 %v8618_v36  ;;  %3265 = vmatpush1.bf16.msra.mxu0 %v8621_v25  ;;  %v1572_v36 = vpack.c.bf16 %v1540_v3, %v1536_v57  ;;  %v1544_v25 = vrot.slane %v1491_v17, 7  ;;  %v1571_v6 = vpack.c.bf16 %v1538_v48, %v1533_v33  ;;  %v1548_v57 = vsel %vm1510_vm5, %v1542_v44, %v1547_v43  ;;  %v8662_v33 = vld [vmem:[%s9589_s20 + $0x8c4] ss:$8 sps:$4 sm:$0xff]   ;;  %v3323_v48 = vld [vmem:[#allocation2 + $0x10] sm:$0xf0] }
 0x2a3   : > { %3615 = vmatprep.subr.bf16.mxu0 %v8626_v26  ;;  %7871 = vmatprep.subr.bf16.mxu1 %v8626_v26  ;;  %v3008_v26 = vrot.slane %v9979_v61, 3  ;;  %v3363_v17 = vrot.slane %v3326_v13, 4  ;;  %v8689_v43 = vld [vmem:[#allocation2 + $0x20] sm:$0xff]  ;;  %v3369_v13 = vrot.slane %v8690_v58, 4 }
 0x2a4   : > { %v1546_v41 = vsel %vm1510_vm5, %v1544_v25, %v1545_v54  ;;  %v8650_v25 = vld [vmem:[%s9589_s20 + $0x884] ss:$8 sps:$4 sm:$0xff]  }
 0x2a5   : > { %1804 = vmatmul.mubr.bf16.vlgmr.msra.gmra.mrb[0].mxu1 %v1567_v30  ;;  %3267 = vmatmul.mubr.bf16.vlgmr.msra.gmra.mrb[0].mxu0 %v3030_v31  ;;  %v3007_v30 = vrot.slane %v2954_v63, 3  ;;  %v3012_v31 = vrot.slane %v2956_v34, 3 }
 0x2a6   : > { %3616 = vmatpush1.bf16.msra.mxu0 %v8624_v32  ;;  %7887 = vmatpush1.bf16.msra.mxu1 %v8624_v32  ;;  %v1490_v32 = vld [vmem:[#allocation2 + $0xc0] sm:$0x80] }
 0x2a7   : > { %3617 = vmatprep.subr.bf16.mxu0 %v8629_v53  ;;  %7872 = vmatprep.subr.bf16.mxu1 %v8629_v53  ;;  %v1541_v42 = vrot.slane %v1490_v32, 7  ;;  %v1550_v53 = vsel %vm1510_vm5, %v1545_v54, %v1549_v56  ;;  %v3009_v50 = vsel %vm2973_vm6, %v3007_v30, %v3008_v26  ;;  %v3013_v51 = vsel %vm2973_vm6, %v3008_v26, %v3012_v31  ;;  %v8648_v54 = vld [vmem:[%s9589_s20 + $0x880] ss:$8 sps:$4 sm:$0xff]   ;;  %v8653_v26 = vld [vmem:[%s9589_s20 + $0x894] ss:$8 sps:$4 sm:$0xff]  }
 0x2a8   : > { %1813 = vmatprep.mubr.bf16.mxu1 %v1570_v47  ;;  %3276 = vmatprep.mubr.bf16.mxu0 %v3033_v49  ;;  %v3004_v47 = vrot.slane %v2953_v16, 3  ;;  %v3010_v49 = vrot.slane %v2955_v37, 3  ;;  %v1574_v2 = vpack.c.bf16 %v1550_v53, %v1546_v41  ;;  %v3037_v5 = vpack.c.bf16 %v3013_v51, %v3009_v50  ;;  %v8656_v56 = vld [vmem:[%s9589_s20 + $0x8a4] ss:$8 sps:$4 sm:$0xff]   ;;  %v8654_v30 = vld [vmem:[%s9589_s20 + $0x8a0] ss:$8 sps:$4 sm:$0xff]  }
 0x2a9   : > { %v1543_v62 = vsel %vm1510_vm5, %v1541_v42, %v1542_v44  ;;  %v8659_v31 = vld [vmem:[%s9589_s20 + $0x8b4] ss:$8 sps:$4 sm:$0xff]   ;;  %v8657_v32 = vld [vmem:[%s9589_s20 + $0x8b0] ss:$8 sps:$4 sm:$0xff]   ;;  %v3355_v53 = vrot.slane %v3323_v48, 4 }
 0x2aa   : > { %3618 = vmatpush1.bf16.msra.mxu0 %v8627_v9  ;;  %7888 = vmatpush1.bf16.msra.mxu1 %v8627_v9  ;;  %v3334_v9 = vld [vmem:[#allocation2 + $0xb8] sm:$0xf]  ;;  %v3006_v3 = vsel %vm2973_vm6, %v3004_v47, %v3005_v52  ;;  %v3011_v11 = vsel %vm2973_vm6, %v3005_v52, %v3010_v49  ;;  %v1573_v12 = vpack.c.bf16 %v1548_v57, %v1543_v62  ;;  %v8665_v16 = vld [vmem:[%s9589_s20 + $0x8d4] ss:$8 sps:$4 sm:$0xff]   ;;  %v3356_v47 = vrot.slane %v8689_v43, 4 }
 0x2ab   : > { %3619 = vmatprep.subr.bf16.mxu0 %v8632_v0  ;;  %7873 = vmatprep.subr.bf16.mxu1 %v8632_v0  ;;  %v8688_v0 = vld [vmem:[#allocation2 + $0x28] sm:$0xff]  ;;  %v3036_v29 = vpack.c.bf16 %v3011_v11, %v3006_v3  ;;  %v8663_v37 = vld [vmem:[%s9589_s20 + $0x8d0] ss:$8 sps:$4 sm:$0xff]   ;;  %v3328_v41 = vld [vmem:[#allocation2 + $0x58] sm:$0xf0]  ;;  %v3361_v49 = vrot.slane %v3325_v39, 4 }
 0x2ac   : > { %v3359_v1 = vrot.slane %v8688_v0, 4  ;;  %v3330_v42 = vld [vmem:[#allocation2 + $0x78] sm:$0xf]  ;;  %v3336_v44 = vld [vmem:[#allocation2 + $0xd8] sm:$0xf0]  ;;  %v3368_v51 = vrot.slane %v3328_v41, 4  ;;  %v3357_v0 = vsel %vm396_vm1, %v3355_v53, %v3356_v47 }
 0x2ad   : > { %1814 = vmatmul.mubr.bf16.gmra.mrb[4].mxu1 %v1569_v23  ;;  %3277 = vmatmul.mubr.bf16.gmra.mrb[4].mxu0 %v3032_v14  ;;  %v3378_v23 = vrot.slane %v3332_v60, 4  ;;  %v3383_v14 = vrot.slane %v3334_v9, 4  ;;  %v3338_v52 = vld [vmem:[#allocation2 + $0xf8] sm:$0xf]  ;;  %v8671_v60 = vld [vmem:[%s9589_s20 + $0x8f4] ss:$8 sps:$4 sm:$0xff]  }
 0x2ae   : > { %3620 = vmatpush1.bf16.msra.mxu0 %v8630_v15  ;;  %7889 = vmatpush1.bf16.msra.mxu1 %v8630_v15  ;;  %v3360_v63 = vsel %vm396_vm1, %v3358_v59, %v3359_v1  ;;  %v3364_v34 = vsel %vm396_vm1, %v3359_v1, %v3363_v17  ;;  %v3373_v9 = vrot.slane %v3330_v42, 4  ;;  %v3393_v62 = vrot.slane %v3338_v52, 4  ;;  %v8669_v1 = vld [vmem:[%s9589_s20 + $0x8f0] ss:$8 sps:$4 sm:$0xff]   ;;  %v3327_v3 = vld [vmem:[#allocation2 + $0x50] sm:$0xf0] }
 0x2af   : > { %3621 = vmatprep.subr.bf16.mxu0 %v8635_v21  ;;  %7874 = vmatprep.subr.bf16.mxu1 %v8635_v21  ;;  %v3380_v15 = vsel %vm396_vm1, %v3378_v23, %v3379_v4  ;;  %v3384_v19 = vsel %vm396_vm1, %v3379_v4, %v3383_v14  ;;  %v3412_v45 = vpack.c.bf16 %v3364_v34, %v3360_v63  ;;  %v3329_v11 = vld [vmem:[#allocation2 + $0x70] sm:$0xf]  ;;  %v3335_v23 = vld [vmem:[#allocation2 + $0xd0] sm:$0xf0]  ;;  %v3365_v34 = vrot.slane %v3327_v3, 4 }
 0x2b0   : > { %1823 = vmatprep.mubr.bf16.mxu1 %v1572_v36  ;;  %3286 = vmatprep.mubr.bf16.mxu0 %v3035_v28  ;;  %v3416_v21 = vpack.c.bf16 %v3384_v19, %v3380_v15  ;;  %v8645_v36 = vld [vmem:[%s9589_s20 + $0x870] ss:$8 sps:$4 sm:$0xff]   ;;  %v3370_v57 = vsel %vm396_vm1, %v3368_v51, %v3369_v13  ;;  %v3371_v15 = vrot.slane %v3329_v11, 4 }
 0x2b1   : > { %v8651_v28 = vld [vmem:[%s9589_s20 + $0x890] ss:$8 sps:$4 sm:$0xff]  }
 0x2b2   : > { %3622 = vmatpush1.bf16.msra.mxu0 %v8633_v38  ;;  %7890 = vmatpush1.bf16.msra.mxu1 %v8633_v38  ;;  %v8668_v38 = vld [vmem:[%s9589_s20 + $0x8e4] ss:$8 sps:$4 sm:$0xff]   ;;  %v3337_v14 = vld [vmem:[#allocation2 + $0xf0] sm:$0xf] }
 0x2b3   : > { %3623 = vmatprep.subr.bf16.mxu0 %v8638_v40  ;;  %7875 = vmatprep.subr.bf16.mxu1 %v8638_v40  ;;  %v3333_v40 = vld [vmem:[#allocation2 + $0xb0] sm:$0xf] }
 0x2b4   : > { %v3381_v50 = vrot.slane %v3333_v40, 4 }
 0x2b5   : > { %1824 = vmatmul.mubr.bf16.gmra.mrb[8].mxu1 %v1571_v6  ;;  %3287 = vmatmul.mubr.bf16.gmra.mrb[8].mxu0 %v3034_v10  ;;  %v3376_v6 = vrot.slane %v9968_v7, 4  ;;  %v8666_v10 = vld [vmem:[%s9589_s20 + $0x8e0] ss:$8 sps:$4 sm:$0xff]   ;;  %v3362_v7 = vsel %vm396_vm1, %v3356_v47, %v3361_v49 }
 0x2b6   : > { %3624 = vmatpush1.bf16.msra.mxu0 %v8636_v55  ;;  %7891 = vmatpush1.bf16.msra.mxu1 %v8636_v55  ;;  %v3375_v55 = vrot.slane %v3331_v27, 4 }
 0x2b7   : > { %3625 = vmatprep.subr.bf16.mxu0 %v8641_v46  ;;  %7876 = vmatprep.subr.bf16.mxu1 %v8641_v46  ;;  %v3388_v46 = vrot.slane %v3336_v44, 4 }
 0x2b8   : > { %1833 = vmatprep.mubr.bf16.mxu1 %v1574_v2  ;;  %3296 = vmatprep.mubr.bf16.mxu0 %v3037_v5  ;;  %v3389_v2 = vrot.slane %v9979_v61, 4  ;;  %v3377_v4 = vsel %vm396_vm1, %v3375_v55, %v3376_v6  ;;  %v3382_v5 = vsel %vm396_vm1, %v3376_v6, %v3381_v50  ;;  %v3374_v61 = vsel %vm396_vm1, %v3369_v13, %v3373_v9 }
 0x2b9   : > { %v3415_v63 = vpack.c.bf16 %v3382_v5, %v3377_v4  ;;  %v3414_v19 = vpack.c.bf16 %v3374_v61, %v3370_v57 }
 0x2ba   : > { %3626 = vmatpush1.bf16.msra.mxu0 %v8639_v24  ;;  %7892 = vmatpush1.bf16.msra.mxu1 %v8639_v24  ;;  %v3390_v59 = vsel %vm396_vm1, %v3388_v46, %v3389_v2  ;;  %v3394_v17 = vsel %vm396_vm1, %v3389_v2, %v3393_v62  ;;  %v8691_v24 = vld [vmem:[#allocation2 + $0x60] sm:$0xff]  ;;  %v3708_v2 = vlaneseq }
 0x2bb   : > { %3627 = vmatprep.subr.bf16.mxu0 %v8644_v8  ;;  %7877 = vmatprep.subr.bf16.mxu1 %v8644_v8  ;;  %v3366_v8 = vrot.slane %v8691_v24, 4 }
 0x2bc   : > { %v10165_v62 = vshrl.u32 %v3708_v2, 7 }
 0x2bd   : > { %1834 = vmatmul.mubr.bf16.gmra.mrb[12].mxu1 %v1573_v12  ;;  %3297 = vmatmul.mubr.bf16.gmra.mrb[12].mxu0 %v3036_v29  ;;  %v3386_v12 = vrot.slane %v9991_v18, 4  ;;  %v3411_v29 = vpack.c.bf16 %v3362_v7, %v3357_v0  ;;  %v3706_v7 = vld [vmem:[%s3705_s23] sm:$0x3] }
 0x2be   : > { %3628 = vmatpush1.bf16.msra.mxu0 %v8642_v20  ;;  %7893 = vmatpush1.bf16.msra.mxu1 %v8642_v20  ;;  %v3418_v20 = vpack.c.bf16 %v3394_v17, %v3390_v59  ;;  %v10168_v0 = vsub.s32 0, %v10165_v62 }
 0x2bf   : > { %3629 = vmatprep.subr.bf16.mxu0 %v8647_v22  ;;  %7878 = vmatprep.subr.bf16.mxu1 %v8647_v22  ;;  %v3385_v22 = vrot.slane %v3335_v23, 4 }
 0x2c0   : > { %3647 = vmatprep.mubr.bf16.mxu0 %v3412_v45  ;;  %3667 = vmatprep.mubr.bf16.mxu1 %v3416_v21  ;;  %v3391_v45 = vrot.slane %v3337_v14, 4  ;;  %v3367_v21 = vsel %vm396_vm1, %v3365_v34, %v3366_v8  ;;  %v10174_v4 = vrot.slane %v3706_v7, %v10168_v0 }
 0x2c1   : > { %v3387_v18 = vsel %vm396_vm1, %v3385_v22, %v3386_v12 }
 0x2c2   : > { %3630 = vmatpush1.bf16.msra.mxu0 %v8645_v36  ;;  %7894 = vmatpush1.bf16.msra.mxu1 %v8645_v36  ;;  %v3372_v36 = vsel %vm396_vm1, %v3366_v8, %v3371_v15 }
 0x2c3   : > { %3631 = vmatprep.subr.bf16.mxu0 %v8650_v25  ;;  %7879 = vmatprep.subr.bf16.mxu1 %v8650_v25  ;;  %v3392_v25 = vsel %vm396_vm1, %v3386_v12, %v3391_v45 }
 0x2c6   : > { %3632 = vmatpush1.bf16.msra.mxu0 %v8648_v54  ;;  %7895 = vmatpush1.bf16.msra.mxu1 %v8648_v54  ;;  %v3413_v54 = vpack.c.bf16 %v3372_v36, %v3367_v21 }
 0x2c7   : > { %3633 = vmatprep.subr.bf16.mxu0 %v8653_v26  ;;  %7880 = vmatprep.subr.bf16.mxu1 %v8653_v26  ;;  %v3417_v26 = vpack.c.bf16 %v3392_v25, %v3387_v18 }
 0x2ca   : > { %3634 = vmatpush1.bf16.msra.mxu0 %v8651_v28  ;;  %7896 = vmatpush1.bf16.msra.mxu1 %v8651_v28 }
 0x2cb   : > { %3635 = vmatprep.subr.bf16.mxu0 %v8656_v56  ;;  %7881 = vmatprep.subr.bf16.mxu1 %v8656_v56 }
 0x2ce   : > { %3636 = vmatpush1.bf16.msra.mxu0 %v8654_v30  ;;  %7897 = vmatpush1.bf16.msra.mxu1 %v8654_v30 }
 0x2cf   : > { %3637 = vmatprep.subr.bf16.mxu0 %v8659_v31  ;;  %7882 = vmatprep.subr.bf16.mxu1 %v8659_v31 }
 0x2d2   : > { %3638 = vmatpush1.bf16.msra.mxu0 %v8657_v32  ;;  %7898 = vmatpush1.bf16.msra.mxu1 %v8657_v32 }
 0x2d3   : > { %3639 = vmatprep.subr.bf16.mxu0 %v8662_v33  ;;  %7883 = vmatprep.subr.bf16.mxu1 %v8662_v33 }
 0x2d6   : > { %3640 = vmatpush1.bf16.msra.mxu0 %v8660_v35  ;;  %7899 = vmatpush1.bf16.msra.mxu1 %v8660_v35 }
 0x2d7   : > { %3641 = vmatprep.subr.bf16.mxu0 %v8665_v16  ;;  %7884 = vmatprep.subr.bf16.mxu1 %v8665_v16 }
 0x2da   : > { %3642 = vmatpush1.bf16.msra.mxu0 %v8663_v37  ;;  %7900 = vmatpush1.bf16.msra.mxu1 %v8663_v37 }
 0x2db   : > { %3643 = vmatprep.subr.bf16.mxu0 %v8668_v38  ;;  %7885 = vmatprep.subr.bf16.mxu1 %v8668_v38 }
 0x2de   : > { %3644 = vmatpush1.bf16.msra.mxu0 %v8666_v10  ;;  %7901 = vmatpush1.bf16.msra.mxu1 %v8666_v10 }
 0x2df   : > { %3645 = vmatprep.subr.bf16.mxu0 %v8671_v60  ;;  %7886 = vmatprep.subr.bf16.mxu1 %v8671_v60 }
 0x2e2   : > { %3646 = vmatpush1.bf16.msra.mxu0 %v8669_v1  ;;  %7902 = vmatpush1.bf16.msra.mxu1 %v8669_v1  ;;  %v10171_v1 = vsub.s32 1, %v10165_v62 }
 0x2e4   : > { %v10177_v3 = vrot.slane %v3706_v7, %v10171_v1 }
 0x2e5   : > { %3648 = vmatmul.mubr.bf16.vlgmr.msra.gmra.mrb[0].mxu0 %v3411_v29  ;;  %3668 = vmatmul.mubr.bf16.vlgmr.msra.gmra.mrb[16].mxu1 %v3415_v63 }
 0x2e6   : > { %3657 = vmatprep.mubr.bf16.mxu0 %v3414_v19  ;;  %3677 = vmatprep.mubr.bf16.mxu1 %v3418_v20 }
 0x2ed   : > { %3658 = vmatmul.mubr.bf16.gmra.mrb[4].mxu0 %v3413_v54  ;;  %3678 = vmatmul.mubr.bf16.gmra.mrb[20].mxu1 %v3417_v26 }
 0x378   : > { %v1805_v28 = vpop.f32.mrb[0].mxu1 }
 0x379   : > { %v1807_v56 = vpop.f32.mrb[1].mxu1 }
 0x37a   : > { %v1809_v30 = vpop.f32.mrb[2].mxu1 }
 0x37b   : > { %v1811_v31 = vpop.f32.mrb[3].mxu1 }
 0x380   : > { %v10150_v32 = vpop.f32.mrb[4].mxu1 }
 0x381   : > { %v10152_v33 = vpop.f32.mrb[5].mxu1 }
 0x382   : > { %v10154_v35 = vpop.f32.mrb[6].mxu1 }
 0x383   : > { %v10156_v16 = vpop.f32.mrb[7].mxu1 }
 0x388   : > { %v1825_v37 = vpop.f32.mrb[8].mxu1  ;;  %v3288_v38 = vpop.f32.mrb[8].mxu0 }
 0x389   : > { %v7911_v48 = vadd.f32 %v3288_v38, %v1825_v37  ;;  %v1827_v39 = vpop.f32.mrb[9].mxu1  ;;  %v3290_v27 = vpop.f32.mrb[9].mxu0 }
 0x38a   : > { %v7913_v40 = vadd.f32 %v3290_v27, %v1827_v39  ;;  %v1829_v41 = vpop.f32.mrb[10].mxu1  ;;  %v3292_v42 = vpop.f32.mrb[10].mxu0 }
 0x38b   : > { %v7915_v44 = vadd.f32 %v3292_v42, %v1829_v41  ;;  %v1831_v52 = vpop.f32.mrb[11].mxu1  ;;  %v3294_v53 = vpop.f32.mrb[11].mxu0 }
 0x38c   : > { %v7917_v43 = vadd.f32 %v3294_v53, %v1831_v52 }
 0x390   : > { %v1835_v47 = vpop.f32.mrb[12].mxu1  ;;  %v3298_v49 = vpop.f32.mrb[12].mxu0 }
 0x391   : > { %v7919_v6 = vadd.f32 %v3298_v49, %v1835_v47  ;;  %v1837_v10 = vpop.f32.mrb[13].mxu1  ;;  %v3300_v55 = vpop.f32.mrb[13].mxu0 }
 0x392   : > { %v10158_v50 = vadd.f32 %v3300_v55, %v1837_v10  ;;  %v1839_v51 = vpop.f32.mrb[14].mxu1  ;;  %v3302_v58 = vpop.f32.mrb[14].mxu0 }
 0x393   : > { %v10160_v13 = vadd.f32 %v3302_v58, %v1839_v51  ;;  %v1841_v60 = vpop.f32.mrb[15].mxu1  ;;  %v3304_v9 = vpop.f32.mrb[15].mxu0 }
 0x394   : > { %v10162_v46 = vadd.f32 %v3304_v9, %v1841_v60 }
 0x3b8   : > { %v3649_v5 = vpop.f32.mrb[0].mxu0  ;;  %v3669_v57 = vpop.f32.mrb[16].mxu1 }
 0x3b9   : > { %v7903_v11 = vadd.f32 %v3649_v5, %v1805_v28  ;;  %v7912_v61 = vadd.f32 %v7911_v48, %v3669_v57  ;;  %v3651_v59 = vpop.f32.mrb[1].mxu0  ;;  %v3671_v17 = vpop.f32.mrb[17].mxu1 }
 0x3ba   : > { %v7904_v23 = vadd.f32 %v3651_v59, %v1807_v56  ;;  %v7914_v14 = vadd.f32 %v7913_v40, %v3671_v17  ;;  %v3653_v24 = vpop.f32.mrb[2].mxu0  ;;  %v3673_v8 = vpop.f32.mrb[18].mxu1 }
 0x3bb   : > { %v3718_v12 = vadd.f32 %v7903_v11, %v10174_v4  ;;  %v3726_v29 = vadd.f32 %v7912_v61, %v10174_v4  ;;  %v7905_v63 = vadd.f32 %v3653_v24, %v1809_v30  ;;  %v7916_v34 = vadd.f32 %v7915_v44, %v3673_v8  ;;  %v3655_v15 = vpop.f32.mrb[3].mxu0  ;;  %v3675_v19 = vpop.f32.mrb[19].mxu1 }
 0x3bc   : > { %v3719_v20 = vadd.f32 %v7904_v23, %v10177_v3  ;;  %v3727_v22 = vadd.f32 %v7914_v14, %v10177_v3  ;;  %v7906_v45 = vadd.f32 %v3655_v15, %v1811_v31  ;;  %v7918_v21 = vadd.f32 %v7917_v43, %v3675_v19 }
 0x3bd   : > { %v3734_v36 = vmax.f32 %v3718_v12, 0.0  ;;  %v3742_v18 = vmax.f32 %v3726_v29, 0.0  ;;  %v3720_v25 = vadd.f32 %v7905_v63, %v10174_v4  ;;  %v3728_v54 = vadd.f32 %v7916_v34, %v10174_v4 }
 0x3be   : > { %v3735_v26 = vmax.f32 %v3719_v20, 0.0  ;;  %v3743_v28 = vmax.f32 %v3727_v22, 0.0  ;;  %v3721_v56 = vadd.f32 %v7906_v45, %v10177_v3  ;;  %v3729_v30 = vadd.f32 %v7918_v21, %v10177_v3 }
 0x3bf   : > { %3750 = vst [vmem:[#allocation2 + $0x10] sm:$0xff] %v3734_v36  ;;  %3758 = vst [vmem:[#allocation2 + $0x90] sm:$0xff] %v3742_v18  ;;  %v3736_v37 = vmax.f32 %v3720_v25, 0.0  ;;  %v3744_v38 = vmax.f32 %v3728_v54, 0.0 }
 0x3c0   : > { %3751 = vst [vmem:[#allocation2 + $0x18] sm:$0xff] %v3735_v26  ;;  %3759 = vst [vmem:[#allocation2 + $0x98] sm:$0xff] %v3743_v28  ;;  %v3737_v31 = vmax.f32 %v3721_v56, 0.0  ;;  %v3745_v48 = vmax.f32 %v3729_v30, 0.0  ;;  %v3659_v39 = vpop.f32.mrb[4].mxu0  ;;  %v3679_v27 = vpop.f32.mrb[20].mxu1 }
 0x3c1   : > { %3752 = vst [vmem:[#allocation2 + $0x20] sm:$0xff] %v3736_v37  ;;  %3760 = vst [vmem:[#allocation2 + $0xa0] sm:$0xff] %v3744_v38  ;;  %v7907_v40 = vadd.f32 %v3659_v39, %v10150_v32  ;;  %v7920_v41 = vadd.f32 %v7919_v6, %v3679_v27  ;;  %v3661_v42 = vpop.f32.mrb[5].mxu0  ;;  %v3681_v44 = vpop.f32.mrb[21].mxu1 }
 0x3c2   : > { %3753 = vst [vmem:[#allocation2 + $0x28] sm:$0xff] %v3737_v31  ;;  %3761 = vst [vmem:[#allocation2 + $0xa8] sm:$0xff] %v3745_v48  ;;  %v7908_v52 = vadd.f32 %v3661_v42, %v10152_v33  ;;  %v7922_v53 = vadd.f32 %v10158_v50, %v3681_v44  ;;  %v3663_v43 = vpop.f32.mrb[6].mxu0  ;;  %v3683_v47 = vpop.f32.mrb[22].mxu1 }
 0x3c3   : > { %v3722_v49 = vadd.f32 %v7907_v40, %v10174_v4  ;;  %v3730_v10 = vadd.f32 %v7920_v41, %v10174_v4  ;;  %v7909_v55 = vadd.f32 %v3663_v43, %v10154_v35  ;;  %v7924_v51 = vadd.f32 %v10160_v13, %v3683_v47  ;;  %v3665_v32 = vpop.f32.mrb[7].mxu0  ;;  %v3685_v6 = vpop.f32.mrb[23].mxu1 }
 0x3c4   : > { %v3723_v58 = vadd.f32 %v7908_v52, %v10177_v3  ;;  %v3731_v60 = vadd.f32 %v7922_v53, %v10177_v3  ;;  %v7910_v33 = vadd.f32 %v3665_v32, %v10156_v16  ;;  %v7926_v50 = vadd.f32 %v10162_v46, %v3685_v6 }
 0x3c5   : > { %v3738_v9 = vmax.f32 %v3722_v49, 0.0  ;;  %v3746_v2 = vmax.f32 %v3730_v10, 0.0  ;;  %v3724_v7 = vadd.f32 %v7909_v55, %v10174_v4  ;;  %v3732_v5 = vadd.f32 %v7924_v51, %v10174_v4 }
 0x3c6   : > { %v3739_v57 = vmax.f32 %v3723_v58, 0.0  ;;  %v3747_v35 = vmax.f32 %v3731_v60, 0.0  ;;  %v3725_v13 = vadd.f32 %v7910_v33, %v10177_v3  ;;  %v3733_v11 = vadd.f32 %v7926_v50, %v10177_v3  ;;  %v3766_v4 = vld [vmem:[#allocation2 + $0x10] sm:$0xff] (%p344_p0)  }
 0x3c7   : > { %3754 = vst [vmem:[#allocation2 + $0x50] sm:$0xff] %v3738_v9  ;;  %3762 = vst [vmem:[#allocation2 + $0xd0] sm:$0xff] %v3746_v2  ;;  %v3740_v61 = vmax.f32 %v3724_v7, 0.0  ;;  %v3748_v59 = vmax.f32 %v3732_v5, 0.0  ;;  %346 = sbr.rel (!%p344_p0) target bundleno = 415 (0x19f), region = 112  ;;  %v3767_v3 = vld [vmem:[#allocation2 + $0x18] sm:$0xff] (%p344_p0)  }
 0x3c8   : > { %3755 = vst [vmem:[#allocation2 + $0x58] sm:$0xff] %v3739_v57  ;;  %3763 = vst [vmem:[#allocation2 + $0xd8] sm:$0xff] %v3747_v35  ;;  %v3741_v16 = vmax.f32 %v3725_v13, 0.0  ;;  %v3749_v46 = vmax.f32 %v3733_v11, 0.0  ;;  %v3768_v17 = vld [vmem:[#allocation2 + $0x20] sm:$0xff] (%p344_p0)   ;;  %v3774_v29 = vld [vmem:[#allocation2 + $0x90] sm:$0xff] (%p344_p0)  }
 0x3c9   : > { %3756 = vst [vmem:[#allocation2 + $0x60] sm:$0xff] %v3740_v61  ;;  %3764 = vst [vmem:[#allocation2 + $0xe0] sm:$0xff] %v3748_v59  ;;  %v3769_v23 = vld [vmem:[#allocation2 + $0x28] sm:$0xff] (%p344_p0)   ;;  %v3775_v63 = vld [vmem:[#allocation2 + $0x98] sm:$0xff] (%p344_p0)  }
 0x3ca   : > { %3757 = vst [vmem:[#allocation2 + $0x68] sm:$0xff] %v3741_v16  ;;  %3765 = vst [vmem:[#allocation2 + $0xe8] sm:$0xff] %v3749_v46  ;;  %v3776_v34 = vld [vmem:[#allocation2 + $0xa0] sm:$0xff] (%p344_p0)   ;;  %v3777_v15 = vld [vmem:[#allocation2 + $0xa8] sm:$0xff] (%p344_p0)  }
 0x3ce   :  { %v3770_v14 = vld [vmem:[#allocation2 + $0x50] sm:$0xff]  }
 0x3cf   :  { %v3771_v24 = vld [vmem:[#allocation2 + $0x58] sm:$0xff]   ;;  %v3778_v19 = vld [vmem:[#allocation2 + $0xd0] sm:$0xff]  }
 0x3d0   :  { %v3772_v8 = vld [vmem:[#allocation2 + $0x60] sm:$0xff]   ;;  %v3779_v20 = vld [vmem:[#allocation2 + $0xd8] sm:$0xff]  }
 0x3d1   :  { %v3773_v12 = vld [vmem:[#allocation2 + $0x68] sm:$0xff]   ;;  %v3780_v22 = vld [vmem:[#allocation2 + $0xe0] sm:$0xff]  }
 0x3d2   :  { %v3781_v45 = vld [vmem:[#allocation2 + $0xe8] sm:$0xff]  }
 0x3d3 LB: > { %v3867_v21 = vld [vmem:[#allocation3 + $0x8] sm:$0xff]  ;;  %v3869_v36 = vld [vmem:[#allocation3 + $0x18] sm:$0xff]  ;;  %v3866_v18 = vld [vmem:[#allocation3] sm:$0xff]  ;;  %v10283_v42 = vsub.f32 %v9358_v3, %v9326_v63  ;;  %v10286_v53 = vsub.f32 %v9350_v23, %v9318_v15  ;;  %v10289_v43 = vsub.f32 %v9342_v24, %v9310_v20  ;;  %v10292_v47 = vsub.f32 %v9334_v12, %v9302_v45  ;;  %s7618_s1 = smul.u32 1536, %s9366_s24  ;;  %s7617_s26 = sshll.u32 %s9366_s24, 5  ;;  %s9366_s24 = sphi %s10237_s24, %s3787_s24   ;;  %v9362_v4 = vphi %v3766_v4, %v10958_v4   ;;  %v9358_v3 = vphi %v3767_v3, %v10957_v3   ;;  %v9354_v17 = vphi %v3768_v17, %v10956_v17   ;;  %v9350_v23 = vphi %v3769_v23, %v10955_v23   ;;  %v9346_v14 = vphi %v3770_v14, %v10954_v14   ;;  %v9342_v24 = vphi %v3771_v24, %v10953_v24   ;;  %v9338_v8 = vphi %v3772_v8, %v10952_v8   ;;  %v9334_v12 = vphi %v3773_v12, %v10951_v12   ;;  %v9330_v29 = vphi %v3774_v29, %v6345_v29   ;;  %v9326_v63 = vphi %v3775_v63, %v6346_v63   ;;  %v9322_v34 = vphi %v3776_v34, %v6347_v34   ;;  %v9318_v15 = vphi %v3777_v15, %v6348_v15   ;;  %v9314_v19 = vphi %v3778_v19, %v6349_v19   ;;  %v9310_v20 = vphi %v3779_v20, %v6350_v20   ;;  %v9306_v22 = vphi %v3780_v22, %v6351_v22   ;;  %v9302_v45 = vphi %v3781_v45, %v6352_v45  }
 0x3d4   : > { %v7711_v25 = vpack.c.bf16 %v3869_v36, %v3867_v21  ;;  %v3868_v54 = vld [vmem:[#allocation3 + $0x10] sm:$0xff]  ;;  %v3871_v26 = vld [vmem:[#allocation3 + $0x28] sm:$0xff]  ;;  %v3873_v28 = vld [vmem:[#allocation3 + $0x38] sm:$0xff]  ;;  %s10373_s27 = scalar_lea.vmem [#allocation11], %s7617_s26  ;;  %s3787_s24 = sadd.s32 1, %s9366_s24  }
 0x3d5   : > { %v7713_v56 = vpack.c.bf16 %v3868_v54, %v3866_v18  ;;  %v7715_v30 = vpack.c.bf16 %v3873_v28, %v3871_v26  ;;  %v3870_v37 = vld [vmem:[#allocation3 + $0x20] sm:$0xff]  ;;  %v3872_v38 = vld [vmem:[#allocation3 + $0x30] sm:$0xff]  ;;  %v3875_v31 = vld [vmem:[#allocation3 + $0x48] sm:$0xff]  ;;  %v3838_v49 = vmul.f32 %v10283_v42, %v10283_v42  ;;  %v3828_v55 = vadd.f32 %v10286_v53, %v10283_v42  ;;  %s10315_s25 = scalar_lea.vmem [#allocation9], %s7618_s1  ;;  %p10864_p1 = scmp.ge.s32.totalorder %s3787_s24, 4  }
 0x3d6   : > { %7712 = vmatprep.subr.bf16.mxu1 %v7711_v25  ;;  %v3877_v48 = vld [vmem:[#allocation3 + $0x58] sm:$0xff]  ;;  %v7717_v39 = vpack.c.bf16 %v3872_v38, %v3870_v37  ;;  %v3874_v40 = vld [vmem:[#allocation3 + $0x40] sm:$0xff]  ;;  %v3876_v41 = vld [vmem:[#allocation3 + $0x50] sm:$0xff]  ;;  %v3840_v51 = vmul.f32 %v10286_v53, %v10286_v53  ;;  %v3842_v60 = vmul.f32 %v10289_v43, %v10289_v43  ;;  %v3844_v2 = vmul.f32 %v10292_v47, %v10292_v47  ;;  %s9384_s6 = smov (%p10864_p1), [#allocation15]  }
 0x3d7   : > { %7714 = vmatpush1.bf16.msra.mxu1 %v7713_v56  ;;  %v7719_v27 = vpack.c.bf16 %v3877_v48, %v3875_v31  ;;  %v3879_v44 = vld [vmem:[#allocation3 + $0x68] sm:$0xff]  ;;  %v3881_v52 = vld [vmem:[#allocation3 + $0x78] sm:$0xff]  ;;  %v7721_v10 = vpack.c.bf16 %v3876_v41, %v3874_v40  ;;  %v3878_v6 = vld [vmem:[#allocation3 + $0x60] sm:$0xff]  ;;  %v3829_v9 = vadd.f32 %v3828_v55, %v10289_v43  ;;  %v10309_v48 = vsub.f32 %v9362_v4, %v9330_v29  ;;  %s6550_s7 = sshll.u32 (%p10864_p1), %s9384_s6, 4  ;;  %s6551_s7 = int_to_ptr.vmem [resolvable:$true] %s6550_s7 }
 0x3d8   : > { %7716 = vmatprep.subr.bf16.mxu1 %v7715_v30  ;;  %v7723_v32 = vpack.c.bf16 %v3881_v52, %v3879_v44  ;;  %v3880_v58 = vld [vmem:[#allocation3 + $0x70] sm:$0xff]  ;;  %v3883_v33 = vld [vmem:[#allocation3 + $0x88] sm:$0xff]  ;;  %v3885_v50 = vld [vmem:[#allocation3 + $0x98] sm:$0xff]  ;;  %v3854_v7 = vadd.f32 %v3840_v51, %v3838_v49  ;;  %v10319_v55 = vsub.f32 %v9346_v14, %v9314_v19  ;;  %v10327_v14 = vsub.f32 %v9338_v8, %v9306_v22  ;;  %s9192_s22 = scalar_lea.vmem (%p10864_p1), %s6551_s7, 512  ;;  %p9197_p3 = scmp.lt.s32.totalorder (%p10864_p1), %s6551_s7, %s6551_s7 }
 0x3d9   : > { %v7725_v5 = vpack.c.bf16 %v3880_v58, %v3878_v6  ;;  %v3830_v57 = vadd.f32 %v3829_v9, %v10292_v47  ;;  %v7727_v13 = vpack.c.bf16 %v3885_v50, %v3883_v33  ;;  %v3882_v11 = vld [vmem:[#allocation3 + $0x80] sm:$0xff]  ;;  %v3884_v61 = vld [vmem:[#allocation3 + $0x90] sm:$0xff]  ;;  %v3887_v59 = vld [vmem:[#allocation3 + $0xa8] sm:$0xff]  ;;  %p9193_p2 = scmp.ne.s32.totalorder (%p10864_p1), %s6551_s7, %s9192_s22  ;;  %p9198_p4 = scmp.lt.s32.totalorder (%p10864_p1), %s9192_s22, %s9192_s22 }
 0x3da   : > { %v3855_v35 = vadd.f32 %v3854_v7, %v3842_v60  ;;  %v3889_v16 = vld [vmem:[#allocation3 + $0xb8] sm:$0xff]  ;;  %v7729_v23 = vpack.c.bf16 %v3884_v61, %v3882_v11  ;;  %v3886_v24 = vld [vmem:[#allocation3 + $0xa0] sm:$0xff]  ;;  %v3888_v12 = vld [vmem:[#allocation3 + $0xb0] sm:$0xff]  ;;  %v3841_v11 = vmul.f32 %v10319_v55, %v10319_v55 }
 0x3db   : > { %7718 = vmatpush1.bf16.msra.mxu1 %v7717_v39  ;;  %v3831_v46 = vrot.slane %v3830_v57, 4  ;;  %v7731_v18 = vpack.c.bf16 %v3889_v16, %v3887_v59  ;;  %v3891_v25 = vld [vmem:[#allocation3 + $0xc8] sm:$0xff]  ;;  %v3893_v54 = vld [vmem:[#allocation3 + $0xd8] sm:$0xff]  ;;  %v7733_v56 = vpack.c.bf16 %v3888_v12, %v3886_v24  ;;  %v3890_v30 = vld [vmem:[#allocation3 + $0xc0] sm:$0xff]  ;;  %v3843_v12 = vmul.f32 %v10327_v14, %v10327_v14  ;;  %p9199_p5 = por (%p10864_p1), %p9198_p4, %p9197_p3 }
 0x3dc   : > { %7720 = vmatprep.subr.bf16.mxu1 %v7719_v27  ;;  %v3856_v3 = vadd.f32 %v3855_v35, %v3844_v2  ;;  %v3892_v37 = vld [vmem:[#allocation3 + $0xd0] sm:$0xff]  ;;  %v7735_v39 = vpack.c.bf16 %v3893_v54, %v3891_v25  ;;  %v10313_v27 = vsub.f32 %v9354_v17, %v9322_v34  ;;  %v3895_v40 = vld [vmem:[#allocation3 + $0xe8] sm:$0xff]  ;;  %v3897_v41 = vld [vmem:[#allocation3 + $0xf8] sm:$0xff]  ;;  %v3837_v17 = vmul.f32 %v10309_v48, %v10309_v48 }
 0x3dd   : > { %v3832_v21 = vadd.f32 %v3831_v46, %v3830_v57  ;;  %v7737_v49 = vpack.c.bf16 %v3892_v37, %v3890_v30  ;;  %v3896_v4 = vld [vmem:[#allocation3 + $0xf0] sm:$0xff]  ;;  %v7739_v58 = vpack.c.bf16 %v3897_v41, %v3895_v40  ;;  %v3899_v60 = vld [vmem:[#allocation3 + $0x108] sm:$0xff]  ;;  %v3901_v33 = vld [vmem:[#allocation3 + $0x118] sm:$0xff]  ;;  %p9200_p6 = pnand (%p10864_p1), %p9199_p5, %p9193_p2 }
 0x3de   : > { %v3857_v36 = vrot.slane %v3856_v3, 4  ;;  %v3839_v6 = vmul.f32 %v10313_v27, %v10313_v27  ;;  %v3898_v2 = vld [vmem:[#allocation3 + $0x100] sm:$0xff]  ;;  %v3900_v7 = vld [vmem:[#allocation3 + $0x110] sm:$0xff]  ;;  %v3905_v57 = vld [vmem:[#allocation3 + $0x138] sm:$0xff]  ;;  %v7743_v59 = vpack.c.bf16 %v3901_v33, %v3899_v60 }
 0x3df   : > { %7722 = vmatpush1.bf16.msra.mxu1 %v7721_v10  ;;  %v3833_v26 = vrot.slane %v3832_v21, 2  ;;  %v3894_v10 = vld [vmem:[#allocation3 + $0xe0] sm:$0xff]  ;;  %v3904_v46 = vld [vmem:[#allocation3 + $0x130] sm:$0xff]  ;;  %v7745_v8 = vpack.c.bf16 %v3900_v7, %v3898_v2  ;;  %v3915_v40 = vld [vmem:[#allocation3 + $0x188] sm:$0xff] }
 0x3e0   : > { %7724 = vmatprep.subr.bf16.mxu1 %v7723_v32  ;;  %v3858_v28 = vadd.f32 %v3857_v36, %v3856_v3  ;;  %v7741_v9 = vpack.c.bf16 %v3896_v4, %v3894_v10  ;;  %v3845_v61 = vadd.f32 %v3839_v6, %v3837_v17  ;;  %v3902_v16 = vld [vmem:[#allocation3 + $0x120] sm:$0xff]  ;;  %v3907_v3 = vld [vmem:[#allocation3 + $0x148] sm:$0xff]  ;;  %v3908_v25 = vld [vmem:[#allocation3 + $0x150] sm:$0xff] }
 0x3e1   : > { %v3834_v38 = vadd.f32 %v3833_v26, %v3832_v21  ;;  %v7749_v54 = vpack.c.bf16 %v3904_v46, %v3902_v16  ;;  %v3911_v26 = vld [vmem:[#allocation3 + $0x168] sm:$0xff]  ;;  %v3917_v41 = vld [vmem:[#allocation3 + $0x198] sm:$0xff]  ;;  %v3914_v10 = vld [vmem:[#allocation3 + $0x180] sm:$0xff] }
 0x3e2   : > { %v3859_v31 = vrot.slane %v3858_v28, 2  ;;  %v3846_v21 = vadd.f32 %v3845_v61, %v3841_v11  ;;  %v3916_v4 = vld [vmem:[#allocation3 + $0x190] sm:$0xff]  ;;  %v3921_v17 = vld [vmem:[#allocation3 + $0x1b8] sm:$0xff]  ;;  %v7759_v60 = vpack.c.bf16 %v3917_v41, %v3915_v40  ;;  %v3918_v33 = vld [vmem:[#allocation3 + $0x1a0] sm:$0xff] }
 0x3e3   : > { %7726 = vmatpush1.bf16.msra.mxu1 %v7725_v5  ;;  %v3835_v44 = vrot.slane %v3834_v38, 1  ;;  %v3903_v5 = vld [vmem:[#allocation3 + $0x128] sm:$0xff]  ;;  %v3925_v7 = vld [vmem:[#allocation3 + $0x1d8] sm:$0xff]  ;;  %v3924_v11 = vld [vmem:[#allocation3 + $0x1d0] sm:$0xff] }
 0x3e4   : > { %7728 = vmatprep.subr.bf16.mxu1 %v7727_v13  ;;  %v3860_v52 = vadd.f32 %v3859_v31, %v3858_v28  ;;  %v3819_v13 = vadd.f32 %v10313_v27, %v10309_v48  ;;  %v7747_v36 = vpack.c.bf16 %v3905_v57, %v3903_v5  ;;  %v3913_v28 = vld [vmem:[#allocation3 + $0x178] sm:$0xff]  ;;  %v3847_v30 = vadd.f32 %v3846_v21, %v3843_v12  ;;  %v3912_v31 = vld [vmem:[#allocation3 + $0x170] sm:$0xff]  ;;  %v3923_v2 = vld [vmem:[#allocation3 + $0x1c8] sm:$0xff] }
 0x3e5   : > { %v3836_v51 = vadd.f32 %v3835_v44, %v3834_v38  ;;  %v3910_v38 = vld [vmem:[#allocation3 + $0x160] sm:$0xff]  ;;  %v3929_v16 = vld [vmem:[#allocation3 + $0x1f8] sm:$0xff] }
 0x3e6   : > { %v3861_v32 = vrot.slane %v3860_v52, 1  ;;  %v3820_v24 = vadd.f32 %v3819_v13, %v10319_v55  ;;  %v3922_v13 = vld [vmem:[#allocation3 + $0x1c0] sm:$0xff]  ;;  %v8703_v40 = vld [vmem:[%s10315_s25 + $0x134] ss:$8 sps:$4 sm:$0xff]   ;;  %v8701_v41 = vld [vmem:[%s10315_s25 + $0x130] ss:$8 sps:$4 sm:$0xff]  }
 0x3e7   : > { %7730 = vmatpush1.bf16.msra.mxu1 %v7729_v23  ;;  %v3909_v23 = vld [vmem:[#allocation3 + $0x158] sm:$0xff]  ;;  %v7769_v12 = vpack.c.bf16 %v3924_v11, %v3922_v13  ;;  %v8736_v11 = vld [vmem:[%s10315_s25 + $0x1e4] ss:$8 sps:$4 sm:$0xff]  }
 0x3e8   : > { %7732 = vmatprep.subr.bf16.mxu1 %v7731_v18  ;;  %v3862_v50 = vadd.f32 %v3861_v32, %v3860_v52  ;;  %v3906_v18 = vld [vmem:[#allocation3 + $0x140] sm:$0xff]  ;;  %v7751_v37 = vpack.c.bf16 %v3909_v23, %v3907_v3  ;;  %v3848_v52 = vrot.slane %v3847_v30, 4  ;;  %v3919_v32 = vld [vmem:[#allocation3 + $0x1a8] sm:$0xff]  ;;  %v7767_v3 = vpack.c.bf16 %v3925_v7, %v3923_v2  ;;  %v8727_v2 = vld [vmem:[%s10315_s25 + $0x1b4] ss:$8 sps:$4 sm:$0xff]  }
 0x3e9   : > { %v3926_v23 = vld [vmem:[#allocation3 + $0x1e0] sm:$0xff]  ;;  %v8725_v7 = vld [vmem:[%s10315_s25 + $0x1b0] ss:$8 sps:$4 sm:$0xff]  }
 0x3ea   : > { %v3865_v35 = vsel %vm1510_vm5, %v3836_v51, %v3862_v50  ;;  %v7757_v51 = vpack.c.bf16 %v3912_v31, %v3910_v38  ;;  %v3920_v50 = vld [vmem:[#allocation3 + $0x1b0] sm:$0xff]  ;;  %v8700_v31 = vld [vmem:[%s10315_s25 + $0x124] ss:$8 sps:$4 sm:$0xff]  }
 0x3eb   : > { %7734 = vmatpush1.bf16.msra.mxu1 %v7733_v56  ;;  %3994 = vmatprep.mubr.f32.mxu1 %v3865_v35  ;;  %v3821_v56 = vadd.f32 %v3820_v24, %v10327_v14  ;;  %v7763_v35 = vpack.c.bf16 %v3921_v17, %v3919_v32  ;;  %v7765_v61 = vpack.c.bf16 %v3920_v50, %v3918_v33  ;;  %v3928_v24 = vld [vmem:[#allocation3 + $0x1f0] sm:$0xff]  ;;  %v8724_v50 = vld [vmem:[%s10315_s25 + $0x1a4] ss:$8 sps:$4 sm:$0xff]  }
 0x3ec   : > { %7736 = vmatprep.subr.bf16.mxu1 %v7735_v39  ;;  %v7753_v39 = vpack.c.bf16 %v3908_v25, %v3906_v18  ;;  %v8694_v25 = vld [vmem:[%s10315_s25 + $0x104] ss:$8 sps:$4 sm:$0xff]   ;;  %v8695_v38 = vld [vmem:[%s10315_s25 + $0x110] ss:$8 sps:$4 sm:$0xff]   ;;  %v8715_v32 = vld [vmem:[%s10315_s25 + $0x174] ss:$8 sps:$4 sm:$0xff]  }
 0x3ed   : > { %v3822_v44 = vrot.slane %v3821_v56, 4  ;;  %v8713_v17 = vld [vmem:[%s10315_s25 + $0x170] ss:$8 sps:$4 sm:$0xff]  }
 0x3ee   : > { %v8719_v33 = vld [vmem:[%s10315_s25 + $0x190] ss:$8 sps:$4 sm:$0xff]  }
 0x3ef   : > { %7738 = vmatpush1.bf16.msra.mxu1 %v7737_v49  ;;  %v7755_v49 = vpack.c.bf16 %v3913_v28, %v3911_v26  ;;  %v3823_v6 = vadd.f32 %v3822_v44, %v3821_v56  ;;  %v8692_v56 = vld [vmem:[%s10315_s25 + $0x100] ss:$8 sps:$4 sm:$0xff]   ;;  %v8706_v44 = vld [vmem:[%s10315_s25 + $0x144] ss:$8 sps:$4 sm:$0xff]   ;;  %v8731_v13 = vld [vmem:[%s10315_s25 + $0x1d0] ss:$8 sps:$4 sm:$0xff]  }
 0x3f0   : > { %7740 = vmatprep.subr.bf16.mxu1 %v7739_v58  ;;  %v3849_v58 = vadd.f32 %v3848_v52, %v3847_v30  ;;  %v8697_v30 = vld [vmem:[%s10315_s25 + $0x114] ss:$8 sps:$4 sm:$0xff]   ;;  %v8704_v52 = vld [vmem:[%s10315_s25 + $0x140] ss:$8 sps:$4 sm:$0xff]  }
 0x3f1   : > { %v3824_v5 = vrot.slane %v3823_v6, 2 }
 0x3f2   : > { %v3850_v57 = vrot.slane %v3849_v58, 2 }
 0x3f3   : > { %7742 = vmatpush1.bf16.msra.mxu1 %v7741_v9  ;;  %v7761_v9 = vpack.c.bf16 %v3916_v4, %v3914_v10  ;;  %v3825_v46 = vadd.f32 %v3824_v5, %v3823_v6  ;;  %v8707_v10 = vld [vmem:[%s10315_s25 + $0x150] ss:$8 sps:$4 sm:$0xff]   ;;  %v8712_v4 = vld [vmem:[%s10315_s25 + $0x164] ss:$8 sps:$4 sm:$0xff]  }
 0x3f4   : > { %7744 = vmatprep.subr.bf16.mxu1 %v7743_v59  ;;  %v3927_v59 = vld [vmem:[#allocation3 + $0x1e8] sm:$0xff] }
 0x3f5   : > { %v3826_v21 = vrot.slane %v3825_v46, 1  ;;  %v7771_v18 = vpack.c.bf16 %v3929_v16, %v3927_v59  ;;  %v8718_v6 = vld [vmem:[%s10315_s25 + $0x184] ss:$8 sps:$4 sm:$0xff]   ;;  %v8739_v59 = vld [vmem:[%s10315_s25 + $0x1f4] ss:$8 sps:$4 sm:$0xff]  }
 0x3f6   : > { %v8730_v5 = vld [vmem:[%s10315_s25 + $0x1c4] ss:$8 sps:$4 sm:$0xff]   ;;  %v8737_v16 = vld [vmem:[%s10315_s25 + $0x1f0] ss:$8 sps:$4 sm:$0xff]  }
 0x3f7   : > { %7746 = vmatpush1.bf16.msra.mxu1 %v7745_v8  ;;  %v3851_v8 = vadd.f32 %v3850_v57, %v3849_v58  ;;  %v3827_v26 = vadd.f32 %v3826_v21, %v3825_v46  ;;  %v8716_v58 = vld [vmem:[%s10315_s25 + $0x180] ss:$8 sps:$4 sm:$0xff]   ;;  %v8742_v46 = vld [vmem:[%s10315_s25 + $0x4] ss:$8 sps:$4 sm:$0xff]  }
 0x3f8   : > { %7748 = vmatprep.subr.bf16.mxu1 %v7747_v36  ;;  %v8728_v57 = vld [vmem:[%s10315_s25 + $0x1c0] ss:$8 sps:$4 sm:$0xff]  }
 0x3f9   : > { %v3852_v36 = vrot.slane %v3851_v8, 1 }
 0x3fb   : > { %7750 = vmatpush1.bf16.msra.mxu1 %v7749_v54  ;;  %v7773_v54 = vpack.c.bf16 %v3928_v24, %v3926_v23  ;;  %v3853_v28 = vadd.f32 %v3852_v36, %v3851_v8 }
 0x3fc   : > { %7752 = vmatprep.subr.bf16.mxu1 %v7751_v37 }
 0x3fd   : > { %v3864_v37 = vsel %vm1510_vm5, %v3827_v26, %v3853_v28 }
 0x3ff   : > { %7754 = vmatpush1.bf16.msra.mxu1 %v7753_v39  ;;  %v8698_v39 = vld [vmem:[%s10315_s25 + $0x120] ss:$8 sps:$4 sm:$0xff]  }
 0x400   : > { %7756 = vmatprep.subr.bf16.mxu1 %v7755_v49  ;;  %v8709_v49 = vld [vmem:[%s10315_s25 + $0x154] ss:$8 sps:$4 sm:$0xff]  }
 0x403   : > { %7758 = vmatpush1.bf16.msra.mxu1 %v7757_v51  ;;  %v8710_v51 = vld [vmem:[%s10315_s25 + $0x160] ss:$8 sps:$4 sm:$0xff]  }
 0x404   : > { %7760 = vmatprep.subr.bf16.mxu1 %v7759_v60  ;;  %v8721_v60 = vld [vmem:[%s10315_s25 + $0x194] ss:$8 sps:$4 sm:$0xff]  }
 0x407   : > { %7762 = vmatpush1.bf16.msra.mxu1 %v7761_v9  ;;  %v8722_v9 = vld [vmem:[%s10315_s25 + $0x1a0] ss:$8 sps:$4 sm:$0xff]  }
 0x408   : > { %7764 = vmatprep.subr.bf16.mxu1 %v7763_v35  ;;  %v8733_v35 = vld [vmem:[%s10315_s25 + $0x1d4] ss:$8 sps:$4 sm:$0xff]  }
 0x40b   : > { %7766 = vmatpush1.bf16.msra.mxu1 %v7765_v61  ;;  %v8734_v61 = vld [vmem:[%s10315_s25 + $0x1e0] ss:$8 sps:$4 sm:$0xff]  }
 0x40c   : > { %7768 = vmatprep.subr.bf16.mxu1 %v7767_v3 }
 0x40f   : > { %7770 = vmatpush1.bf16.msra.mxu1 %v7769_v12 }
 0x410   : > { %7772 = vmatprep.subr.bf16.mxu1 %v7771_v18 }
 0x413   : > { %7774 = vmatpush1.bf16.msra.mxu1 %v7773_v54 }
 0x414   : > { %4393 = vmatprep.subr.bf16.mxu1 %v8694_v25 }
 0x416   : > { %3995 = vmatmul.mubr.f32.vlgmr.msra.gmra.mrb[0].mxu1 %v3864_v37  ;;  %v3808_v37 = vld [vmem:[%s10373_s27 + $0x8] sm:$0xff] }
 0x417   : > { %4394 = vmatpush1.bf16.msra.mxu1 %v8692_v56  ;;  %v3807_v56 = vld [vmem:[%s10373_s27] sm:$0xff] }
 0x418   : > { %4395 = vmatprep.subr.bf16.mxu1 %v8697_v30 }
 0x41b   : > { %4396 = vmatpush1.bf16.msra.mxu1 %v8695_v38 }
 0x41c   : > { %4397 = vmatprep.subr.bf16.mxu1 %v8700_v31  ;;  %v4052_v31 = vrot.slane %v3807_v56, %v10168_v0 }
 0x41f   : > { %4398 = vmatpush1.bf16.msra.mxu1 %v8698_v39  ;;  %v4068_v39 = vrot.slane %v3807_v56, %v10171_v1 }
 0x420   : > { %4399 = vmatprep.subr.bf16.mxu1 %v8703_v40 }
 0x423   : > { %4400 = vmatpush1.bf16.msra.mxu1 %v8701_v41 }
 0x424   : > { %4401 = vmatprep.subr.bf16.mxu1 %v8706_v44 }
 0x427   : > { %4402 = vmatpush1.bf16.msra.mxu1 %v8704_v52  ;;  %v4056_v52 = vrot.slane %v3808_v37, %v10168_v0 }
 0x428   : > { %4403 = vmatprep.subr.bf16.mxu1 %v8709_v49  ;;  %v4072_v49 = vrot.slane %v3808_v37, %v10171_v1  ;;  %v8745_v37 = vld [vmem:[%s10315_s25 + $0x14] ss:$8 sps:$4 sm:$0xff]  }
 0x42b   : > { %4404 = vmatpush1.bf16.msra.mxu1 %v8707_v10 }
 0x42c   : > { %4405 = vmatprep.subr.bf16.mxu1 %v8712_v4 }
 0x42f   : > { %4406 = vmatpush1.bf16.msra.mxu1 %v8710_v51 }
 0x430   : > { %4407 = vmatprep.subr.bf16.mxu1 %v8715_v32 }
 0x433   : > { %4408 = vmatpush1.bf16.msra.mxu1 %v8713_v17 }
 0x434   : > { %4409 = vmatprep.subr.bf16.mxu1 %v8718_v6 }
 0x437   : > { %4410 = vmatpush1.bf16.msra.mxu1 %v8716_v58 }
 0x438   : > { %4411 = vmatprep.subr.bf16.mxu1 %v8721_v60 }
 0x43b   : > { %4412 = vmatpush1.bf16.msra.mxu1 %v8719_v33 }
 0x43c   : > { %4413 = vmatprep.subr.bf16.mxu1 %v8724_v50 }
 0x43f   : > { %4414 = vmatpush1.bf16.msra.mxu1 %v8722_v9 }
 0x440   : > { %4415 = vmatprep.subr.bf16.mxu1 %v8727_v2 }
 0x443   : > { %4416 = vmatpush1.bf16.msra.mxu1 %v8725_v7 }
 0x444   : > { %4417 = vmatprep.subr.bf16.mxu1 %v8730_v5 }
 0x447   : > { %4418 = vmatpush1.bf16.msra.mxu1 %v8728_v57 }
 0x448   : > { %4419 = vmatprep.subr.bf16.mxu1 %v8733_v35 }
 0x44b   : > { %4420 = vmatpush1.bf16.msra.mxu1 %v8731_v13 }
 0x44c   : > { %4421 = vmatprep.subr.bf16.mxu1 %v8736_v11 }
 0x44f   : > { %4422 = vmatpush1.bf16.msra.mxu1 %v8734_v61 }
 0x450   : > { %4423 = vmatprep.subr.bf16.mxu1 %v8739_v59 }
 0x453   : > { %4424 = vmatpush1.bf16.msra.mxu1 %v8737_v16 }
 0x454   : > { %4606 = vmatprep.subr.bf16.mxu1 %v8742_v46 }
 0x4e9   : > { %v3996_v8 = vpop.f32.mrb[0].mxu1 }
 0x4ea   : > { %v4001_v3 = vmul.f32 0.001953125, %v3996_v8  ;;  %v3998_v23 = vpop.f32.mrb[1].mxu1 }
 0x4eb   : > { %v4002_v24 = vmul.f32 0.001953125, %v3998_v23 }
 0x4ec   : > { %v4003_v12 = vmul.f32 %v4001_v3, %v4001_v3  ;;  %v4016_v30 = vrot.slane %v4001_v3, %v10168_v0 }
 0x4ed   : > { %v4004_v21 = vmul.f32 %v4002_v24, %v4002_v24  ;;  %v4020_v38 = vrot.slane %v4002_v24, %v10168_v0 }
 0x4ee   : > { %v4007_v36 = vrot.slane %v4003_v12, 7  ;;  %v4021_v41 = vsub.f32 %v10309_v48, %v4016_v30  ;;  %v4023_v44 = vsub.f32 %v10313_v27, %v4016_v30  ;;  %v4025_v4 = vsub.f32 %v10319_v55, %v4016_v30 }
 0x4ef   : > { %v4008_v18 = vrot.slane %v4004_v21, 7  ;;  %v4027_v51 = vsub.f32 %v10327_v14, %v4016_v30  ;;  %v4022_v17 = vsub.f32 %v10283_v42, %v4020_v38  ;;  %v4024_v6 = vsub.f32 %v10286_v53, %v4020_v38 }
 0x4f0   : > { %v4011_v25 = vsub.f32 %v4001_v3, %v4007_v36  ;;  %v4026_v58 = vsub.f32 %v10289_v43, %v4020_v38  ;;  %v4028_v48 = vsub.f32 %v10292_v47, %v4020_v38 }
 0x4f1   : > { %v4012_v54 = vsub.f32 %v4002_v24, %v4008_v18 }
 0x4f2   : > { %v4029_v26 = vadd.f32 1e-05, %v4011_v25 }
 0x4f3   : > { %v4030_v28 = vadd.f32 1e-05, %v4012_v54 }
 0x4f4   : > { %8980 = vrsqrt.f32 %v4029_v26 }
 0x4f5   : > { %8982 = vrsqrt.f32 %v4030_v28  ;;  %v8740_v28 = vld [vmem:[%s10315_s25] ss:$8 sps:$4 sm:$0xff]  }
 0x4fe   : > { %v8981_v40 = vpop.eup %8980 }
 0x4ff   : > { %v8983_v10 = vpop.eup %8982  ;;  %v4036_v32 = vrot.slane %v8981_v40, %v10171_v1  ;;  %v8748_v40 = vld [vmem:[%s10315_s25 + $0x24] ss:$8 sps:$4 sm:$0xff]  }
 0x500   : > { %v4040_v27 = vrot.slane %v8983_v10, %v10171_v1 }
 0x501   : > { %v4041_v60 = vmul.f32 %v4036_v32, %v4021_v41  ;;  %v4043_v33 = vmul.f32 %v4036_v32, %v4023_v44  ;;  %v4045_v50 = vmul.f32 %v4036_v32, %v4025_v4  ;;  %v4047_v9 = vmul.f32 %v4036_v32, %v4027_v51  ;;  %v8751_v51 = vld [vmem:[%s10315_s25 + $0x34] ss:$8 sps:$4 sm:$0xff]  }
 0x502   : > { %v4042_v2 = vmul.f32 %v4040_v27, %v4022_v17  ;;  %v4044_v55 = vmul.f32 %v4040_v27, %v4024_v6  ;;  %v4046_v7 = vmul.f32 %v4040_v27, %v4026_v58  ;;  %v4048_v14 = vmul.f32 %v4040_v27, %v4028_v48  ;;  %v8749_v6 = vld [vmem:[%s10315_s25 + $0x30] ss:$8 sps:$4 sm:$0xff]   ;;  %v8754_v48 = vld [vmem:[%s10315_s25 + $0x44] ss:$8 sps:$4 sm:$0xff]  }
 0x503   : > { %v4057_v5 = vmul.f32 %v4052_v31, %v4041_v60  ;;  %v4059_v57 = vmul.f32 %v4052_v31, %v4043_v33  ;;  %v4061_v35 = vmul.f32 %v4052_v31, %v4045_v50  ;;  %v4063_v42 = vmul.f32 %v4052_v31, %v4047_v9  ;;  %v4099_v31 = vld [vmem:[#allocation2 + $0x8] sm:$0x80]  ;;  %v5022_v60 = vld [vmem:[#allocation3 + $0x18] sm:$0xff]  ;;  %v5019_v33 = vld [vmem:[#allocation3] sm:$0xff] }
 0x504   : > { %v4058_v13 = vmul.f32 %v4056_v52, %v4042_v2  ;;  %v4060_v53 = vmul.f32 %v4056_v52, %v4044_v55  ;;  %v4062_v47 = vmul.f32 %v4056_v52, %v4046_v7  ;;  %v4064_v16 = vmul.f32 %v4056_v52, %v4048_v14  ;;  %v5020_v27 = vld [vmem:[#allocation3 + $0x8] sm:$0xff]  ;;  %v5021_v9 = vld [vmem:[#allocation3 + $0x10] sm:$0xff]  ;;  %v5026_v55 = vld [vmem:[#allocation3 + $0x38] sm:$0xff] }
 0x505   : > { %v4073_v11 = vadd.f32 %v4068_v39, %v4057_v5  ;;  %v4075_v43 = vadd.f32 %v4068_v39, %v4059_v57  ;;  %v4077_v61 = vadd.f32 %v4068_v39, %v4061_v35  ;;  %v4079_v59 = vadd.f32 %v4068_v39, %v4063_v42  ;;  %v8743_v39 = vld [vmem:[%s10315_s25 + $0x10] ss:$8 sps:$4 sm:$0xff]   ;;  %v5024_v2 = vld [vmem:[#allocation3 + $0x28] sm:$0xff]  ;;  %v5023_v5 = vld [vmem:[#allocation3 + $0x20] sm:$0xff] }
 0x506   : > { %v4074_v46 = vadd.f32 %v4072_v49, %v4058_v13  ;;  %v4076_v8 = vadd.f32 %v4072_v49, %v4060_v53  ;;  %v4078_v3 = vadd.f32 %v4072_v49, %v4062_v47  ;;  %v4080_v23 = vadd.f32 %v4072_v49, %v4064_v16  ;;  %v8746_v49 = vld [vmem:[%s10315_s25 + $0x20] ss:$8 sps:$4 sm:$0xff]   ;;  %v5025_v57 = vld [vmem:[#allocation3 + $0x30] sm:$0xff]  ;;  %v5030_v42 = vld [vmem:[#allocation3 + $0x58] sm:$0xff] }
 0x507   : > { %8984 = vtanh.f32 %v4073_v11  ;;  %v4125_v41 = vrot.slane %v4099_v31, 7  ;;  %v7775_v50 = vpack.c.bf16 %v5022_v60, %v5020_v27  ;;  %v7777_v7 = vpack.c.bf16 %v5021_v9, %v5019_v33  ;;  %v5028_v35 = vld [vmem:[#allocation3 + $0x48] sm:$0xff]  ;;  %v8757_v47 = vld [vmem:[%s10315_s25 + $0x54] ss:$8 sps:$4 sm:$0xff]   ;;  %v5043_v33 = vld [vmem:[#allocation3 + $0xc0] sm:$0xff] }
 0x508   : > { %8986 = vtanh.f32 %v4075_v43  ;;  %v7779_v14 = vpack.c.bf16 %v5026_v55, %v5024_v2  ;;  %v7781_v13 = vpack.c.bf16 %v5025_v57, %v5023_v5  ;;  %v8752_v53 = vld [vmem:[%s10315_s25 + $0x40] ss:$8 sps:$4 sm:$0xff]   ;;  %v7783_v11 = vpack.c.bf16 %v5030_v42, %v5028_v35  ;;  %v5034_v16 = vld [vmem:[#allocation3 + $0x78] sm:$0xff]  ;;  %v5049_v35 = vld [vmem:[#allocation3 + $0xf0] sm:$0xff] }
 0x509   : > { %8988 = vtanh.f32 %v4077_v61  ;;  %7776 = vmatprep.subr.bf16.mxu0 %v7775_v50  ;;  %v5027_v43 = vld [vmem:[#allocation3 + $0x40] sm:$0xff]  ;;  %v5029_v61 = vld [vmem:[#allocation3 + $0x50] sm:$0xff]  ;;  %v5048_v2 = vld [vmem:[#allocation3 + $0xe8] sm:$0xff] }
 0x50a   : > { %8990 = vtanh.f32 %v4079_v59  ;;  %7778 = vmatpush1.bf16.msra.mxu0 %v7777_v7  ;;  %v5032_v59 = vld [vmem:[#allocation3 + $0x68] sm:$0xff]  ;;  %v5045_v50 = vld [vmem:[#allocation3 + $0xd0] sm:$0xff]  ;;  %v5050_v55 = vld [vmem:[#allocation3 + $0xf8] sm:$0xff] }
 0x50b   : > { %8992 = vtanh.f32 %v4074_v46  ;;  %7780 = vmatprep.subr.bf16.mxu0 %v7779_v14  ;;  %v7785_v46 = vpack.c.bf16 %v5029_v61, %v5027_v43  ;;  %v8764_v27 = vld [vmem:[%s10315_s25 + $0x80] ss:$8 sps:$4 sm:$0xff]   ;;  %v8769_v9 = vld [vmem:[%s10315_s25 + $0x94] ss:$8 sps:$4 sm:$0xff]   ;;  %v7801_v7 = vpack.c.bf16 %v5045_v50, %v5043_v33  ;;  %v8767_v14 = vld [vmem:[%s10315_s25 + $0x90] ss:$8 sps:$4 sm:$0xff]   ;;  %v7803_v5 = vpack.c.bf16 %v5050_v55, %v5048_v2 }
 0x50c   : > { %8994 = vtanh.f32 %v4076_v8  ;;  %v8755_v8 = vld [vmem:[%s10315_s25 + $0x50] ss:$8 sps:$4 sm:$0xff]   ;;  %v5047_v57 = vld [vmem:[#allocation3 + $0xe0] sm:$0xff]  ;;  %v8793_v50 = vld [vmem:[%s10315_s25 + $0x214] ss:$8 sps:$4 sm:$0xff]  }
 0x50d   : > { %8996 = vtanh.f32 %v4078_v3  ;;  %v7787_v3 = vpack.c.bf16 %v5034_v16, %v5032_v59  ;;  %v8772_v42 = vld [vmem:[%s10315_s25 + $0xa4] ss:$8 sps:$4 sm:$0xff]   ;;  %v8770_v43 = vld [vmem:[%s10315_s25 + $0xa0] ss:$8 sps:$4 sm:$0xff]   ;;  %v5053_v59 = vld [vmem:[#allocation3 + $0x110] sm:$0xff] }
 0x50e   : > { %8998 = vtanh.f32 %v4080_v23  ;;  %7782 = vmatpush1.bf16.msra.mxu0 %v7781_v13  ;;  %v5031_v23 = vld [vmem:[#allocation3 + $0x60] sm:$0xff]  ;;  %v5052_v13 = vld [vmem:[#allocation3 + $0x108] sm:$0xff]  ;;  %v8775_v16 = vld [vmem:[%s10315_s25 + $0xb4] ss:$8 sps:$4 sm:$0xff]  }
 0x50f   : > { %7784 = vmatprep.subr.bf16.mxu0 %v7783_v11  ;;  %v7805_v11 = vpack.c.bf16 %v5049_v35, %v5047_v57  ;;  %v4664_v55 = vld [vmem:[#allocation2 + $0x38] sm:$0x1]  ;;  %v8796_v35 = vld [vmem:[%s10315_s25 + $0x224] ss:$8 sps:$4 sm:$0xff]  }
 0x511   : > { %v10393_v24 = vpop.eup %8984 }
 0x512   : > { %v10395_v12 = vpop.eup %8986  ;;  %4090 = vst [vmem:[#allocation2 + $0x10] sm:$0xff] %v10393_v24  ;;  %7786 = vmatpush1.bf16.msra.mxu0 %v7785_v46 }
 0x513   : > { %v10398_v21 = vpop.eup %8988  ;;  %4092 = vst [vmem:[#allocation2 + $0x20] sm:$0xff] %v10395_v12  ;;  %v4193_v30 = vpack.c.bf16 %v10395_v12, %v10393_v24  ;;  %7788 = vmatprep.subr.bf16.mxu0 %v7787_v3  ;;  %v8778_v3 = vld [vmem:[%s10315_s25 + $0xc4] ss:$8 sps:$4 sm:$0xff]  }
 0x514   : > { %v10401_v36 = vpop.eup %8990  ;;  %4094 = vst [vmem:[#allocation2 + $0x50] sm:$0xff] %v10398_v21  ;;  %v4133_v57 = vrot.slane %v10398_v21, 7 }
 0x515   : > { %v8993_v18 = vpop.eup %8992  ;;  %4096 = vst [vmem:[#allocation2 + $0x60] sm:$0xff] %v10401_v36  ;;  %v4195_v4 = vpack.c.bf16 %v10401_v36, %v10398_v21 }
 0x516   : > { %v10405_v25 = vpop.eup %8994  ;;  %4091 = vst [vmem:[#allocation2 + $0x18] sm:$0xff] %v8993_v18  ;;  %v4126_v44 = vrot.slane %v8993_v18, 7 }
 0x517   : > { %v10407_v54 = vpop.eup %8996  ;;  %4093 = vst [vmem:[#allocation2 + $0x28] sm:$0xff] %v10405_v25  ;;  %v4194_v26 = vpack.c.bf16 %v10405_v25, %v8993_v18  ;;  %v5033_v18 = vld [vmem:[#allocation3 + $0x70] sm:$0xff] }
 0x518   : > { %v10412_v56 = vpop.eup %8998  ;;  %4095 = vst [vmem:[#allocation2 + $0x58] sm:$0xff] %v10407_v54  ;;  %v4127_v32 = vsel %vm1510_vm5, %v4125_v41, %v4126_v44  ;;  %v8763_v41 = vld [vmem:[%s10315_s25 + $0x74] ss:$8 sps:$4 sm:$0xff]  }
 0x519   : > { %4097 = vst [vmem:[#allocation2 + $0x68] sm:$0xff] %v10412_v56  ;;  %4425 = vmatprep.mubr.bf16.mxu1 %v4194_v26  ;;  %v4196_v38 = vpack.c.bf16 %v10412_v56, %v10407_v54  ;;  %v8760_v26 = vld [vmem:[%s10315_s25 + $0x64] ss:$8 sps:$4 sm:$0xff]  }
 0x51a   : > { %4426 = vmatmul.mubr.bf16.vlgmr.msra.gmra.mrb[4].mxu1 %v4193_v30  ;;  %v5038_v30 = vld [vmem:[#allocation3 + $0x98] sm:$0xff] }
 0x51b   : > { %4607 = vmatpush1.bf16.msra.mxu1 %v8740_v28  ;;  %4435 = vmatprep.mubr.bf16.mxu1 %v4196_v38  ;;  %v5036_v28 = vld [vmem:[#allocation3 + $0x88] sm:$0xff] }
 0x51c   : > { %4608 = vmatprep.subr.bf16.mxu1 %v8745_v37  ;;  %v7789_v37 = vpack.c.bf16 %v5033_v18, %v5031_v23  ;;  %v8758_v38 = vld [vmem:[%s10315_s25 + $0x60] ss:$8 sps:$4 sm:$0xff]   ;;  %v7791_v31 = vpack.c.bf16 %v5038_v30, %v5036_v28  ;;  %v8781_v18 = vld [vmem:[%s10315_s25 + $0xd4] ss:$8 sps:$4 sm:$0xff]   ;;  %v8784_v28 = vld [vmem:[%s10315_s25 + $0xe4] ss:$8 sps:$4 sm:$0xff]  }
 0x51d   : > { %v8776_v23 = vld [vmem:[%s10315_s25 + $0xc0] ss:$8 sps:$4 sm:$0xff]  }
 0x51e   : > { %v4103_v52 = vld [vmem:[#allocation2 + $0x28] sm:$0x7f]  ;;  %7790 = vmatpush1.bf16.msra.mxu0 %v7789_v37  ;;  %v4102_v30 = vld [vmem:[#allocation2 + $0x20] sm:$0x7f] }
 0x51f   : > { %4609 = vmatpush1.bf16.msra.mxu1 %v8743_v39  ;;  %v4130_v10 = vrot.slane %v4103_v52, 7  ;;  %v5035_v39 = vld [vmem:[#allocation3 + $0x80] sm:$0xff]  ;;  %v5042_v52 = vld [vmem:[#allocation3 + $0xb8] sm:$0xff]  ;;  %7792 = vmatprep.subr.bf16.mxu0 %v7791_v31 }
 0x520   : > { %4610 = vmatprep.subr.bf16.mxu1 %v8748_v40  ;;  %v5037_v40 = vld [vmem:[#allocation3 + $0x90] sm:$0xff]  ;;  %v8782_v37 = vld [vmem:[%s10315_s25 + $0xe0] ss:$8 sps:$4 sm:$0xff]  }
 0x521   : > { %v4131_v17 = vsel %vm1510_vm5, %v4126_v44, %v4130_v10  ;;  %v5040_v44 = vld [vmem:[#allocation3 + $0xa8] sm:$0xff]  ;;  %v8761_v10 = vld [vmem:[%s10315_s25 + $0x70] ss:$8 sps:$4 sm:$0xff]   ;;  %v8787_v31 = vld [vmem:[%s10315_s25 + $0xf4] ss:$8 sps:$4 sm:$0xff]  }
 0x522   : > { %4436 = vmatmul.mubr.bf16.gmra.mrb[8].mxu1 %v4195_v4  ;;  %v4151_v58 = vpack.c.bf16 %v4131_v17, %v4127_v32  ;;  %v7795_v4 = vpack.c.bf16 %v5042_v52, %v5040_v44  ;;  %v5041_v32 = vld [vmem:[#allocation3 + $0xb0] sm:$0xff]  ;;  %v8766_v17 = vld [vmem:[%s10315_s25 + $0x84] ss:$8 sps:$4 sm:$0xff]   ;;  %v4123_v52 = vrot.slane %v10393_v24, 7  ;;  %v4660_v24 = vld [vmem:[#allocation2 + $0x18] sm:$0xfe] }
 0x523   : > { %4611 = vmatpush1.bf16.msra.mxu1 %v8746_v49  ;;  %v7793_v49 = vpack.c.bf16 %v5037_v40, %v5035_v39  ;;  %v4098_v39 = vld [vmem:[#allocation2] sm:$0x80]  ;;  %v4128_v40 = vrot.slane %v4102_v30, 7  ;;  %v8809_v30 = vld [vmem:[%s10315_s25 + $0x270] ss:$8 sps:$4 sm:$0xff]  }
 0x524   : > { %4638 = vmatprep.mubr.bf16.mxu1 %v4151_v58  ;;  %4612 = vmatprep.subr.bf16.mxu1 %v8751_v51  ;;  %v5039_v51 = vld [vmem:[#allocation3 + $0xa0] sm:$0xff]  ;;  %v5046_v58 = vld [vmem:[#allocation3 + $0xd8] sm:$0xff] }
 0x525   : > { %7794 = vmatpush1.bf16.msra.mxu0 %v7793_v49  ;;  %v8785_v49 = vld [vmem:[%s10315_s25 + $0xf0] ss:$8 sps:$4 sm:$0xff]  }
 0x526   : > { %7796 = vmatprep.subr.bf16.mxu0 %v7795_v4  ;;  %v8790_v4 = vld [vmem:[%s10315_s25 + $0x204] ss:$8 sps:$4 sm:$0xff]  }
 0x527   : > { %4613 = vmatpush1.bf16.msra.mxu1 %v8749_v6  ;;  %v5044_v6 = vld [vmem:[#allocation3 + $0xc8] sm:$0xff] }
 0x528   : > { %4614 = vmatprep.subr.bf16.mxu1 %v8754_v48  ;;  %v7797_v48 = vpack.c.bf16 %v5041_v32, %v5039_v51  ;;  %v7799_v60 = vpack.c.bf16 %v5046_v58, %v5044_v6  ;;  %v4136_v32 = vrot.slane %v10407_v54, 7  ;;  %v4108_v58 = vld [vmem:[#allocation2 + $0x60] sm:$0x7f] }
 0x529   : > { %v4138_v54 = vrot.slane %v4108_v58, 7  ;;  %v4666_v58 = vld [vmem:[#allocation2 + $0x58] sm:$0xfe] }
 0x52a   : > { %7798 = vmatpush1.bf16.msra.mxu0 %v7797_v48 }
 0x52b   : > { %4615 = vmatpush1.bf16.msra.mxu1 %v8752_v53  ;;  %7800 = vmatprep.subr.bf16.mxu0 %v7799_v60  ;;  %v5054_v53 = vld [vmem:[#allocation3 + $0x118] sm:$0xff] }
 0x52c   : > { %4616 = vmatprep.subr.bf16.mxu1 %v8757_v47  ;;  %v7807_v61 = vpack.c.bf16 %v5054_v53, %v5052_v13  ;;  %v5051_v47 = vld [vmem:[#allocation3 + $0x100] sm:$0xff]  ;;  %v4692_v13 = vrot.slane %v4664_v55, 1  ;;  %v4139_v53 = vsel %vm1510_vm5, %v4133_v57, %v4138_v54  ;;  %v4698_v54 = vrot.slane %v10412_v56, 1 }
 0x52d   : > { %v7809_v46 = vpack.c.bf16 %v5053_v59, %v5051_v47  ;;  %v8799_v59 = vld [vmem:[%s10315_s25 + $0x234] ss:$8 sps:$4 sm:$0xff]  }
 0x52e   : > { %7802 = vmatpush1.bf16.msra.mxu0 %v7801_v7  ;;  %v4687_v7 = vrot.slane %v4660_v24, 1 }
 0x52f   : > { %4617 = vmatpush1.bf16.msra.mxu1 %v8755_v8  ;;  %7804 = vmatprep.subr.bf16.mxu0 %v7803_v5  ;;  %v8773_v8 = vld [vmem:[%s10315_s25 + $0xb0] ss:$8 sps:$4 sm:$0xff]  }
 0x530   : > { %4618 = vmatprep.subr.bf16.mxu1 %v8760_v26  ;;  %v8779_v26 = vld [vmem:[%s10315_s25 + $0xd0] ss:$8 sps:$4 sm:$0xff]  }
 0x532   : > { %7806 = vmatpush1.bf16.msra.mxu0 %v7805_v11 }
 0x533   : > { %4619 = vmatpush1.bf16.msra.mxu1 %v8758_v38  ;;  %7808 = vmatprep.subr.bf16.mxu0 %v7807_v61  ;;  %v4109_v38 = vld [vmem:[#allocation2 + $0x68] sm:$0x7f] }
 0x534   : > { %4620 = vmatprep.subr.bf16.mxu1 %v8763_v41  ;;  %v4105_v41 = vld [vmem:[#allocation2 + $0x48] sm:$0x80]  ;;  %v4140_v44 = vrot.slane %v4109_v38, 7  ;;  %v8794_v61 = vld [vmem:[%s10315_s25 + $0x220] ss:$8 sps:$4 sm:$0xff]  }
 0x535   : > { %v4135_v51 = vrot.slane %v4105_v41, 7  ;;  %v8812_v38 = vld [vmem:[%s10315_s25 + $0x280] ss:$8 sps:$4 sm:$0xff]  }
 0x536   : > { %7810 = vmatpush1.bf16.msra.mxu0 %v7809_v46  ;;  %v4141_v6 = vsel %vm1510_vm5, %v4136_v32, %v4140_v44  ;;  %v8802_v46 = vld [vmem:[%s10315_s25 + $0x244] ss:$8 sps:$4 sm:$0xff]   ;;  %v8818_v41 = vld [vmem:[%s10315_s25 + $0x2a0] ss:$8 sps:$4 sm:$0xff]   ;;  %v8823_v44 = vld [vmem:[%s10315_s25 + $0x2b4] ss:$8 sps:$4 sm:$0xff]  }
 0x537   : > { %4621 = vmatpush1.bf16.msra.mxu1 %v8761_v10  ;;  %v4122_v10 = vrot.slane %v4098_v39, 7  ;;  %v4137_v33 = vsel %vm1510_vm5, %v4135_v51, %v4136_v32  ;;  %v8815_v39 = vld [vmem:[%s10315_s25 + $0x290] ss:$8 sps:$4 sm:$0xff]   ;;  %v8832_v32 = vld [vmem:[%s10315_s25 + $0x2e4] ss:$8 sps:$4 sm:$0xff]  }
 0x538   : > { %4622 = vmatprep.subr.bf16.mxu1 %v8766_v17  ;;  %v4129_v17 = vsel %vm1510_vm5, %v4123_v52, %v4128_v40  ;;  %v4153_v2 = vpack.c.bf16 %v4141_v6, %v4137_v33  ;;  %v8820_v40 = vld [vmem:[%s10315_s25 + $0x2a4] ss:$8 sps:$4 sm:$0xff]   ;;  %v8827_v51 = vld [vmem:[%s10315_s25 + $0x2d0] ss:$8 sps:$4 sm:$0xff]   ;;  %v8830_v6 = vld [vmem:[%s10315_s25 + $0x2e0] ss:$8 sps:$4 sm:$0xff]  }
 0x539   : > { %v4124_v48 = vsel %vm1510_vm5, %v4122_v10, %v4123_v52  ;;  %v8821_v52 = vld [vmem:[%s10315_s25 + $0x2b0] ss:$8 sps:$4 sm:$0xff]   ;;  %v8824_v10 = vld [vmem:[%s10315_s25 + $0x2c0] ss:$8 sps:$4 sm:$0xff]   ;;  %v4697_v33 = vrot.slane %v4666_v58, 1 }
 0x53a   : > { %v4150_v60 = vpack.c.bf16 %v4129_v17, %v4124_v48  ;;  %v4659_v17 = vld [vmem:[#allocation2 + $0x10] sm:$0xfe] }
 0x53b   : > { %4623 = vmatpush1.bf16.msra.mxu1 %v8764_v27  ;;  %v8788_v27 = vld [vmem:[%s10315_s25 + $0x200] ss:$8 sps:$4 sm:$0xff]   ;;  %v8835_v48 = vld [vmem:[%s10315_s25 + $0x2f4] ss:$8 sps:$4 sm:$0xff]   ;;  %v4684_v24 = vrot.slane %v4659_v17, 1 }
 0x53c   : > { %4624 = vmatprep.subr.bf16.mxu1 %v8769_v9  ;;  %v4104_v9 = vld [vmem:[#allocation2 + $0x40] sm:$0x80]  ;;  %v5073_v58 = vld [vmem:[#allocation3 + $0x1b0] sm:$0xff] }
 0x53d   : > { %v4132_v5 = vrot.slane %v4104_v9, 7  ;;  %v4685_v9 = vrot.slane %v10395_v12, 1  ;;  %v4695_v12 = vrot.slane %v10401_v36, 1  ;;  %v5061_v36 = vld [vmem:[#allocation3 + $0x150] sm:$0xff] }
 0x53f   : > { %4625 = vmatpush1.bf16.msra.mxu1 %v8767_v14  ;;  %v8791_v14 = vld [vmem:[%s10315_s25 + $0x210] ss:$8 sps:$4 sm:$0xff]  }
 0x540   : > { %4626 = vmatprep.subr.bf16.mxu1 %v8772_v42  ;;  %v4688_v42 = vrot.slane %v10405_v25, 1 }
 0x542   : > { %v4689_v11 = vsel %vm2209_vm2, %v4687_v7, %v4688_v42  ;;  %v4693_v21 = vsel %vm2209_vm2, %v4688_v42, %v4692_v13  ;;  %v4686_v7 = vsel %vm2209_vm2, %v4684_v24, %v4685_v9  ;;  %v4669_v13 = vld [vmem:[#allocation2 + $0x70] sm:$0x1]  ;;  %v5078_v24 = vld [vmem:[#allocation3 + $0x1d8] sm:$0xff] }
 0x543   : > { %4627 = vmatpush1.bf16.msra.mxu1 %v8770_v43  ;;  %v4134_v43 = vsel %vm1510_vm5, %v4132_v5, %v4133_v57  ;;  %v4713_v25 = vpack.c.bf16 %v4693_v21, %v4689_v11  ;;  %v4665_v5 = vld [vmem:[#allocation2 + $0x50] sm:$0xfe]  ;;  %v4700_v56 = vrot.slane %v4669_v13, 1  ;;  %v5056_v21 = vld [vmem:[#allocation3 + $0x128] sm:$0xff] }
 0x544   : > { %4628 = vmatprep.subr.bf16.mxu1 %v8775_v16  ;;  %v4152_v47 = vpack.c.bf16 %v4139_v53, %v4134_v43  ;;  %v8797_v16 = vld [vmem:[%s10315_s25 + $0x230] ss:$8 sps:$4 sm:$0xff]   ;;  %v4694_v11 = vrot.slane %v4665_v5, 1 }
 0x546   : > { %v4696_v43 = vsel %vm2209_vm2, %v4694_v11, %v4695_v12 }
 0x547   : > { %4629 = vmatpush1.bf16.msra.mxu1 %v8773_v8  ;;  %v8800_v8 = vld [vmem:[%s10315_s25 + $0x240] ss:$8 sps:$4 sm:$0xff]  }
 0x548   : > { %4630 = vmatprep.subr.bf16.mxu1 %v8778_v3  ;;  %v8805_v3 = vld [vmem:[%s10315_s25 + $0x254] ss:$8 sps:$4 sm:$0xff]  }
 0x54b   : > { %4631 = vmatpush1.bf16.msra.mxu1 %v8776_v23  ;;  %v8803_v23 = vld [vmem:[%s10315_s25 + $0x250] ss:$8 sps:$4 sm:$0xff]  }
 0x54c   : > { %4632 = vmatprep.subr.bf16.mxu1 %v8781_v18  ;;  %v8808_v18 = vld [vmem:[%s10315_s25 + $0x264] ss:$8 sps:$4 sm:$0xff]  }
 0x54f   : > { %4633 = vmatpush1.bf16.msra.mxu1 %v8779_v26  ;;  %v8806_v26 = vld [vmem:[%s10315_s25 + $0x260] ss:$8 sps:$4 sm:$0xff]  }
 0x550   : > { %4634 = vmatprep.subr.bf16.mxu1 %v8784_v28  ;;  %v8811_v28 = vld [vmem:[%s10315_s25 + $0x274] ss:$8 sps:$4 sm:$0xff]  }
 0x553   : > { %4635 = vmatpush1.bf16.msra.mxu1 %v8782_v37  ;;  %v8814_v37 = vld [vmem:[%s10315_s25 + $0x284] ss:$8 sps:$4 sm:$0xff]  }
 0x554   : > { %4636 = vmatprep.subr.bf16.mxu1 %v8787_v31  ;;  %v8817_v31 = vld [vmem:[%s10315_s25 + $0x294] ss:$8 sps:$4 sm:$0xff]  }
 0x557   : > { %4637 = vmatpush1.bf16.msra.mxu1 %v8785_v49  ;;  %v8826_v49 = vld [vmem:[%s10315_s25 + $0x2c4] ss:$8 sps:$4 sm:$0xff]  }
 0x558   : > { %4912 = vmatprep.subr.bf16.mxu1 %v8790_v4  ;;  %v8829_v4 = vld [vmem:[%s10315_s25 + $0x2d4] ss:$8 sps:$4 sm:$0xff]  }
 0x55a   : > { %4639 = vmatmul.mubr.bf16.vlgmr.msra.gmra.mrb[4].mxu1 %v4150_v60  ;;  %v4670_v60 = vld [vmem:[#allocation2 + $0x78] sm:$0x1] }
 0x55b   : > { %4648 = vmatprep.mubr.bf16.mxu1 %v4153_v2  ;;  %4913 = vmatpush1.bf16.msra.mxu1 %v8788_v27  ;;  %v4663_v27 = vld [vmem:[#allocation2 + $0x30] sm:$0x1]  ;;  %v4702_v55 = vrot.slane %v4670_v60, 1  ;;  %v5075_v60 = vld [vmem:[#allocation3 + $0x1c0] sm:$0xff] }
 0x55c   : > { %4914 = vmatprep.subr.bf16.mxu1 %v8793_v50  ;;  %v8833_v50 = vld [vmem:[%s10315_s25 + $0x2f0] ss:$8 sps:$4 sm:$0xff]   ;;  %v4690_v2 = vrot.slane %v4663_v27, 1 }
 0x55d   : > { %v4703_v42 = vsel %vm2209_vm2, %v4698_v54, %v4702_v55 }
 0x55e   : > { %v4691_v57 = vsel %vm2209_vm2, %v4685_v9, %v4690_v2  ;;  %v5080_v9 = vld [vmem:[#allocation3 + $0x1e8] sm:$0xff]  ;;  %v5082_v2 = vld [vmem:[#allocation3 + $0x1f8] sm:$0xff] }
 0x55f   : > { %4915 = vmatpush1.bf16.msra.mxu1 %v8791_v14  ;;  %v4699_v14 = vsel %vm2209_vm2, %v4697_v33, %v4698_v54  ;;  %v5077_v33 = vld [vmem:[#allocation3 + $0x1d0] sm:$0xff]  ;;  %v7835_v55 = vpack.c.bf16 %v5082_v2, %v5080_v9 }
 0x560   : > { %4916 = vmatprep.subr.bf16.mxu1 %v8796_v35  ;;  %v4712_v35 = vpack.c.bf16 %v4691_v57, %v4686_v7  ;;  %v4715_v53 = vpack.c.bf16 %v4703_v42, %v4699_v14  ;;  %v7833_v54 = vpack.c.bf16 %v5077_v33, %v5075_v60  ;;  %v5079_v7 = vld [vmem:[#allocation3 + $0x1e0] sm:$0xff]  ;;  %v5081_v14 = vld [vmem:[#allocation3 + $0x1f0] sm:$0xff] }
 0x561   : > { %v7837_v5 = vpack.c.bf16 %v5081_v14, %v5079_v7  ;;  %v8838_v57 = vld [vmem:[%s10315_s25 + $0x404] ss:$8 sps:$4 sm:$0xff]  }
 0x562   : > { %4649 = vmatmul.mubr.bf16.gmra.mrb[8].mxu1 %v4152_v47 }
 0x563   : > { %4917 = vmatpush1.bf16.msra.mxu1 %v8794_v61  ;;  %4944 = vmatprep.mubr.bf16.mxu1 %v4713_v25  ;;  %v4701_v61 = vsel %vm2209_vm2, %v4695_v12, %v4700_v56 }
 0x564   : > { %4918 = vmatprep.subr.bf16.mxu1 %v8799_v59  ;;  %v4714_v47 = vpack.c.bf16 %v4701_v61, %v4696_v43  ;;  %v5058_v59 = vld [vmem:[#allocation3 + $0x138] sm:$0xff] }
 0x565   : > { %v7811_v25 = vpack.c.bf16 %v5058_v59, %v5056_v21 }
 0x567   : > { %4919 = vmatpush1.bf16.msra.mxu1 %v8797_v16  ;;  %v5055_v16 = vld [vmem:[#allocation3 + $0x120] sm:$0xff]  ;;  %7812 = vmatprep.subr.bf16.mxu0 %v7811_v25 }
 0x568   : > { %4920 = vmatprep.subr.bf16.mxu1 %v8802_v46  ;;  %v5057_v46 = vld [vmem:[#allocation3 + $0x130] sm:$0xff] }
 0x56b   : > { %4921 = vmatpush1.bf16.msra.mxu1 %v8800_v8  ;;  %v7813_v8 = vpack.c.bf16 %v5057_v46, %v5055_v16 }
 0x56c   : > { %4922 = vmatprep.subr.bf16.mxu1 %v8805_v3  ;;  %v5060_v3 = vld [vmem:[#allocation3 + $0x148] sm:$0xff] }
 0x56d   : > { %7814 = vmatpush1.bf16.msra.mxu0 %v7813_v8 }
 0x56f   : > { %4923 = vmatpush1.bf16.msra.mxu1 %v8803_v23  ;;  %v5062_v23 = vld [vmem:[#allocation3 + $0x158] sm:$0xff] }
 0x570   : > { %4924 = vmatprep.subr.bf16.mxu1 %v8808_v18  ;;  %v7815_v18 = vpack.c.bf16 %v5062_v23, %v5060_v3 }
 0x572   : > { %7816 = vmatprep.subr.bf16.mxu0 %v7815_v18 }
 0x573   : > { %4925 = vmatpush1.bf16.msra.mxu1 %v8806_v26  ;;  %v5059_v26 = vld [vmem:[#allocation3 + $0x140] sm:$0xff] }
 0x574   : > { %4926 = vmatprep.subr.bf16.mxu1 %v8811_v28  ;;  %v7817_v28 = vpack.c.bf16 %v5061_v36, %v5059_v26 }
 0x576   : > { %7818 = vmatpush1.bf16.msra.mxu0 %v7817_v28 }
 0x577   : > { %4927 = vmatpush1.bf16.msra.mxu1 %v8809_v30  ;;  %v5064_v30 = vld [vmem:[#allocation3 + $0x168] sm:$0xff] }
 0x578   : > { %4928 = vmatprep.subr.bf16.mxu1 %v8814_v37  ;;  %v5066_v37 = vld [vmem:[#allocation3 + $0x178] sm:$0xff] }
 0x57b   : > { %4929 = vmatpush1.bf16.msra.mxu1 %v8812_v38  ;;  %v7819_v38 = vpack.c.bf16 %v5066_v37, %v5064_v30 }
 0x57c   : > { %4930 = vmatprep.subr.bf16.mxu1 %v8817_v31  ;;  %v5063_v31 = vld [vmem:[#allocation3 + $0x160] sm:$0xff] }
 0x57d   : > { %7820 = vmatprep.subr.bf16.mxu0 %v7819_v38 }
 0x57f   : > { %4931 = vmatpush1.bf16.msra.mxu1 %v8815_v39  ;;  %v5065_v39 = vld [vmem:[#allocation3 + $0x170] sm:$0xff] }
 0x580   : > { %4932 = vmatprep.subr.bf16.mxu1 %v8820_v40  ;;  %v7821_v40 = vpack.c.bf16 %v5065_v39, %v5063_v31 }
 0x582   : > { %7822 = vmatpush1.bf16.msra.mxu0 %v7821_v40 }
 0x583   : > { %4933 = vmatpush1.bf16.msra.mxu1 %v8818_v41  ;;  %v5068_v41 = vld [vmem:[#allocation3 + $0x188] sm:$0xff] }
 0x584   : > { %4934 = vmatprep.subr.bf16.mxu1 %v8823_v44  ;;  %v5070_v44 = vld [vmem:[#allocation3 + $0x198] sm:$0xff] }
 0x587   : > { %4935 = vmatpush1.bf16.msra.mxu1 %v8821_v52  ;;  %v7823_v52 = vpack.c.bf16 %v5070_v44, %v5068_v41 }
 0x588   : > { %4936 = vmatprep.subr.bf16.mxu1 %v8826_v49  ;;  %v5067_v49 = vld [vmem:[#allocation3 + $0x180] sm:$0xff] }
 0x589   : > { %7824 = vmatprep.subr.bf16.mxu0 %v7823_v52 }
 0x58b   : > { %4937 = vmatpush1.bf16.msra.mxu1 %v8824_v10  ;;  %v5069_v10 = vld [vmem:[#allocation3 + $0x190] sm:$0xff] }
 0x58c   : > { %4938 = vmatprep.subr.bf16.mxu1 %v8829_v4  ;;  %v7825_v4 = vpack.c.bf16 %v5069_v10, %v5067_v49 }
 0x58e   : > { %7826 = vmatpush1.bf16.msra.mxu0 %v7825_v4 }
 0x58f   : > { %4939 = vmatpush1.bf16.msra.mxu1 %v8827_v51  ;;  %v5072_v51 = vld [vmem:[#allocation3 + $0x1a8] sm:$0xff] }
 0x590   : > { %4940 = vmatprep.subr.bf16.mxu1 %v8832_v32  ;;  %v5074_v32 = vld [vmem:[#allocation3 + $0x1b8] sm:$0xff] }
 0x591   : > { %v7827_v17 = vpack.c.bf16 %v5074_v32, %v5072_v51 }
 0x593   : > { %4941 = vmatpush1.bf16.msra.mxu1 %v8830_v6  ;;  %v5071_v6 = vld [vmem:[#allocation3 + $0x1a0] sm:$0xff]  ;;  %7828 = vmatprep.subr.bf16.mxu0 %v7827_v17 }
 0x594   : > { %4942 = vmatprep.subr.bf16.mxu1 %v8835_v48  ;;  %v5076_v48 = vld [vmem:[#allocation3 + $0x1c8] sm:$0xff]  ;;  %v7829_v27 = vpack.c.bf16 %v5073_v58, %v5071_v6 }
 0x596   : > { %7830 = vmatpush1.bf16.msra.mxu0 %v7829_v27 }
 0x597   : > { %4943 = vmatpush1.bf16.msra.mxu1 %v8833_v50  ;;  %v7831_v50 = vpack.c.bf16 %v5078_v24, %v5076_v48 }
 0x599   : > { %7832 = vmatprep.subr.bf16.mxu0 %v7831_v50 }
 0x59a   : > { %4945 = vmatmul.mubr.bf16.vlgmr.msra.gmra.mrb[4].mxu1 %v4712_v35  ;;  %7834 = vmatpush1.bf16.msra.mxu0 %v7833_v54 }
 0x59b   : > { %4954 = vmatprep.mubr.bf16.mxu1 %v4715_v53  ;;  %7836 = vmatprep.subr.bf16.mxu0 %v7835_v55 }
 0x59e   : > { %7838 = vmatpush1.bf16.msra.mxu0 %v7837_v5 }
 0x59f   : > { %5546 = vmatprep.subr.bf16.mxu0 %v8838_v57 }
 0x5a2   : > { %4955 = vmatmul.mubr.bf16.gmra.mrb[8].mxu1 %v4714_v47 }
 0x66d   : > { %v10508_v35 = vpop.f32.mrb[4].mxu1 }
 0x66e   : > { %v10510_v42 = vpop.f32.mrb[5].mxu1  ;;  %v4991_v53 = vmul.f32 %v10508_v35, %v10508_v35 }
 0x66f   : > { %v10512_v13 = vpop.f32.mrb[6].mxu1  ;;  %v4992_v43 = vmul.f32 %v10510_v42, %v10510_v42 }
 0x670   : > { %v4973_v11 = vadd.f32 %v10512_v13, %v10508_v35  ;;  %v4993_v12 = vmul.f32 %v10512_v13, %v10512_v13  ;;  %v10520_v56 = vpop.f32.mrb[7].mxu1 }
 0x671   : > { %v4982_v61 = vadd.f32 %v10520_v56, %v10510_v42  ;;  %v4994_v47 = vmul.f32 %v10520_v56, %v10520_v56 }
 0x672   : > { %v4999_v21 = vadd.f32 %v4993_v12, %v4991_v53  ;;  %v8836_v53 = vld [vmem:[%s10315_s25 + $0x400] ss:$8 sps:$4 sm:$0xff]   ;;  %v8841_v12 = vld [vmem:[%s10315_s25 + $0x414] ss:$8 sps:$4 sm:$0xff]  }
 0x673   : > { %v5008_v59 = vadd.f32 %v4994_v47, %v4992_v43  ;;  %v8839_v43 = vld [vmem:[%s10315_s25 + $0x410] ss:$8 sps:$4 sm:$0xff]   ;;  %v8842_v47 = vld [vmem:[%s10315_s25 + $0x420] ss:$8 sps:$4 sm:$0xff]  }
 0x675   : > { %v10528_v25 = vpop.f32.mrb[8].mxu1 }
 0x676   : > { %v4974_v16 = vadd.f32 %v4973_v11, %v10528_v25  ;;  %v4995_v46 = vmul.f32 %v10528_v25, %v10528_v25  ;;  %v10533_v8 = vpop.f32.mrb[9].mxu1 }
 0x677   : > { %v4983_v3 = vadd.f32 %v4982_v61, %v10533_v8  ;;  %v4996_v23 = vmul.f32 %v10533_v8, %v10533_v8  ;;  %v10538_v18 = vpop.f32.mrb[10].mxu1  ;;  %v8844_v61 = vld [vmem:[%s10315_s25 + $0x424] ss:$8 sps:$4 sm:$0xff]  }
 0x678   : > { %v5000_v26 = vadd.f32 %v4999_v21, %v4995_v46  ;;  %v4975_v36 = vadd.f32 %v4974_v16, %v10538_v18  ;;  %v4997_v28 = vmul.f32 %v10538_v18, %v10538_v18  ;;  %v10543_v30 = vpop.f32.mrb[11].mxu1  ;;  %v8847_v21 = vld [vmem:[%s10315_s25 + $0x434] ss:$8 sps:$4 sm:$0xff]   ;;  %v8850_v16 = vld [vmem:[%s10315_s25 + $0x444] ss:$8 sps:$4 sm:$0xff]  }
 0x679   : > { %v5009_v37 = vadd.f32 %v5008_v59, %v4996_v23  ;;  %v4984_v38 = vadd.f32 %v4983_v3, %v10543_v30  ;;  %v4998_v31 = vmul.f32 %v10543_v30, %v10543_v30  ;;  %v8845_v59 = vld [vmem:[%s10315_s25 + $0x430] ss:$8 sps:$4 sm:$0xff]   ;;  %v8848_v46 = vld [vmem:[%s10315_s25 + $0x440] ss:$8 sps:$4 sm:$0xff]   ;;  %v8853_v3 = vld [vmem:[%s10315_s25 + $0x454] ss:$8 sps:$4 sm:$0xff]  }
 0x67a   : > { %v4976_v39 = vrot.slane %v4975_v36, 4  ;;  %v5001_v40 = vadd.f32 %v5000_v26, %v4997_v28  ;;  %v8851_v23 = vld [vmem:[%s10315_s25 + $0x450] ss:$8 sps:$4 sm:$0xff]   ;;  %v8856_v26 = vld [vmem:[%s10315_s25 + $0x464] ss:$8 sps:$4 sm:$0xff]  }
 0x67b   : > { %v4985_v41 = vrot.slane %v4984_v38, 4  ;;  %v5010_v44 = vadd.f32 %v5009_v37, %v4998_v31  ;;  %v8859_v28 = vld [vmem:[%s10315_s25 + $0x474] ss:$8 sps:$4 sm:$0xff]   ;;  %v8857_v37 = vld [vmem:[%s10315_s25 + $0x470] ss:$8 sps:$4 sm:$0xff]  }
 0x67c   : > { %v4977_v52 = vadd.f32 %v4976_v39, %v4975_v36  ;;  %v5002_v49 = vrot.slane %v5001_v40, 4  ;;  %v8854_v36 = vld [vmem:[%s10315_s25 + $0x460] ss:$8 sps:$4 sm:$0xff]   ;;  %v8865_v39 = vld [vmem:[%s10315_s25 + $0x494] ss:$8 sps:$4 sm:$0xff]  }
 0x67d   : > { %v4986_v10 = vadd.f32 %v4985_v41, %v4984_v38  ;;  %v5011_v4 = vrot.slane %v5010_v44, 4  ;;  %v8862_v38 = vld [vmem:[%s10315_s25 + $0x484] ss:$8 sps:$4 sm:$0xff]   ;;  %v8860_v31 = vld [vmem:[%s10315_s25 + $0x480] ss:$8 sps:$4 sm:$0xff]  }
 0x67e   : > { %v4978_v51 = vrot.slane %v4977_v52, 2  ;;  %v5003_v32 = vadd.f32 %v5002_v49, %v5001_v40  ;;  %v8863_v40 = vld [vmem:[%s10315_s25 + $0x490] ss:$8 sps:$4 sm:$0xff]   ;;  %v8868_v41 = vld [vmem:[%s10315_s25 + $0x4a4] ss:$8 sps:$4 sm:$0xff]  }
 0x67f   : > { %v4987_v17 = vrot.slane %v4986_v10, 2  ;;  %v5012_v6 = vadd.f32 %v5011_v4, %v5010_v44  ;;  %v8866_v44 = vld [vmem:[%s10315_s25 + $0x4a0] ss:$8 sps:$4 sm:$0xff]   ;;  %v8869_v49 = vld [vmem:[%s10315_s25 + $0x4b0] ss:$8 sps:$4 sm:$0xff]  }
 0x680   : > { %v4979_v58 = vadd.f32 %v4978_v51, %v4977_v52  ;;  %v5004_v48 = vrot.slane %v5003_v32, 2  ;;  %v8871_v52 = vld [vmem:[%s10315_s25 + $0x4b4] ss:$8 sps:$4 sm:$0xff]   ;;  %v8872_v4 = vld [vmem:[%s10315_s25 + $0x4c0] ss:$8 sps:$4 sm:$0xff]  }
 0x681   : > { %v4988_v27 = vadd.f32 %v4987_v17, %v4986_v10  ;;  %v5013_v24 = vrot.slane %v5012_v6, 2  ;;  %v8874_v10 = vld [vmem:[%s10315_s25 + $0x4c4] ss:$8 sps:$4 sm:$0xff]   ;;  %v8877_v51 = vld [vmem:[%s10315_s25 + $0x4d4] ss:$8 sps:$4 sm:$0xff]  }
 0x682   : > { %v4980_v60 = vrot.slane %v4979_v58, 1  ;;  %v5005_v33 = vadd.f32 %v5004_v48, %v5003_v32  ;;  %v8875_v32 = vld [vmem:[%s10315_s25 + $0x4d0] ss:$8 sps:$4 sm:$0xff]   ;;  %v8880_v17 = vld [vmem:[%s10315_s25 + $0x4e4] ss:$8 sps:$4 sm:$0xff]  }
 0x683   : > { %v4989_v50 = vrot.slane %v4988_v27, 1  ;;  %v5014_v9 = vadd.f32 %v5013_v24, %v5012_v6  ;;  %v8878_v6 = vld [vmem:[%s10315_s25 + $0x4e0] ss:$8 sps:$4 sm:$0xff]   ;;  %v8881_v48 = vld [vmem:[%s10315_s25 + $0x4f0] ss:$8 sps:$4 sm:$0xff]  }
 0x684   : > { %v5006_v2 = vrot.slane %v5005_v33, 1  ;;  %v4981_v55 = vadd.f32 %v4980_v60, %v4979_v58  ;;  %v8883_v58 = vld [vmem:[%s10315_s25 + $0x4f4] ss:$8 sps:$4 sm:$0xff]  }
 0x685   : > { %v5015_v54 = vrot.slane %v5014_v9, 1  ;;  %v4990_v14 = vadd.f32 %v4989_v50, %v4988_v27  ;;  %v8886_v27 = vld [vmem:[%s10315_s25 + $0x304] ss:$8 sps:$4 sm:$0xff]  }
 0x686   : > { %v5007_v7 = vadd.f32 %v5006_v2, %v5005_v33 }
 0x687   : > { %v5016_v5 = vadd.f32 %v5015_v54, %v5014_v9 }
 0x688   : > { %v5017_v57 = vsel %vm1510_vm5, %v4981_v55, %v5007_v7 }
 0x689   : > { %v5018_v11 = vsel %vm1510_vm5, %v4990_v14, %v5016_v5 }
 0x68a   : > { %5147 = vmatprep.mubr.f32.mxu0 %v5018_v11 }
 0x68b   : > { %5148 = vmatmul.mubr.f32.vlgmr.msra.gmra.mrb[0].mxu0 %v5017_v57 }
 0x68c   : > { %5547 = vmatpush1.bf16.msra.mxu0 %v8836_v53 }
 0x68d   : > { %5548 = vmatprep.subr.bf16.mxu0 %v8841_v12 }
 0x690   : > { %5549 = vmatpush1.bf16.msra.mxu0 %v8839_v43 }
 0x691   : > { %5550 = vmatprep.subr.bf16.mxu0 %v8844_v61 }
 0x694   : > { %5551 = vmatpush1.bf16.msra.mxu0 %v8842_v47 }
 0x695   : > { %5552 = vmatprep.subr.bf16.mxu0 %v8847_v21 }
 0x698   : > { %5553 = vmatpush1.bf16.msra.mxu0 %v8845_v59 }
 0x699   : > { %5554 = vmatprep.subr.bf16.mxu0 %v8850_v16 }
 0x69c   : > { %5555 = vmatpush1.bf16.msra.mxu0 %v8848_v46 }
 0x69d   : > { %5556 = vmatprep.subr.bf16.mxu0 %v8853_v3 }
 0x6a0   : > { %5557 = vmatpush1.bf16.msra.mxu0 %v8851_v23  ;;  %v10602_v23 = vld [vmem:[%s10373_s27 + $0x8] sm:$0xff] }
 0x6a1   : > { %5558 = vmatprep.subr.bf16.mxu0 %v8856_v26 }
 0x6a4   : > { %5559 = vmatpush1.bf16.msra.mxu0 %v8854_v36 }
 0x6a5   : > { %5560 = vmatprep.subr.bf16.mxu0 %v8859_v28 }
 0x6a8   : > { %5561 = vmatpush1.bf16.msra.mxu0 %v8857_v37 }
 0x6a9   : > { %5562 = vmatprep.subr.bf16.mxu0 %v8862_v38 }
 0x6ac   : > { %5563 = vmatpush1.bf16.msra.mxu0 %v8860_v31 }
 0x6ad   : > { %5564 = vmatprep.subr.bf16.mxu0 %v8865_v39 }
 0x6b0   : > { %5565 = vmatpush1.bf16.msra.mxu0 %v8863_v40 }
 0x6b1   : > { %5566 = vmatprep.subr.bf16.mxu0 %v8868_v41 }
 0x6b4   : > { %5567 = vmatpush1.bf16.msra.mxu0 %v8866_v44 }
 0x6b5   : > { %5568 = vmatprep.subr.bf16.mxu0 %v8871_v52 }
 0x6b8   : > { %5569 = vmatpush1.bf16.msra.mxu0 %v8869_v49 }
 0x6b9   : > { %5570 = vmatprep.subr.bf16.mxu0 %v8874_v10 }
 0x6bc   : > { %5571 = vmatpush1.bf16.msra.mxu0 %v8872_v4 }
 0x6bd   : > { %5572 = vmatprep.subr.bf16.mxu0 %v8877_v51 }
 0x6c0   : > { %5573 = vmatpush1.bf16.msra.mxu0 %v8875_v32 }
 0x6c1   : > { %5574 = vmatprep.subr.bf16.mxu0 %v8880_v17 }
 0x6c4   : > { %5575 = vmatpush1.bf16.msra.mxu0 %v8878_v6 }
 0x6c5   : > { %5576 = vmatprep.subr.bf16.mxu0 %v8883_v58 }
 0x6c8   : > { %5577 = vmatpush1.bf16.msra.mxu0 %v8881_v48 }
 0x6c9   : > { %5759 = vmatprep.subr.bf16.mxu0 %v8886_v27 }
 0x75e   : > { %v5149_v24 = vpop.f32.mrb[0].mxu0 }
 0x75f   : > { %v5154_v60 = vmul.f32 0.001953125, %v5149_v24  ;;  %v5151_v33 = vpop.f32.mrb[1].mxu0 }
 0x760   : > { %v5155_v50 = vmul.f32 0.001953125, %v5151_v33 }
 0x761   : > { %v5156_v9 = vmul.f32 %v5154_v60, %v5154_v60  ;;  %v5169_v2 = vrot.slane %v5154_v60, %v10168_v0 }
 0x762   : > { %v5157_v54 = vmul.f32 %v5155_v50, %v5155_v50  ;;  %v5173_v55 = vrot.slane %v5155_v50, %v10168_v0 }
 0x763   : > { %v5160_v7 = vrot.slane %v5156_v9, 7  ;;  %v5174_v14 = vsub.f32 %v10508_v35, %v5169_v2  ;;  %v5176_v5 = vsub.f32 %v10512_v13, %v5169_v2  ;;  %v5178_v57 = vsub.f32 %v10528_v25, %v5169_v2 }
 0x764   : > { %v5180_v53 = vsub.f32 %v10538_v18, %v5169_v2  ;;  %v5161_v11 = vrot.slane %v5157_v54, 7  ;;  %v5175_v12 = vsub.f32 %v10510_v42, %v5173_v55  ;;  %v5177_v43 = vsub.f32 %v10520_v56, %v5173_v55  ;;  %v10596_v56 = vld [vmem:[%s10373_s27] sm:$0xff] }
 0x765   : > { %v5164_v61 = vsub.f32 %v5154_v60, %v5160_v7  ;;  %v5179_v47 = vsub.f32 %v10533_v8, %v5173_v55  ;;  %v5181_v21 = vsub.f32 %v10543_v30, %v5173_v55  ;;  %v5204_v13 = vsub.s32 2, %v10165_v62 }
 0x766   : > { %v5165_v59 = vsub.f32 %v5155_v50, %v5161_v11  ;;  %v5220_v25 = vsub.s32 3, %v10165_v62 }
 0x767   : > { %v5182_v35 = vadd.f32 1e-05, %v5164_v61  ;;  %v5205_v8 = vrot.slane %v10596_v56, %v5204_v13  ;;  %v5209_v26 = vrot.slane %v10602_v23, %v5204_v13 }
 0x768   : > { %v5183_v16 = vadd.f32 1e-05, %v5165_v59  ;;  %v5221_v3 = vrot.slane %v10596_v56, %v5220_v25  ;;  %v5225_v36 = vrot.slane %v10602_v23, %v5220_v25  ;;  %v5252_v59 = vld [vmem:[#allocation2 + $0x8] sm:$0x80] }
 0x769   : > { %9000 = vrsqrt.f32 %v5182_v35  ;;  %v8887_v35 = vld [vmem:[%s10315_s25 + $0x310] ss:$8 sps:$4 sm:$0xff]   ;;  %v5278_v13 = vrot.slane %v5252_v59, 7 }
 0x76a   : > { %9002 = vrsqrt.f32 %v5183_v16  ;;  %v8892_v16 = vld [vmem:[%s10315_s25 + $0x324] ss:$8 sps:$4 sm:$0xff]  }
 0x773   : > { %v9001_v18 = vpop.eup %9000 }
 0x774   : > { %v9003_v46 = vpop.eup %9002  ;;  %v5189_v42 = vrot.slane %v9001_v18, %v10171_v1 }
 0x775   : > { %v5193_v30 = vrot.slane %v9003_v46, %v10171_v1  ;;  %v8890_v46 = vld [vmem:[%s10315_s25 + $0x320] ss:$8 sps:$4 sm:$0xff]  }
 0x776   : > { %v5194_v28 = vmul.f32 %v5189_v42, %v5174_v14  ;;  %v5196_v37 = vmul.f32 %v5189_v42, %v5176_v5  ;;  %v5198_v38 = vmul.f32 %v5189_v42, %v5178_v57  ;;  %v5200_v31 = vmul.f32 %v5189_v42, %v5180_v53  ;;  %v9029_v1 = vld [vmem:[#allocation12 + $0x18] sm:$0xff] (%p10864_p1)  }
 0x777   : > { %v5195_v39 = vmul.f32 %v5193_v30, %v5175_v12  ;;  %v5197_v40 = vmul.f32 %v5193_v30, %v5177_v43  ;;  %v5199_v41 = vmul.f32 %v5193_v30, %v5179_v47  ;;  %v5201_v44 = vmul.f32 %v5193_v30, %v5181_v21  ;;  %v8884_v43 = vld [vmem:[%s10315_s25 + $0x300] ss:$8 sps:$4 sm:$0xff]   ;;  %v8889_v47 = vld [vmem:[%s10315_s25 + $0x314] ss:$8 sps:$4 sm:$0xff]  }
 0x778   : > { %v5210_v52 = vmul.f32 %v5205_v8, %v5194_v28  ;;  %v5212_v49 = vmul.f32 %v5205_v8, %v5196_v37  ;;  %v5214_v10 = vmul.f32 %v5205_v8, %v5198_v38  ;;  %v5216_v4 = vmul.f32 %v5205_v8, %v5200_v31  ;;  %v8895_v8 = vld [vmem:[%s10315_s25 + $0x334] ss:$8 sps:$4 sm:$0xff]   ;;  %v8898_v28 = vld [vmem:[%s10315_s25 + $0x344] ss:$8 sps:$4 sm:$0xff]   ;;  %v8896_v37 = vld [vmem:[%s10315_s25 + $0x340] ss:$8 sps:$4 sm:$0xff]  }
 0x779   : > { %v5211_v51 = vmul.f32 %v5209_v26, %v5195_v39  ;;  %v5213_v32 = vmul.f32 %v5209_v26, %v5197_v40  ;;  %v5215_v48 = vmul.f32 %v5209_v26, %v5199_v41  ;;  %v5217_v24 = vmul.f32 %v5209_v26, %v5201_v44  ;;  %v8901_v38 = vld [vmem:[%s10315_s25 + $0x354] ss:$8 sps:$4 sm:$0xff]   ;;  %v8899_v31 = vld [vmem:[%s10315_s25 + $0x350] ss:$8 sps:$4 sm:$0xff]   ;;  %v8904_v39 = vld [vmem:[%s10315_s25 + $0x364] ss:$8 sps:$4 sm:$0xff]  }
 0x77a   : > { %v5226_v17 = vadd.f32 %v5221_v3, %v5210_v52  ;;  %v5228_v6 = vadd.f32 %v5221_v3, %v5212_v49  ;;  %v5230_v58 = vadd.f32 %v5221_v3, %v5214_v10  ;;  %v5232_v27 = vadd.f32 %v5221_v3, %v5216_v4  ;;  %v8902_v40 = vld [vmem:[%s10315_s25 + $0x360] ss:$8 sps:$4 sm:$0xff]   ;;  %v8907_v41 = vld [vmem:[%s10315_s25 + $0x374] ss:$8 sps:$4 sm:$0xff]   ;;  %v8905_v44 = vld [vmem:[%s10315_s25 + $0x370] ss:$8 sps:$4 sm:$0xff]  }
 0x77b   : > { %v5227_v60 = vadd.f32 %v5225_v36, %v5211_v51  ;;  %v5229_v33 = vadd.f32 %v5225_v36, %v5213_v32  ;;  %v5231_v50 = vadd.f32 %v5225_v36, %v5215_v48  ;;  %v5233_v9 = vadd.f32 %v5225_v36, %v5217_v24  ;;  %v8893_v36 = vld [vmem:[%s10315_s25 + $0x330] ss:$8 sps:$4 sm:$0xff]   ;;  %v8910_v52 = vld [vmem:[%s10315_s25 + $0x384] ss:$8 sps:$4 sm:$0xff]   ;;  %v8908_v49 = vld [vmem:[%s10315_s25 + $0x380] ss:$8 sps:$4 sm:$0xff]  }
 0x77c   : > { %9004 = vtanh.f32 %v5226_v17  ;;  %v8913_v10 = vld [vmem:[%s10315_s25 + $0x394] ss:$8 sps:$4 sm:$0xff]   ;;  %v8911_v4 = vld [vmem:[%s10315_s25 + $0x390] ss:$8 sps:$4 sm:$0xff]   ;;  %v8916_v51 = vld [vmem:[%s10315_s25 + $0x3a4] ss:$8 sps:$4 sm:$0xff]  }
 0x77d   : > { %9006 = vtanh.f32 %v5228_v6  ;;  %v8914_v32 = vld [vmem:[%s10315_s25 + $0x3a0] ss:$8 sps:$4 sm:$0xff]   ;;  %v8919_v17 = vld [vmem:[%s10315_s25 + $0x3b4] ss:$8 sps:$4 sm:$0xff]   ;;  %v8917_v6 = vld [vmem:[%s10315_s25 + $0x3b0] ss:$8 sps:$4 sm:$0xff]  }
 0x77e   : > { %9008 = vtanh.f32 %v5230_v58  ;;  %v8922_v58 = vld [vmem:[%s10315_s25 + $0x3c4] ss:$8 sps:$4 sm:$0xff]   ;;  %v8920_v48 = vld [vmem:[%s10315_s25 + $0x3c0] ss:$8 sps:$4 sm:$0xff]   ;;  %v8923_v24 = vld [vmem:[%s10315_s25 + $0x3d0] ss:$8 sps:$4 sm:$0xff]  }
 0x77f   : > { %9010 = vtanh.f32 %v5232_v27  ;;  %v8925_v27 = vld [vmem:[%s10315_s25 + $0x3d4] ss:$8 sps:$4 sm:$0xff]  }
 0x780   : > { %9012 = vtanh.f32 %v5227_v60  ;;  %v8928_v60 = vld [vmem:[%s10315_s25 + $0x3e4] ss:$8 sps:$4 sm:$0xff]  }
 0x781   : > { %9014 = vtanh.f32 %v5229_v33 }
 0x782   : > { %9016 = vtanh.f32 %v5231_v50  ;;  %v8926_v50 = vld [vmem:[%s10315_s25 + $0x3e0] ss:$8 sps:$4 sm:$0xff]  }
 0x783   : > { %9018 = vtanh.f32 %v5233_v9 }
 0x786   : > { %v10606_v2 = vpop.eup %9004 }
 0x787   : > { %v10608_v54 = vpop.eup %9006  ;;  %5243 = vst [vmem:[#allocation2 + $0x10] sm:$0xff] %v10606_v2 }
 0x788   : > { %v10611_v55 = vpop.eup %9008  ;;  %5245 = vst [vmem:[#allocation2 + $0x20] sm:$0xff] %v10608_v54  ;;  %v5346_v7 = vpack.c.bf16 %v10608_v54, %v10606_v2 }
 0x789   : > { %v10616_v14 = vpop.eup %9010  ;;  %5247 = vst [vmem:[#allocation2 + $0x50] sm:$0xff] %v10611_v55 }
 0x78a   : > { %v9013_v5 = vpop.eup %9012  ;;  %5249 = vst [vmem:[#allocation2 + $0x60] sm:$0xff] %v10616_v14  ;;  %v5348_v57 = vpack.c.bf16 %v10616_v14, %v10611_v55 }
 0x78b   : > { %v10622_v53 = vpop.eup %9014  ;;  %5244 = vst [vmem:[#allocation2 + $0x18] sm:$0xff] %v9013_v5  ;;  %v5279_v25 = vrot.slane %v9013_v5, 7 }
 0x78c   : > { %v10624_v11 = vpop.eup %9016  ;;  %5246 = vst [vmem:[#allocation2 + $0x28] sm:$0xff] %v10622_v53  ;;  %v5347_v12 = vpack.c.bf16 %v10622_v53, %v9013_v5  ;;  %v5251_v5 = vld [vmem:[#allocation2] sm:$0x80] }
 0x78d   : > { %v10629_v61 = vpop.eup %9018  ;;  %5248 = vst [vmem:[#allocation2 + $0x58] sm:$0xff] %v10624_v11  ;;  %v5280_v3 = vsel %vm1510_vm5, %v5278_v13, %v5279_v25  ;;  %v5275_v59 = vrot.slane %v5251_v5, 7  ;;  %v5289_v13 = vrot.slane %v10624_v11, 7  ;;  %v8956_v5 = vld [vmem:[%s10315_s25 + $0x580] ss:$8 sps:$4 sm:$0xff]  }
 0x78e   : > { %5250 = vst [vmem:[#allocation2 + $0x68] sm:$0xff] %v10629_v61  ;;  %5578 = vmatprep.mubr.bf16.mxu0 %v5347_v12  ;;  %v5349_v21 = vpack.c.bf16 %v10629_v61, %v10624_v11  ;;  %v5258_v12 = vld [vmem:[#allocation2 + $0x48] sm:$0x80] }
 0x78f   : > { %5579 = vmatmul.mubr.bf16.vlgmr.msra.gmra.mrb[4].mxu0 %v5346_v7  ;;  %v5255_v33 = vld [vmem:[#allocation2 + $0x20] sm:$0x7f]  ;;  %v8931_v7 = vld [vmem:[%s10315_s25 + $0x3f4] ss:$8 sps:$4 sm:$0xff]  }
 0x790   : > { %5760 = vmatpush1.bf16.msra.mxu0 %v8884_v43  ;;  %5588 = vmatprep.mubr.bf16.mxu0 %v5349_v21  ;;  %v8929_v21 = vld [vmem:[%s10315_s25 + $0x3f0] ss:$8 sps:$4 sm:$0xff]  }
 0x791   : > { %5761 = vmatprep.subr.bf16.mxu0 %v8889_v47  ;;  %v5276_v47 = vrot.slane %v10606_v2, 7 }
 0x792   : > { %v5813_v2 = vld [vmem:[#allocation2 + $0x18] sm:$0xfe] }
 0x793   : > { %v5256_v18 = vld [vmem:[#allocation2 + $0x28] sm:$0x7f] }
 0x794   : > { %5762 = vmatpush1.bf16.msra.mxu0 %v8887_v35  ;;  %v5283_v42 = vrot.slane %v5256_v18, 7  ;;  %v8934_v35 = vld [vmem:[%s10315_s25 + $0x504] ss:$8 sps:$4 sm:$0xff]  }
 0x795   : > { %5763 = vmatprep.subr.bf16.mxu0 %v8892_v16  ;;  %v5262_v9 = vld [vmem:[#allocation2 + $0x68] sm:$0x7f]  ;;  %v5288_v16 = vrot.slane %v5258_v12, 7  ;;  %v8959_v12 = vld [vmem:[%s10315_s25 + $0x590] ss:$8 sps:$4 sm:$0xff]  }
 0x796   : > { %v5284_v30 = vsel %vm1510_vm5, %v5279_v25, %v5283_v42  ;;  %v5293_v43 = vrot.slane %v5262_v9, 7  ;;  %v5277_v42 = vsel %vm1510_vm5, %v5275_v59, %v5276_v47  ;;  %v8953_v9 = vld [vmem:[%s10315_s25 + $0x570] ss:$8 sps:$4 sm:$0xff]  }
 0x797   : > { %5589 = vmatmul.mubr.bf16.gmra.mrb[8].mxu0 %v5348_v57  ;;  %v5304_v26 = vpack.c.bf16 %v5284_v30, %v5280_v3  ;;  %v5281_v57 = vrot.slane %v5255_v33, 7  ;;  %v5290_v30 = vsel %vm1510_vm5, %v5288_v16, %v5289_v13  ;;  %v8950_v33 = vld [vmem:[%s10315_s25 + $0x560] ss:$8 sps:$4 sm:$0xff]   ;;  %v8965_v59 = vld [vmem:[%s10315_s25 + $0x5b0] ss:$8 sps:$4 sm:$0xff]  }
 0x798   : > { %5764 = vmatpush1.bf16.msra.mxu0 %v8890_v46  ;;  %v5294_v18 = vsel %vm1510_vm5, %v5289_v13, %v5293_v43  ;;  %v5261_v46 = vld [vmem:[#allocation2 + $0x60] sm:$0x7f]  ;;  %v8973_v13 = vld [vmem:[%s10315_s25 + $0x5d4] ss:$8 sps:$4 sm:$0xff]  }
 0x799   : > { %5791 = vmatprep.mubr.bf16.mxu0 %v5304_v26  ;;  %5765 = vmatprep.subr.bf16.mxu0 %v8895_v8  ;;  %v5282_v25 = vsel %vm1510_vm5, %v5276_v47, %v5281_v57  ;;  %v8932_v8 = vld [vmem:[%s10315_s25 + $0x500] ss:$8 sps:$4 sm:$0xff]   ;;  %v8937_v26 = vld [vmem:[%s10315_s25 + $0x514] ss:$8 sps:$4 sm:$0xff]   ;;  %v5291_v11 = vrot.slane %v5261_v46, 7 }
 0x79a   : > { %v5303_v3 = vpack.c.bf16 %v5282_v25, %v5277_v42  ;;  %v8961_v57 = vld [vmem:[%s10315_s25 + $0x594] ss:$8 sps:$4 sm:$0xff]   ;;  %v8964_v43 = vld [vmem:[%s10315_s25 + $0x5a4] ss:$8 sps:$4 sm:$0xff]   ;;  %v8962_v47 = vld [vmem:[%s10315_s25 + $0x5a0] ss:$8 sps:$4 sm:$0xff]  }
 0x79b   : > { %v8968_v16 = vld [vmem:[%s10315_s25 + $0x5c0] ss:$8 sps:$4 sm:$0xff]   ;;  %v8971_v25 = vld [vmem:[%s10315_s25 + $0x5d0] ss:$8 sps:$4 sm:$0xff]  }
 0x79c   : > { %5766 = vmatpush1.bf16.msra.mxu0 %v8893_v36  ;;  %v5257_v36 = vld [vmem:[#allocation2 + $0x40] sm:$0x80]  ;;  %v5812_v46 = vld [vmem:[#allocation2 + $0x10] sm:$0xfe]  ;;  %v8974_v42 = vld [vmem:[%s10315_s25 + $0x5e0] ss:$8 sps:$4 sm:$0xff]  }
 0x79d   : > { %5767 = vmatprep.subr.bf16.mxu0 %v8898_v28  ;;  %v5306_v28 = vpack.c.bf16 %v5294_v18, %v5290_v30  ;;  %v8976_v18 = vld [vmem:[%s10315_s25 + $0x5e4] ss:$8 sps:$4 sm:$0xff]   ;;  %v5836_v30 = vrot.slane %v5812_v46, 1 }
 0x7a0   : > { %5768 = vmatpush1.bf16.msra.mxu0 %v8896_v37  ;;  %v5817_v37 = vld [vmem:[#allocation2 + $0x38] sm:$0x1] }
 0x7a1   : > { %5769 = vmatprep.subr.bf16.mxu0 %v8901_v38  ;;  %v5839_v38 = vrot.slane %v5813_v2, 1  ;;  %v8979_v2 = vld [vmem:[%s10315_s25 + $0x5f4] ss:$8 sps:$4 sm:$0xff]  }
 0x7a4   : > { %5770 = vmatpush1.bf16.msra.mxu0 %v8899_v31  ;;  %v8935_v31 = vld [vmem:[%s10315_s25 + $0x510] ss:$8 sps:$4 sm:$0xff]  }
 0x7a5   : > { %5771 = vmatprep.subr.bf16.mxu0 %v8904_v39  ;;  %v5285_v39 = vrot.slane %v5257_v36, 7 }
 0x7a8   : > { %5772 = vmatpush1.bf16.msra.mxu0 %v8902_v40  ;;  %v5286_v40 = vrot.slane %v10611_v55, 7 }
 0x7a9   : > { %5773 = vmatprep.subr.bf16.mxu0 %v8907_v41  ;;  %v8940_v41 = vld [vmem:[%s10315_s25 + $0x524] ss:$8 sps:$4 sm:$0xff]  }
 0x7ac   : > { %5774 = vmatpush1.bf16.msra.mxu0 %v8905_v44  ;;  %v5840_v44 = vrot.slane %v10622_v53, 1 }
 0x7ad   : > { %5775 = vmatprep.subr.bf16.mxu0 %v8910_v52  ;;  %v5844_v52 = vrot.slane %v5817_v37, 1 }
 0x7af   : > { %v5845_v55 = vsel %vm2209_vm2, %v5840_v44, %v5844_v52 }
 0x7b0   : > { %5776 = vmatpush1.bf16.msra.mxu0 %v8908_v49  ;;  %v5292_v49 = vsel %vm1510_vm5, %v5286_v40, %v5291_v11  ;;  %v5837_v11 = vrot.slane %v10608_v54, 1  ;;  %v5847_v54 = vrot.slane %v10616_v14, 1  ;;  %v6150_v14 = vld [vmem:[#allocation2 + $0x8] sm:$0x80] }
 0x7b1   : > { %5777 = vmatprep.subr.bf16.mxu0 %v8913_v10  ;;  %v5841_v10 = vsel %vm2209_vm2, %v5839_v38, %v5840_v44  ;;  %v5850_v38 = vrot.slane %v10629_v61, 1 }
 0x7b2   : > { %v5865_v53 = vpack.c.bf16 %v5845_v55, %v5841_v10  ;;  %v5822_v10 = vld [vmem:[#allocation2 + $0x70] sm:$0x1] }
 0x7b3   : > { %v5852_v61 = vrot.slane %v5822_v10, 1 }
 0x7b4   : > { %5778 = vmatpush1.bf16.msra.mxu0 %v8911_v4  ;;  %v5287_v4 = vsel %vm1510_vm5, %v5285_v39, %v5286_v40  ;;  %v5838_v39 = vsel %vm2209_vm2, %v5836_v30, %v5837_v11 }
 0x7b5   : > { %5779 = vmatprep.subr.bf16.mxu0 %v8916_v51  ;;  %v8938_v51 = vld [vmem:[%s10315_s25 + $0x520] ss:$8 sps:$4 sm:$0xff]   ;;  %v5853_v55 = vsel %vm2209_vm2, %v5847_v54, %v5852_v61 }
 0x7b8   : > { %5780 = vmatpush1.bf16.msra.mxu0 %v8914_v32  ;;  %v5305_v32 = vpack.c.bf16 %v5292_v49, %v5287_v4 }
 0x7b9   : > { %5781 = vmatprep.subr.bf16.mxu0 %v8919_v17  ;;  %v8943_v17 = vld [vmem:[%s10315_s25 + $0x534] ss:$8 sps:$4 sm:$0xff]  }
 0x7bc   : > { %5782 = vmatpush1.bf16.msra.mxu0 %v8917_v6  ;;  %v8941_v6 = vld [vmem:[%s10315_s25 + $0x530] ss:$8 sps:$4 sm:$0xff]  }
 0x7bd   : > { %5783 = vmatprep.subr.bf16.mxu0 %v8922_v58  ;;  %v8946_v58 = vld [vmem:[%s10315_s25 + $0x544] ss:$8 sps:$4 sm:$0xff]  }
 0x7c0   : > { %5784 = vmatpush1.bf16.msra.mxu0 %v8920_v48  ;;  %v8944_v48 = vld [vmem:[%s10315_s25 + $0x540] ss:$8 sps:$4 sm:$0xff]  }
 0x7c1   : > { %5785 = vmatprep.subr.bf16.mxu0 %v8925_v27  ;;  %v8949_v27 = vld [vmem:[%s10315_s25 + $0x554] ss:$8 sps:$4 sm:$0xff]  }
 0x7c4   : > { %5786 = vmatpush1.bf16.msra.mxu0 %v8923_v24  ;;  %v8947_v24 = vld [vmem:[%s10315_s25 + $0x550] ss:$8 sps:$4 sm:$0xff]  }
 0x7c5   : > { %5787 = vmatprep.subr.bf16.mxu0 %v8928_v60  ;;  %v8952_v60 = vld [vmem:[%s10315_s25 + $0x564] ss:$8 sps:$4 sm:$0xff]  }
 0x7c8   : > { %5788 = vmatpush1.bf16.msra.mxu0 %v8926_v50  ;;  %v8955_v50 = vld [vmem:[%s10315_s25 + $0x574] ss:$8 sps:$4 sm:$0xff]  }
 0x7c9   : > { %5789 = vmatprep.subr.bf16.mxu0 %v8931_v7  ;;  %v8958_v7 = vld [vmem:[%s10315_s25 + $0x584] ss:$8 sps:$4 sm:$0xff]  }
 0x7cc   : > { %5790 = vmatpush1.bf16.msra.mxu0 %v8929_v21  ;;  %v8967_v21 = vld [vmem:[%s10315_s25 + $0x5b4] ss:$8 sps:$4 sm:$0xff]  }
 0x7cd   : > { %6064 = vmatprep.subr.bf16.mxu0 %v8934_v35  ;;  %v8970_v35 = vld [vmem:[%s10315_s25 + $0x5c4] ss:$8 sps:$4 sm:$0xff]  }
 0x7cf   : > { %5792 = vmatmul.mubr.bf16.vlgmr.msra.gmra.mrb[4].mxu0 %v5303_v3  ;;  %v5816_v3 = vld [vmem:[#allocation2 + $0x30] sm:$0x1] }
 0x7d0   : > { %5801 = vmatprep.mubr.bf16.mxu0 %v5306_v28  ;;  %6065 = vmatpush1.bf16.msra.mxu0 %v8932_v8  ;;  %v5819_v8 = vld [vmem:[#allocation2 + $0x58] sm:$0xfe]  ;;  %v5842_v37 = vrot.slane %v5816_v3, 1 }
 0x7d1   : > { %6066 = vmatprep.subr.bf16.mxu0 %v8937_v26  ;;  %v5823_v26 = vld [vmem:[#allocation2 + $0x78] sm:$0x1]  ;;  %v5849_v36 = vrot.slane %v5819_v8, 1 }
 0x7d2   : > { %v8977_v28 = vld [vmem:[%s10315_s25 + $0x5f0] ss:$8 sps:$4 sm:$0xff]   ;;  %v5843_v44 = vsel %vm2209_vm2, %v5837_v11, %v5842_v37 }
 0x7d3   : > { %v5851_v40 = vsel %vm2209_vm2, %v5849_v36, %v5850_v38  ;;  %v5864_v52 = vpack.c.bf16 %v5843_v44, %v5838_v39 }
 0x7d4   : > { %6067 = vmatpush1.bf16.msra.mxu0 %v8935_v31  ;;  %v5854_v31 = vrot.slane %v5823_v26, 1 }
 0x7d5   : > { %6068 = vmatprep.subr.bf16.mxu0 %v8940_v41  ;;  %v5818_v41 = vld [vmem:[#allocation2 + $0x50] sm:$0xfe] }
 0x7d6   : > { %v5855_v49 = vsel %vm2209_vm2, %v5850_v38, %v5854_v31 }
 0x7d7   : > { %5802 = vmatmul.mubr.bf16.gmra.mrb[8].mxu0 %v5305_v32  ;;  %v5867_v4 = vpack.c.bf16 %v5855_v49, %v5851_v40 }
 0x7d8   : > { %6069 = vmatpush1.bf16.msra.mxu0 %v8938_v51  ;;  %6096 = vmatprep.mubr.bf16.mxu0 %v5865_v53  ;;  %v5846_v51 = vrot.slane %v5818_v41, 1  ;;  %v6127_v53 = vsub.s32 4, %v10165_v62 }
 0x7d9   : > { %6070 = vmatprep.subr.bf16.mxu0 %v8943_v17 }
 0x7da   : > { %v5848_v32 = vsel %vm2209_vm2, %v5846_v51, %v5847_v54 }
 0x7db   : > { %v5866_v17 = vpack.c.bf16 %v5853_v55, %v5848_v32 }
 0x7dc   : > { %6071 = vmatpush1.bf16.msra.mxu0 %v8941_v6  ;;  %v6128_v6 = vrot.slane %v10596_v56, %v6127_v53 }
 0x7dd   : > { %6072 = vmatprep.subr.bf16.mxu0 %v8946_v58  ;;  %v10723_v58 = vrot.slane %v10602_v23, %v6127_v53 }
 0x7e0   : > { %6073 = vmatpush1.bf16.msra.mxu0 %v8944_v48  ;;  %v6149_v48 = vld [vmem:[#allocation2] sm:$0x80] }
 0x7e1   : > { %6074 = vmatprep.subr.bf16.mxu0 %v8949_v27 }
 0x7e4   : > { %6075 = vmatpush1.bf16.msra.mxu0 %v8947_v24 }
 0x7e5   : > { %6076 = vmatprep.subr.bf16.mxu0 %v8952_v60 }
 0x7e8   : > { %6077 = vmatpush1.bf16.msra.mxu0 %v8950_v33  ;;  %v6203_v33 = vsub.s32 5, %v10165_v62 }
 0x7e9   : > { %6078 = vmatprep.subr.bf16.mxu0 %v8955_v50  ;;  %v6223_v50 = vsub.s32 6, %v10165_v62 }
 0x7ea   : > { %v10746_v46 = vrot.slane %v10596_v56, %v6203_v33  ;;  %v10763_v26 = vrot.slane %v10602_v23, %v6203_v33 }
 0x7eb   : > { %v10752_v8 = vrot.slane %v10602_v23, %v6223_v50 }
 0x7ec   : > { %6079 = vmatpush1.bf16.msra.mxu0 %v8953_v9 }
 0x7ed   : > { %6080 = vmatprep.subr.bf16.mxu0 %v8958_v7 }
 0x7f0   : > { %6081 = vmatpush1.bf16.msra.mxu0 %v8956_v5  ;;  %v6173_v5 = vrot.slane %v6149_v48, 7 }
 0x7f1   : > { %6082 = vmatprep.subr.bf16.mxu0 %v8961_v57  ;;  %v6295_v57 = vsub.s32 7, %v10165_v62  ;;  %v9027_v62 = vld [vmem:[#allocation12 + $0x10] sm:$0xff] (%p10864_p1)  }
 0x7f3   : > { %v10766_v36 = vrot.slane %v10596_v56, %v6295_v57  ;;  %v10769_v11 = vrot.slane %v10602_v23, %v6295_v57 }
 0x7f4   : > { %6083 = vmatpush1.bf16.msra.mxu0 %v8959_v12 }
 0x7f5   : > { %6084 = vmatprep.subr.bf16.mxu0 %v8964_v43 }
 0x7f8   : > { %6085 = vmatpush1.bf16.msra.mxu0 %v8962_v47 }
 0x7f9   : > { %6086 = vmatprep.subr.bf16.mxu0 %v8967_v21  ;;  %v6247_v21 = vld [vmem:[#allocation2 + $0x30] sm:$0x1] }
 0x7fc   : > { %6087 = vmatpush1.bf16.msra.mxu0 %v8965_v59  ;;  %v10737_v59 = vld [vmem:[#allocation2 + $0x38] sm:$0x1] }
 0x7fd   : > { %6088 = vmatprep.subr.bf16.mxu0 %v8970_v35  ;;  %v6273_v37 = vrot.slane %v10737_v59, 1 }
 0x800   : > { %6089 = vmatpush1.bf16.msra.mxu0 %v8968_v16  ;;  %v6176_v16 = vrot.slane %v6150_v14, 7 }
 0x801   : > { %6090 = vmatprep.subr.bf16.mxu0 %v8973_v13 }
 0x804   : > { %6091 = vmatpush1.bf16.msra.mxu0 %v8971_v25  ;;  %v6155_v25 = vld [vmem:[#allocation2 + $0x40] sm:$0x80] }
 0x805   : > { %6092 = vmatprep.subr.bf16.mxu0 %v8976_v18  ;;  %v6156_v18 = vld [vmem:[#allocation2 + $0x48] sm:$0x80]  ;;  %v6183_v38 = vrot.slane %v6155_v25, 7 }
 0x806   : > { %v6186_v31 = vrot.slane %v6156_v18, 7 }
 0x808   : > { %6093 = vmatpush1.bf16.msra.mxu0 %v8974_v42  ;;  %v10749_v42 = vrot.slane %v10596_v56, %v6223_v50 }
 0x809   : > { %6094 = vmatprep.subr.bf16.mxu0 %v8979_v2  ;;  %v10754_v2 = vld [vmem:[#allocation2 + $0x70] sm:$0x1] }
 0x80a   : > { %v6281_v44 = vrot.slane %v10754_v2, 1 }
 0x80c   : > { %6095 = vmatpush1.bf16.msra.mxu0 %v8977_v28  ;;  %v6271_v28 = vrot.slane %v6247_v21, 1 }
 0x80f   : > { %6097 = vmatmul.mubr.bf16.vlgmr.msra.gmra.mrb[4].mxu0 %v5864_v52 }
 0x810   : > { %6106 = vmatprep.mubr.bf16.mxu0 %v5867_v4 }
 0x817   : > { %6107 = vmatmul.mubr.bf16.gmra.mrb[8].mxu0 %v5866_v17 }
 0x8e2   : > { %v6098_v27 = vpop.f32.mrb[4].mxu0 }
 0x8e3   : > { %v10725_v4 = vadd.f32 %v6128_v6, %v6098_v27   ;;  %v6100_v24 = vpop.f32.mrb[5].mxu0 }
 0x8e4   : > { %v10730_v3 = vadd.f32 %v10723_v58, %v6100_v24   ;;  %v6102_v7 = vpop.f32.mrb[6].mxu0 }
 0x8e5   : > { %v10944_v60 = vmov %v10725_v4  ;;  %v10734_v17 = vadd.f32 %v6128_v6, %v6102_v7   ;;  %v6104_v12 = vpop.f32.mrb[7].mxu0 }
 0x8e6   : > { %v10945_v9 = vmov %v10730_v3  ;;  %6141 = vst [vmem:[#allocation2 + $0x10] sm:$0xff] %v10944_v60  ;;  %v6174_v47 = vrot.slane %v10944_v60, 7  ;;  %v10741_v35 = vadd.f32 %v10723_v58, %v6104_v12   ;;  %v10756_v3 = vld [vmem:[#allocation2 + $0x78] sm:$0x1]  ;;  %v6229_v10 = vmul.f32 %v10749_v42, %v10944_v60 }
 0x8e7   : > { %v10946_v43 = vmov %v10734_v17  ;;  %6142 = vst [vmem:[#allocation2 + $0x18] sm:$0xff] %v10945_v9  ;;  %v6177_v13 = vrot.slane %v10945_v9, 7  ;;  %v6283_v56 = vrot.slane %v10756_v3, 1  ;;  %v6230_v4 = vmul.f32 %v10752_v8, %v10945_v9 }
 0x8e8   : > { %6143 = vst [vmem:[#allocation2 + $0x20] sm:$0xff] %v10946_v43  ;;  %6144 = vst [vmem:[#allocation2 + $0x28] sm:$0xff] %v10741_v35  ;;  %v6175_v30 = vsel %vm1510_vm5, %v6173_v5, %v6174_v47  ;;  %v6266_v41 = vrot.slane %v10946_v43, 1  ;;  %v6269_v32 = vrot.slane %v10741_v35, 1  ;;  %v6231_v55 = vmul.f32 %v10749_v42, %v10946_v43 }
 0x8e9   : > { %v6178_v40 = vsel %vm1510_vm5, %v6176_v16, %v6177_v13  ;;  %v6209_v23 = vmul.f32 %v10746_v46, %v6175_v30  ;;  %v6232_v17 = vmul.f32 %v10752_v8, %v10741_v35 }
 0x8ea   : > { %v6108_v39 = vpop.f32.mrb[8].mxu0  ;;  %v6210_v27 = vmul.f32 %v10763_v26, %v6178_v40  ;;  %v6272_v57 = vsel %vm2209_vm2, %v6266_v41, %v6271_v28 }
 0x8eb   : > { %v10778_v14 = vadd.f32 %v6128_v6, %v6108_v39   ;;  %v6110_v49 = vpop.f32.mrb[9].mxu0 }
 0x8ec   : > { %v10786_v24 = vadd.f32 %v10723_v58, %v6110_v49   ;;  %v6112_v54 = vpop.f32.mrb[10].mxu0  ;;  %v6238_v39 = vadd.f32 %v6230_v4, %v6210_v27  ;;  %v6274_v49 = vsel %vm2209_vm2, %v6269_v32, %v6273_v37  ;;  %v6303_v4 = vmul.f32 %v10766_v36, %v6272_v57 }
 0x8ed   : > { %v10947_v52 = vmov %v10778_v14  ;;  %v6245_v61 = vld [vmem:[#allocation2 + $0x10] sm:$0xfe]  ;;  %v10794_v53 = vadd.f32 %v6128_v6, %v6112_v54   ;;  %v6114_v48 = vpop.f32.mrb[11].mxu0  ;;  %v6237_v6 = vadd.f32 %v6229_v10, %v6209_v23 }
 0x8ee   : > { %v10948_v51 = vmov %v10786_v24  ;;  %6145 = vst [vmem:[#allocation2 + $0x50] sm:$0xff] %v10947_v52  ;;  %v6246_v14 = vld [vmem:[#allocation2 + $0x18] sm:$0xfe]  ;;  %v6265_v33 = vrot.slane %v6245_v61, 1  ;;  %v6184_v24 = vrot.slane %v10947_v52, 7  ;;  %v10800_v12 = vadd.f32 %v10723_v58, %v6114_v48  }
 0x8ef   : > { %6146 = vst [vmem:[#allocation2 + $0x58] sm:$0xff] %v10948_v51  ;;  %v6268_v7 = vrot.slane %v6246_v14, 1  ;;  %v6153_v5 = vld [vmem:[#allocation2 + $0x20] sm:$0x7f]  ;;  %v6187_v21 = vrot.slane %v10948_v51, 7  ;;  %6147 = vst [vmem:[#allocation2 + $0x60] sm:$0xff] %v10794_v53  ;;  %v6233_v37 = vmul.f32 %v10749_v42, %v10947_v52 }
 0x8f0   : > { %v10949_v50 = vmov %v10800_v12  ;;  %v6267_v59 = vsel %vm2209_vm2, %v6265_v33, %v6266_v41  ;;  %v6154_v16 = vld [vmem:[#allocation2 + $0x28] sm:$0x7f]  ;;  %v6179_v25 = vrot.slane %v6153_v5, 7  ;;  %v6185_v18 = vsel %vm1510_vm5, %v6183_v38, %v6184_v24 }
 0x8f1   : > { %6148 = vst [vmem:[#allocation2 + $0x68] sm:$0xff] %v10949_v50  ;;  %v6270_v58 = vsel %vm2209_vm2, %v6268_v7, %v6269_v32  ;;  %v6301_v12 = vmul.f32 %v10766_v36, %v6267_v59  ;;  %v6181_v30 = vrot.slane %v6154_v16, 7  ;;  %v6188_v28 = vsel %vm1510_vm5, %v6186_v31, %v6187_v21 }
 0x8f2   : > { %v6302_v40 = vmul.f32 %v10769_v11, %v6270_v58  ;;  %v6180_v41 = vsel %vm1510_vm5, %v6174_v47, %v6179_v25  ;;  %v6213_v54 = vmul.f32 %v10746_v46, %v6185_v18  ;;  %v6214_v48 = vmul.f32 %v10763_v26, %v6188_v28 }
 0x8f3   : > { %v6309_v23 = vadd.f32 %v6301_v12, %v6237_v6  ;;  %v6182_v38 = vsel %vm1510_vm5, %v6177_v13, %v6181_v30  ;;  %v6211_v10 = vmul.f32 %v10746_v46, %v6180_v41  ;;  %v6304_v47 = vmul.f32 %v10769_v11, %v6274_v49 }
 0x8f4   : > { %v6310_v61 = vadd.f32 %v6302_v40, %v6238_v39  ;;  %v6212_v31 = vmul.f32 %v10763_v26, %v6182_v38  ;;  %v6234_v13 = vmul.f32 %v10752_v8, %v10948_v51  ;;  %v6276_v6 = vrot.slane %v10794_v53, 1 }
 0x8f5   : > { %v6239_v27 = vadd.f32 %v6231_v55, %v6211_v10  ;;  %v6249_v32 = vld [vmem:[#allocation2 + $0x50] sm:$0xfe]  ;;  %v6241_v57 = vadd.f32 %v6233_v37, %v6213_v54  ;;  %v6279_v55 = vrot.slane %v10949_v50, 1  ;;  %v6235_v41 = vmul.f32 %v10749_v42, %v10794_v53 }
 0x8f6   : > { %v6317_v14 = vadd.f32 %v6310_v61, %v6309_v23  ;;  %v6240_v33 = vadd.f32 %v6232_v17, %v6212_v31  ;;  %v6250_v7 = vld [vmem:[#allocation2 + $0x58] sm:$0xfe]  ;;  %v6275_v5 = vrot.slane %v6249_v32, 1  ;;  %v6159_v25 = vld [vmem:[#allocation2 + $0x60] sm:$0x7f]  ;;  %v6242_v58 = vadd.f32 %v6234_v13, %v6214_v48 }
 0x8f7   : > { %v6311_v59 = vadd.f32 %v6303_v4, %v6239_v27  ;;  %v6278_v16 = vrot.slane %v6250_v7, 1  ;;  %v6189_v28 = vrot.slane %v6159_v25, 7  ;;  %v6282_v10 = vsel %vm2209_vm2, %v6276_v6, %v6281_v44  ;;  %v3810_v13 = vld [vmem:[%s10373_s27 + $0x18] sm:$0xff]  ;;  %v9022_v25 = vld [vmem:[#allocation12 + $0x40] sm:$0xff] (%p10864_p1)  }
 0x8f8   : > { %6318 = vadd.xlane.f32.xlu0 %v6317_v14  ;;  %v6312_v18 = vadd.f32 %v6304_v47, %v6240_v33  ;;  %v6277_v12 = vsel %vm2209_vm2, %v6275_v5, %v6276_v6  ;;  %v6160_v30 = vld [vmem:[#allocation2 + $0x68] sm:$0x7f]  ;;  %v6284_v4 = vsel %vm2209_vm2, %v6279_v55, %v6283_v56  ;;  %v6236_v2 = vmul.f32 %v10752_v8, %v10949_v50  ;;  %v3809_v56 = vld [vmem:[%s10373_s27 + $0x10] sm:$0xff] }
 0x8f9   : > { %v6280_v39 = vsel %vm2209_vm2, %v6278_v16, %v6279_v55  ;;  %v6305_v17 = vmul.f32 %v10766_v36, %v6277_v12  ;;  %v6191_v40 = vrot.slane %v6160_v30, 7  ;;  %v6190_v38 = vsel %vm1510_vm5, %v6184_v24, %v6189_v28  ;;  %7619 = vmatprep.subr.bf16.mxu0 (%p10864_p1), %v9022_v25  ;;  %8063 = vmatprep.subr.bf16.mxu1 (%p10864_p1), %v9022_v25  ;;  %v9024_v28 = vld [vmem:[#allocation12 + $0x48] sm:$0xff] (%p10864_p1)  }
 0x8fa   : > { %v6320_v49 = vadd.f32 %v6312_v18, %v6311_v59  ;;  %v6306_v23 = vmul.f32 %v10769_v11, %v6280_v39  ;;  %v6215_v31 = vmul.f32 %v10746_v46, %v6190_v38  ;;  %v6307_v44 = vmul.f32 %v10766_v36, %v6282_v10  ;;  %v9023_v18 = vld [vmem:[#allocation12] sm:$0xff] (%p10864_p1)   ;;  %v9025_v39 = vld [vmem:[#allocation12 + $0x8] sm:$0xff] (%p10864_p1)  }
 0x8fb   : > { %v6313_v54 = vadd.f32 %v6305_v17, %v6241_v57  ;;  %v6192_v61 = vsel %vm1510_vm5, %v6187_v21, %v6191_v40  ;;  %v6308_v46 = vmul.f32 %v10769_v11, %v6284_v4  ;;  %v6340_v32 = vrot.slane %v3809_v56, %v10168_v0  ;;  %7620 = vmatpush3.bf16.msra.mxu0 (%p10864_p1), %v9023_v18  ;;  %v9026_v40 = vld [vmem:[#allocation12 + $0x50] sm:$0xff] (%p10864_p1)  }
 0x8fc   : > { %6321 = vadd.xlane.f32.xlu0 %v6320_v49  ;;  %v6314_v42 = vadd.f32 %v6306_v23, %v6242_v58  ;;  %v6216_v48 = vmul.f32 %v10763_v26, %v6192_v61  ;;  %v6243_v24 = vadd.f32 %v6235_v41, %v6215_v31  ;;  %v6344_v26 = vrot.slane %v3810_v13, %v10168_v0  ;;  %v9028_v0 = vld [vmem:[#allocation12 + $0x58] sm:$0xff] (%p10864_p1)  }
 0x8fd   : > { %v10951_v12 = vmov %v10949_v50  ;;  %v10955_v23 = vmov %v10741_v35  ;;  %v10956_v17 = vmov %v10946_v43  ;;  %v10958_v4 = vmov %v10944_v60  ;;  %8071 = vmatpush3.bf16.msra.mxu1 (%p10864_p1), %v9023_v18  ;;  %7621 = vmatprep.subr.bf16.mxu0 (%p10864_p1), %v9024_v28 }
 0x8fe   : > { %v6323_v27 = vadd.f32 %v6314_v42, %v6313_v54  ;;  %v6244_v21 = vadd.f32 %v6236_v2, %v6216_v48  ;;  %v6315_v47 = vadd.f32 %v6307_v44, %v6243_v24  ;;  %v10953_v24 = vmov %v10948_v51  ;;  %8064 = vmatprep.subr.bf16.mxu1 (%p10864_p1), %v9024_v28  ;;  %v7599_v12 = vld [vmem:[#allocation14] ss:$0 sm:$0xff] (%p10864_p1) }
 0x8ff   :  { %v6354_v58 = vpack.c.bf16 (%p10864_p1), %v10741_v35, %v10945_v9  ;;  %v6356_v30 = vpack.c.bf16 (%p10864_p1), %v10949_v50, %v10948_v51  ;;  %7622 = vmatpush3.bf16.msra.mxu0 (%p10864_p1), %v9025_v39  ;;  %v6355_v35 = vpack.c.bf16 (%p10864_p1), %v10794_v53, %v10947_v52 }
 0x900   : > { %6324 = vadd.xlane.f32.xlu1 %v6323_v27  ;;  %v6316_v3 = vadd.f32 %v6308_v46, %v6244_v21  ;;  %7623 = vmatprep.subr.bf16.mxu0 (%p10864_p1), %v9026_v40 }
 0x901   :  { %6524 = vmatprep.mubr.bf16.mxu0 (%p10864_p1), %v6354_v58  ;;  %6532 = vmatprep.mubr.bf16.mxu1 (%p10864_p1), %v6356_v30 }
 0x902   : > { %v6326_v37 = vadd.f32 %v6316_v3, %v6315_v47  ;;  %v10957_v3 = vmov %v10945_v9  ;;  %8072 = vmatpush3.bf16.msra.mxu1 (%p10864_p1), %v9025_v39  ;;  %v6353_v9 = vpack.c.bf16 (%p10864_p1), %v10946_v43, %v10944_v60 }
 0x903   :  { %8065 = vmatprep.subr.bf16.mxu1 (%p10864_p1), %v9026_v40  ;;  %7624 = vmatpush3.bf16.msra.mxu0 (%p10864_p1), %v9027_v62 }
 0x904   : > { %6327 = vadd.xlane.f32.xlu1 %v6326_v37  ;;  %7625 = vmatprep.subr.bf16.mxu0 (%p10864_p1), %v9028_v0 }
 0x906   :  { %8073 = vmatpush3.bf16.msra.mxu1 (%p10864_p1), %v9027_v62 }
 0x907   :  { %8066 = vmatprep.subr.bf16.mxu1 (%p10864_p1), %v9028_v0  ;;  %7626 = vmatpush3.bf16.msra.mxu0 (%p10864_p1), %v9029_v1 }
 0x90a   :  { %8074 = vmatpush3.bf16.msra.mxu1 (%p10864_p1), %v9029_v1 }
 0x985   : > { %v6319_v14 = vpop.xlane.xlu0 %6318 }
 0x986   : > { %v6329_v8 = vadd.f32 %v9330_v29, %v6319_v14  ;;  %v6330_v36 = vadd.f32 %v9326_v63, %v6319_v14  ;;  %v10954_v14 = vmov %v10947_v52 }
 0x988   : > { %v6345_v29 = vadd.f32 %v6340_v32, %v6329_v8   ;;  %v6346_v63 = vadd.f32 %v6344_v26, %v6330_v36   ;;  %v10952_v8 = vmov %v10794_v53 }
 0x989   : > { %v6322_v33 = vpop.xlane.xlu0 %6321  ;;  %v9030_v29 = vld [vmem:[#allocation12 + $0x60] sm:$0xff] (%p10864_p1)  }
 0x98a   : > { %v6331_v11 = vadd.f32 %v9322_v34, %v6322_v33  ;;  %v6332_v7 = vadd.f32 %v9318_v15, %v6322_v33  ;;  %v9031_v63 = vld [vmem:[#allocation12 + $0x20] sm:$0xff] (%p10864_p1)   ;;  %7627 = vmatprep.subr.bf16.mxu0 (%p10864_p1), %v9030_v29  ;;  %8067 = vmatprep.subr.bf16.mxu1 (%p10864_p1), %v9030_v29 }
 0x98b   :  { %7628 = vmatpush3.bf16.msra.mxu0 (%p10864_p1), %v9031_v63  ;;  %8075 = vmatpush3.bf16.msra.mxu1 (%p10864_p1), %v9031_v63 }
 0x98c   : > { %v6347_v34 = vadd.f32 %v6340_v32, %v6331_v11   ;;  %v6348_v15 = vadd.f32 %v6344_v26, %v6332_v7  }
 0x98d   : > { %v6325_v5 = vpop.xlane.xlu1 %6324  ;;  %v9032_v34 = vld [vmem:[#allocation12 + $0x68] sm:$0xff] (%p10864_p1)  }
 0x98e   : > { %v6333_v6 = vadd.f32 %v9314_v19, %v6325_v5  ;;  %v6334_v59 = vadd.f32 %v9310_v20, %v6325_v5  ;;  %3786 = sbr.rel (!%p10864_p1) target bundleno = 979 (0x3d3), region = 123  ;;  %v9033_v15 = vld [vmem:[#allocation12 + $0x28] sm:$0xff] (%p10864_p1)   ;;  %7629 = vmatprep.subr.bf16.mxu0 (%p10864_p1), %v9032_v34  ;;  %8068 = vmatprep.subr.bf16.mxu1 (%p10864_p1), %v9032_v34 }
 0x98f   :  { %7630 = vmatpush3.bf16.msra.mxu0 (%p10864_p1), %v9033_v15  ;;  %8076 = vmatpush3.bf16.msra.mxu1 (%p10864_p1), %v9033_v15 }
 0x990   : > { %v6349_v19 = vadd.f32 %v6340_v32, %v6333_v6   ;;  %v6350_v20 = vadd.f32 %v6344_v26, %v6334_v59  }
 0x991   : > { %v6328_v57 = vpop.xlane.xlu1 %6327  ;;  %v9034_v19 = vld [vmem:[#allocation12 + $0x70] sm:$0xff] (%p10864_p1)  }
 0x992   : > { %v6335_v16 = vadd.f32 %v9306_v22, %v6328_v57  ;;  %v6336_v55 = vadd.f32 %v9302_v45, %v6328_v57  ;;  %v9035_v20 = vld [vmem:[#allocation12 + $0x30] sm:$0xff] (%p10864_p1)   ;;  %7631 = vmatprep.subr.bf16.mxu0 (%p10864_p1), %v9034_v19  ;;  %8069 = vmatprep.subr.bf16.mxu1 (%p10864_p1), %v9034_v19 }
 0x993   :  { %7632 = vmatpush3.bf16.msra.mxu0 (%p10864_p1), %v9035_v20  ;;  %8077 = vmatpush3.bf16.msra.mxu1 (%p10864_p1), %v9035_v20 }
 0x994   : > { %v6351_v22 = vadd.f32 %v6340_v32, %v6335_v16   ;;  %v6352_v45 = vadd.f32 %v6344_v26, %v6336_v55  }
 0x995   :  { %v9036_v22 = vld [vmem:[#allocation12 + $0x78] sm:$0xff]  }
 0x996   :  { %v9037_v45 = vld [vmem:[#allocation12 + $0x38] sm:$0xff]   ;;  %7633 = vmatprep.subr.bf16.mxu0 %v9036_v22  ;;  %8070 = vmatprep.subr.bf16.mxu1 %v9036_v22 }
 0x997   :  { %7634 = vmatpush3.bf16.msra.mxu0 %v9037_v45  ;;  %8078 = vmatpush3.bf16.msra.mxu1 %v9037_v45 }
 0x99a   :  { %6525 = vmatmul.mubr.bf16.vlgmr.msra.gmra.mrb[0].mxu0 %v6353_v9  ;;  %6533 = vmatmul.mubr.bf16.vlgmr.msra.gmra.mrb[0].mxu1 %v6355_v35 }
 0xa6d   :  { %v7635_v51 = vpop.f32.mrb[0].mxu0  ;;  %v7641_v50 = vpop.f32.mrb[0].mxu1 }
 0xa6e   :  { %v7636_v17 = vpop.f32.mrb[1].mxu0  ;;  %v7642_v41 = vpop.f32.mrb[1].mxu1 }
 0xa6f   :  { %v7637_v49 = vadd.f32 %v7636_v17, %v7635_v51  ;;  %v7643_v23 = vadd.f32 %v7642_v41, %v7641_v50  ;;  %v7638_v38 = vpop.f32.mrb[2].mxu0  ;;  %v7644_v10 = vpop.f32.mrb[2].mxu1 }
 0xa70   :  { %v7639_v54 = vpop.f32.mrb[3].mxu0  ;;  %v7645_v61 = vpop.f32.mrb[3].mxu1 }
 0xa71   :  { %v6527_v60 = vadd.f32 %v7637_v49, %v7599_v12  ;;  %v6535_v43 = vadd.f32 %v7643_v23, %v7599_v12  ;;  %v7640_v52 = vadd.f32 %v7639_v54, %v7638_v38  ;;  %v7646_v53 = vadd.f32 %v7645_v61, %v7644_v10 }
 0xa73   :  { %6541 = vst [vmem:[#allocation15] sm:$0xff] %v6527_v60  ;;  %6543 = vst [vmem:[#allocation15 + $0x10] sm:$0xff] %v6535_v43  ;;  %v6530_v31 = vadd.f32 %v7640_v52, %v7599_v12  ;;  %v6538_v4 = vadd.f32 %v7646_v53, %v7599_v12 }
 0xa75   :  { %6542 = vst [vmem:[#allocation15 + $0x8] sm:$0xff] %v6530_v31  ;;  %6544 = vst [vmem:[#allocation15 + $0x18] sm:$0xff] %v6538_v4 }
 0xa76   :  { %9203 = shalt.err (!%p9200_p6)
}
 0xa77   :  { %s9204_s2 = scalar_lea.hbm %s10943_s8, 512 }
 0xa78   :  { %p9205_p7 = scmp.ne.s32.totalorder %s10943_s8, %s9204_s2  ;;  %p9208_p8 = scmp.lt.u32.totalorder %s9204_s2, %s10943_s8 }
 0xa7a   :  { %p9210_p9 = pnand %p9208_p8, %p9205_p7 }
 0xa7c   :  { %9213 = shalt.err (!%p9210_p9)
}
 0xa7d   :  { %6556 = dma.vmem_to_hbm [thread:$0]  %s6551_s7, 512, %s10943_s8, [#allocation5], %s9369_s15, %s9369_s15, %s9370_s16  }
 0xa7e   :  { %9294 = dma.done.wait [#allocation5], 512  }
 0xa7f   :  { %9295 = vsyncadd [#allocation5], 4294966784 }
 0xa80   :  { %6560 = vsyncpa [#allocation4], 1 }
 0xa81   :  { %6561 = vsyncpa [#allocation7], 1 }
 0xa82   :  { %6562 = vsyncpa [#allocation10], 1 }
 0xa83   :  { %6563 = vsyncpa [#allocation13], 1 }
 0xa84   :  { %6564 = vsyncpa [#allocation5], 1 }

</bundles_post_ra>
